<compile_context>
chip_gen: v7x
topology: tpu7x:2x2x1
jax: 0.10.0
libtpu: 0.0.40
codegen_flags: <defaults>
</compile_context>

<pallas_src>
import jax
import jax.numpy as jnp
from jax.experimental import pallas as pl
from jax.experimental.pallas import tpu as pltpu

EPS = 1e-5
HID = 128  # LSTM hidden size


def _bn_train(x, gamma, beta):
    # BatchNorm1d in training mode: biased batch variance, single-pass stats.
    mean = jnp.mean(x, axis=0, keepdims=True)
    mean_sq = jnp.mean(x * x, axis=0, keepdims=True)
    var = jnp.maximum(mean_sq - mean * mean, 0.0)
    return (x - mean) * jax.lax.rsqrt(var + EPS) * gamma + beta


def _dense_block(x, w_ref, b_ref, g_ref, be_ref):
    # Linear -> BatchNorm1d(train) -> ReLU
    y = jnp.dot(x, w_ref[...], preferred_element_type=jnp.float32) + b_ref[...]
    return jnp.maximum(_bn_train(y, g_ref[...], be_ref[...]), 0.0)


def aeblstmjt_kernel(x_ref, *refs):
    (w1, b1, g1, be1,          # AE dense1  88 -> 70
     w2, b2, g2, be2,          # AE dense2  70 -> 54
     w3, b3, g3, be3,          # AE dense3  54 -> 70
     wp, bp,                   # AE proj    70 -> 88
     wa, ba,                   # aux        54 -> 128
     wih_f, whh_f, bg_f,       # LSTM forward  (128 -> 4*128), bf16 weights, combined bias
     wih_b, whh_b, bg_b,       # LSTM backward (128 -> 4*128), bf16 weights, combined bias
     glf, belf, glb, belb,     # BatchNorm1d(256) after LSTM, split per direction
     w1a_f, w1a_b, b1a, g1a, be1a,   # dense1a 256 -> 128 (weight split per direction)
     w2a, b2a, g2a, be2a,      # dense2a 128 -> 64
     w3a, b3a, g3a, be3a,      # dense3a 64  -> 2
     rec_ref, z_ref, prob_ref) = refs   # outputs

    x = x_ref[...]
    N = x.shape[0]

    # ---------------- AutoEncoder ----------------
    h = _dense_block(x, w1, b1, g1, be1)           # (N, 70)
    z = _dense_block(h, w2, b2, g2, be2)           # (N, 54)
    h = _dense_block(z, w3, b3, g3, be3)           # (N, 70)
    rec_ref[...] = jnp.dot(h, wp[...], preferred_element_type=jnp.float32) + bp[...]
    z_ref[...] = z

    # ---------------- BLSTM classifier ----------------
    a = jnp.dot(z, wa[...], preferred_element_type=jnp.float32) + ba[...]    # (N, 128)
    a_bf = a.astype(jnp.bfloat16)

    # Input-to-gate contributions for all time steps: one matmul per direction.
    gx_f = jnp.dot(a_bf, wih_f[...], preferred_element_type=jnp.float32) + bg_f[...]  # (N, 512)
    gx_b = jnp.dot(a_bf, wih_b[...], preferred_element_type=jnp.float32) + bg_b[...]  # (N, 512)

    def lstm_step(gx_row, h_prev, c_prev, whh_ref):
        # PyTorch gate order: i, f, g, o.  bf16 MXU operands, f32 accumulation;
        # all gate/activation math stays f32 (no bf16 on the VPU/EUP path).
        g = gx_row + jnp.dot(h_prev.astype(jnp.bfloat16), whh_ref[...],
                             preferred_element_type=jnp.float32)
        i_g = jax.nn.sigmoid(g[:, 0 * HID:1 * HID])
        f_g = jax.nn.sigmoid(g[:, 1 * HID:2 * HID])
        g_g = jnp.tanh(g[:, 2 * HID:3 * HID])
        o_g = jax.nn.sigmoid(g[:, 3 * HID:4 * HID])
        c = f_g * c_prev + i_g * g_g
        h = o_g * jnp.tanh(c)
        return h, c

    # Both directions unrolled in a single loop: the two recurrence chains are
    # independent, so each direction's MXU/EUP latency hides under the other's.
    # Hidden rows stay vreg-resident (no per-row scratch stores / reload).
    hf_rows = [None] * N
    hb_rows = [None] * N
    h_f = jnp.zeros((1, HID), jnp.float32)
    c_f = jnp.zeros((1, HID), jnp.float32)
    h_b = jnp.zeros((1, HID), jnp.float32)
    c_b = jnp.zeros((1, HID), jnp.float32)
    for i in range(N):
        tf, tb = i, N - 1 - i
        h_f, c_f = lstm_step(gx_f[tf:tf + 1, :], h_f, c_f, whh_f)
        h_b, c_b = lstm_step(gx_b[tb:tb + 1, :], h_b, c_b, whh_b)
        hf_rows[tf] = h_f
        hb_rows[tb] = h_b
    hf = jnp.concatenate(hf_rows, axis=0)           # (N, 128) forward outputs
    hb = jnp.concatenate(hb_rows, axis=0)           # (N, 128) backward outputs (time order)

    # BatchNorm1d(256) over concat([hf, hb], 1) == per-direction BN with split
    # params, and dense1a's Linear(256->128) == sum of two 128x128 matmuls:
    # the lane-dimension concat is never materialized.
    hf_n = _bn_train(hf, glf[...], belf[...])
    hb_n = _bn_train(hb, glb[...], belb[...])
    y = (jnp.dot(hf_n, w1a_f[...], preferred_element_type=jnp.float32)
         + jnp.dot(hb_n, w1a_b[...], preferred_element_type=jnp.float32)
         + b1a[...])
    y = jnp.maximum(_bn_train(y, g1a[...], be1a[...]), 0.0)                  # (N, 128)
    y = _dense_block(y, w2a, b2a, g2a, be2a)                                 # (N, 64)
    y = _dense_block(y, w3a, b3a, g3a, be3a)                                 # (N, 2)

    # Softmax(dim=1), numerically stable, EUP approx reciprocal for the denom.
    y = y - jnp.max(y, axis=1, keepdims=True)
    e = jnp.exp(y)
    prob_ref[...] = e * pl.reciprocal(jnp.sum(e, axis=1, keepdims=True), approx=True)


def make_params(key):
    """Deterministic synthetic parameters, stored already transposed (in, out)."""
    keys = iter(jax.random.split(key, 64))

    def W(shape, scale=0.1):
        return scale * jax.random.normal(next(keys), shape, jnp.float32)

    params = []

    def dense(i, o):
        params.extend([W((i, o)), W((1, o)),
                       jnp.ones((1, o), jnp.float32), jnp.zeros((1, o), jnp.float32)])

    # AutoEncoder
    dense(88, 70)
    dense(70, 54)
    dense(54, 70)
    params.extend([W((70, 88)), W((1, 88))])                     # proj
    # BLSTM classifier
    params.extend([W((54, 128)), W((1, 128))])                   # aux
    for _ in range(2):                                           # LSTM fwd / bwd
        params.extend([W((128, 4 * HID)), W((128, 4 * HID)), W((1, 4 * HID))])
    params.extend([jnp.ones((1, 2 * HID), jnp.float32),
                   jnp.zeros((1, 2 * HID), jnp.float32)])        # BatchNorm1d(256)
    dense(256, 128)
    dense(128, 64)
    dense(64, 2)
    return params


def aeblstmjt_forward(x, params):
    (w1, b1, g1, be1, w2, b2, g2, be2, w3, b3, g3, be3, wp, bp, wa, ba,
     wih_f, whh_f, bg_f, wih_b, whh_b, bg_b, gl, bel,
     w1a, b1a, g1a, be1a, w2a, b2a, g2a, be2a, w3a, b3a, g3a, be3a) = params

    # bf16 storage for the big LSTM weight matrices (halves VMEM->vreg traffic,
    # native MXU path); accumulation stays f32 inside the kernel.
    wih_f, whh_f = wih_f.astype(jnp.bfloat16), whh_f.astype(jnp.bfloat16)
    wih_b, whh_b = wih_b.astype(jnp.bfloat16), whh_b.astype(jnp.bfloat16)

    # Pre-split the post-LSTM BN params and the dense1a weight per direction so
    # the kernel never builds an (N, 256) lane concat.
    glf, glb = gl[:, :HID], gl[:, HID:]
    belf, belb = bel[:, :HID], bel[:, HID:]
    w1a_f, w1a_b = w1a[:HID, :], w1a[HID:, :]

    kern_inputs = (x, w1, b1, g1, be1, w2, b2, g2, be2, w3, b3, g3, be3,
                   wp, bp, wa, ba,
                   wih_f, whh_f, bg_f, wih_b, whh_b, bg_b,
                   glf, belf, glb, belb,
                   w1a_f, w1a_b, b1a, g1a, be1a,
                   w2a, b2a, g2a, be2a,
                   w3a, b3a, g3a, be3a)

    N = x.shape[0]
    vspec = pl.BlockSpec(memory_space=pltpu.MemorySpace.VMEM)
    out_shape = (jax.ShapeDtypeStruct((N, 88), jnp.float32),   # recons
                 jax.ShapeDtypeStruct((N, 54), jnp.float32),   # z
                 jax.ShapeDtypeStruct((N, 2), jnp.float32))    # softmax probs
    return pl.pallas_call(
        aeblstmjt_kernel,
        out_shape=out_shape,
        in_specs=[vspec] * len(kern_inputs),
        out_specs=(vspec, vspec, vspec),
    )(*kern_inputs)


if __name__ == "__main__":
    key = jax.random.PRNGKey(0)
    kx, kp = jax.random.split(key)
    N = 8                                    # sequence / batch length
    x = jax.random.normal(kx, (N, 88), jnp.float32)
    params = make_params(kp)

    recons, z, probs = jax.block_until_ready(aeblstmjt_forward(x, params))

    assert recons.shape == (N, 88)
    assert z.shape == (N, 54)
    assert probs.shape == (N, 2)
    assert bool(jnp.all(jnp.isfinite(recons))) and bool(jnp.all(jnp.isfinite(probs)))
    print("KERNEL_OK")
</pallas_src>

<mosaic_0001>
module attributes {stable_mosaic.version = 11 : i64} {
  func.func @aeblstmjt_kernel(%arg0: memref<8x88xf32, #tpu.memory_space<vmem>>, %arg1: memref<88x70xf32, #tpu.memory_space<vmem>>, %arg2: memref<1x70xf32, #tpu.memory_space<vmem>>, %arg3: memref<1x70xf32, #tpu.memory_space<vmem>>, %arg4: memref<1x70xf32, #tpu.memory_space<vmem>>, %arg5: memref<70x54xf32, #tpu.memory_space<vmem>>, %arg6: memref<1x54xf32, #tpu.memory_space<vmem>>, %arg7: memref<1x54xf32, #tpu.memory_space<vmem>>, %arg8: memref<1x54xf32, #tpu.memory_space<vmem>>, %arg9: memref<54x70xf32, #tpu.memory_space<vmem>>, %arg10: memref<1x70xf32, #tpu.memory_space<vmem>>, %arg11: memref<1x70xf32, #tpu.memory_space<vmem>>, %arg12: memref<1x70xf32, #tpu.memory_space<vmem>>, %arg13: memref<70x88xf32, #tpu.memory_space<vmem>>, %arg14: memref<1x88xf32, #tpu.memory_space<vmem>>, %arg15: memref<54x128xf32, #tpu.memory_space<vmem>>, %arg16: memref<1x128xf32, #tpu.memory_space<vmem>>, %arg17: memref<128x512xbf16, #tpu.memory_space<vmem>>, %arg18: memref<128x512xbf16, #tpu.memory_space<vmem>>, %arg19: memref<1x512xf32, #tpu.memory_space<vmem>>, %arg20: memref<128x512xbf16, #tpu.memory_space<vmem>>, %arg21: memref<128x512xbf16, #tpu.memory_space<vmem>>, %arg22: memref<1x512xf32, #tpu.memory_space<vmem>>, %arg23: memref<1x128xf32, #tpu.memory_space<vmem>>, %arg24: memref<1x128xf32, #tpu.memory_space<vmem>>, %arg25: memref<1x128xf32, #tpu.memory_space<vmem>>, %arg26: memref<1x128xf32, #tpu.memory_space<vmem>>, %arg27: memref<128x128xf32, #tpu.memory_space<vmem>>, %arg28: memref<128x128xf32, #tpu.memory_space<vmem>>, %arg29: memref<1x128xf32, #tpu.memory_space<vmem>>, %arg30: memref<1x128xf32, #tpu.memory_space<vmem>>, %arg31: memref<1x128xf32, #tpu.memory_space<vmem>>, %arg32: memref<128x64xf32, #tpu.memory_space<vmem>>, %arg33: memref<1x64xf32, #tpu.memory_space<vmem>>, %arg34: memref<1x64xf32, #tpu.memory_space<vmem>>, %arg35: memref<1x64xf32, #tpu.memory_space<vmem>>, %arg36: memref<64x2xf32, #tpu.memory_space<vmem>>, %arg37: memref<1x2xf32, #tpu.memory_space<vmem>>, %arg38: memref<1x2xf32, #tpu.memory_space<vmem>>, %arg39: memref<1x2xf32, #tpu.memory_space<vmem>>, %arg40: memref<8x88xf32, #tpu.memory_space<vmem>>, %arg41: memref<8x54xf32, #tpu.memory_space<vmem>>, %arg42: memref<8x2xf32, #tpu.memory_space<vmem>>) attributes {dimension_semantics = [], scalar_prefetch = 0 : i64, scratch_operands = 0 : i64, tpu.core_type = #tpu.core_type<tc>} {
    %c0 = arith.constant 0 : index
    %c0_0 = arith.constant 0 : index
    %0 = vector.load %arg0[%c0, %c0_0] : memref<8x88xf32, #tpu.memory_space<vmem>>, vector<8x88xf32>
    %c0_1 = arith.constant 0 : index
    %c0_2 = arith.constant 0 : index
    %1 = vector.load %arg1[%c0_1, %c0_2] : memref<88x70xf32, #tpu.memory_space<vmem>>, vector<88x70xf32>
    %cst = arith.constant dense<0.000000e+00> : vector<8x70xf32>
    %2 = tpu.matmul %0, %1, %cst {dimension_numbers = #tpu.dot_dimension_numbers<[1], [0], [0], [1], [0, 0, 1, 1], [], []>} : vector<8x88xf32>, vector<88x70xf32>, vector<8x70xf32> -> vector<8x70xf32>
    %c0_3 = arith.constant 0 : index
    %c0_4 = arith.constant 0 : index
    %3 = vector.load %arg2[%c0_3, %c0_4] : memref<1x70xf32, #tpu.memory_space<vmem>>, vector<1x70xf32>
    %4 = vector.broadcast %3 : vector<1x70xf32> to vector<8x70xf32>
    %5 = arith.addf %2, %4 : vector<8x70xf32>
    %c0_5 = arith.constant 0 : index
    %c0_6 = arith.constant 0 : index
    %6 = vector.load %arg3[%c0_5, %c0_6] : memref<1x70xf32, #tpu.memory_space<vmem>>, vector<1x70xf32>
    %c0_7 = arith.constant 0 : index
    %c0_8 = arith.constant 0 : index
    %7 = vector.load %arg4[%c0_7, %c0_8] : memref<1x70xf32, #tpu.memory_space<vmem>>, vector<1x70xf32>
    %cst_9 = arith.constant dense<0.000000e+00> : vector<70xf32>
    %8 = vector.multi_reduction <add>, %5, %cst_9 [0] : vector<8x70xf32> to vector<70xf32>
    %9 = vector.shape_cast %8 : vector<70xf32> to vector<1x70xf32>
    %cst_10 = arith.constant 8.000000e+00 : f32
    %10 = vector.broadcast %cst_10 : f32 to vector<1x70xf32>
    %11 = arith.divf %9, %10 : vector<1x70xf32>
    %12 = arith.mulf %5, %5 : vector<8x70xf32>
    %cst_11 = arith.constant dense<0.000000e+00> : vector<70xf32>
    %13 = vector.multi_reduction <add>, %12, %cst_11 [0] : vector<8x70xf32> to vector<70xf32>
    %14 = vector.shape_cast %13 : vector<70xf32> to vector<1x70xf32>
    %cst_12 = arith.constant 8.000000e+00 : f32
    %15 = vector.broadcast %cst_12 : f32 to vector<1x70xf32>
    %16 = arith.divf %14, %15 : vector<1x70xf32>
    %17 = arith.mulf %11, %11 : vector<1x70xf32>
    %18 = arith.subf %16, %17 : vector<1x70xf32>
    %cst_13 = arith.constant 0.000000e+00 : f32
    %19 = vector.broadcast %cst_13 : f32 to vector<1x70xf32>
    %20 = arith.maximumf %18, %19 : vector<1x70xf32>
    %21 = vector.broadcast %11 : vector<1x70xf32> to vector<8x70xf32>
    %22 = arith.subf %5, %21 : vector<8x70xf32>
    %cst_14 = arith.constant 9.99999974E-6 : f32
    %23 = vector.broadcast %cst_14 : f32 to vector<1x70xf32>
    %24 = arith.addf %20, %23 : vector<1x70xf32>
    %25 = math.rsqrt %24 : vector<1x70xf32>
    %26 = vector.broadcast %25 : vector<1x70xf32> to vector<8x70xf32>
    %27 = arith.mulf %22, %26 : vector<8x70xf32>
    %28 = vector.broadcast %6 : vector<1x70xf32> to vector<8x70xf32>
    %29 = arith.mulf %27, %28 : vector<8x70xf32>
    %30 = vector.broadcast %7 : vector<1x70xf32> to vector<8x70xf32>
    %31 = arith.addf %29, %30 : vector<8x70xf32>
    %cst_15 = arith.constant 0.000000e+00 : f32
    %32 = vector.broadcast %cst_15 : f32 to vector<8x70xf32>
    %33 = arith.maximumf %31, %32 : vector<8x70xf32>
    %c0_16 = arith.constant 0 : index
    %c0_17 = arith.constant 0 : index
    %34 = vector.load %arg5[%c0_16, %c0_17] : memref<70x54xf32, #tpu.memory_space<vmem>>, vector<70x54xf32>
    %cst_18 = arith.constant dense<0.000000e+00> : vector<8x54xf32>
    %35 = tpu.matmul %33, %34, %cst_18 {dimension_numbers = #tpu.dot_dimension_numbers<[1], [0], [0], [1], [0, 0, 1, 1], [], []>} : vector<8x70xf32>, vector<70x54xf32>, vector<8x54xf32> -> vector<8x54xf32>
    %c0_19 = arith.constant 0 : index
    %c0_20 = arith.constant 0 : index
    %36 = vector.load %arg6[%c0_19, %c0_20] : memref<1x54xf32, #tpu.memory_space<vmem>>, vector<1x54xf32>
    %37 = vector.broadcast %36 : vector<1x54xf32> to vector<8x54xf32>
    %38 = arith.addf %35, %37 : vector<8x54xf32>
    %c0_21 = arith.constant 0 : index
    %c0_22 = arith.constant 0 : index
    %39 = vector.load %arg7[%c0_21, %c0_22] : memref<1x54xf32, #tpu.memory_space<vmem>>, vector<1x54xf32>
    %c0_23 = arith.constant 0 : index
    %c0_24 = arith.constant 0 : index
    %40 = vector.load %arg8[%c0_23, %c0_24] : memref<1x54xf32, #tpu.memory_space<vmem>>, vector<1x54xf32>
    %cst_25 = arith.constant dense<0.000000e+00> : vector<54xf32>
    %41 = vector.multi_reduction <add>, %38, %cst_25 [0] : vector<8x54xf32> to vector<54xf32>
    %42 = vector.shape_cast %41 : vector<54xf32> to vector<1x54xf32>
    %cst_26 = arith.constant 8.000000e+00 : f32
    %43 = vector.broadcast %cst_26 : f32 to vector<1x54xf32>
    %44 = arith.divf %42, %43 : vector<1x54xf32>
    %45 = arith.mulf %38, %38 : vector<8x54xf32>
    %cst_27 = arith.constant dense<0.000000e+00> : vector<54xf32>
    %46 = vector.multi_reduction <add>, %45, %cst_27 [0] : vector<8x54xf32> to vector<54xf32>
    %47 = vector.shape_cast %46 : vector<54xf32> to vector<1x54xf32>
    %cst_28 = arith.constant 8.000000e+00 : f32
    %48 = vector.broadcast %cst_28 : f32 to vector<1x54xf32>
    %49 = arith.divf %47, %48 : vector<1x54xf32>
    %50 = arith.mulf %44, %44 : vector<1x54xf32>
    %51 = arith.subf %49, %50 : vector<1x54xf32>
    %cst_29 = arith.constant 0.000000e+00 : f32
    %52 = vector.broadcast %cst_29 : f32 to vector<1x54xf32>
    %53 = arith.maximumf %51, %52 : vector<1x54xf32>
    %54 = vector.broadcast %44 : vector<1x54xf32> to vector<8x54xf32>
    %55 = arith.subf %38, %54 : vector<8x54xf32>
    %cst_30 = arith.constant 9.99999974E-6 : f32
    %56 = vector.broadcast %cst_30 : f32 to vector<1x54xf32>
    %57 = arith.addf %53, %56 : vector<1x54xf32>
    %58 = math.rsqrt %57 : vector<1x54xf32>
    %59 = vector.broadcast %58 : vector<1x54xf32> to vector<8x54xf32>
    %60 = arith.mulf %55, %59 : vector<8x54xf32>
    %61 = vector.broadcast %39 : vector<1x54xf32> to vector<8x54xf32>
    %62 = arith.mulf %60, %61 : vector<8x54xf32>
    %63 = vector.broadcast %40 : vector<1x54xf32> to vector<8x54xf32>
    %64 = arith.addf %62, %63 : vector<8x54xf32>
    %cst_31 = arith.constant 0.000000e+00 : f32
    %65 = vector.broadcast %cst_31 : f32 to vector<8x54xf32>
    %66 = arith.maximumf %64, %65 : vector<8x54xf32>
    %c0_32 = arith.constant 0 : index
    %c0_33 = arith.constant 0 : index
    %67 = vector.load %arg9[%c0_32, %c0_33] : memref<54x70xf32, #tpu.memory_space<vmem>>, vector<54x70xf32>
    %cst_34 = arith.constant dense<0.000000e+00> : vector<8x70xf32>
    %68 = tpu.matmul %66, %67, %cst_34 {dimension_numbers = #tpu.dot_dimension_numbers<[1], [0], [0], [1], [0, 0, 1, 1], [], []>} : vector<8x54xf32>, vector<54x70xf32>, vector<8x70xf32> -> vector<8x70xf32>
    %c0_35 = arith.constant 0 : index
    %c0_36 = arith.constant 0 : index
    %69 = vector.load %arg10[%c0_35, %c0_36] : memref<1x70xf32, #tpu.memory_space<vmem>>, vector<1x70xf32>
    %70 = vector.broadcast %69 : vector<1x70xf32> to vector<8x70xf32>
    %71 = arith.addf %68, %70 : vector<8x70xf32>
    %c0_37 = arith.constant 0 : index
    %c0_38 = arith.constant 0 : index
    %72 = vector.load %arg11[%c0_37, %c0_38] : memref<1x70xf32, #tpu.memory_space<vmem>>, vector<1x70xf32>
    %c0_39 = arith.constant 0 : index
    %c0_40 = arith.constant 0 : index
    %73 = vector.load %arg12[%c0_39, %c0_40] : memref<1x70xf32, #tpu.memory_space<vmem>>, vector<1x70xf32>
    %cst_41 = arith.constant dense<0.000000e+00> : vector<70xf32>
    %74 = vector.multi_reduction <add>, %71, %cst_41 [0] : vector<8x70xf32> to vector<70xf32>
    %75 = vector.shape_cast %74 : vector<70xf32> to vector<1x70xf32>
    %cst_42 = arith.constant 8.000000e+00 : f32
    %76 = vector.broadcast %cst_42 : f32 to vector<1x70xf32>
    %77 = arith.divf %75, %76 : vector<1x70xf32>
    %78 = arith.mulf %71, %71 : vector<8x70xf32>
    %cst_43 = arith.constant dense<0.000000e+00> : vector<70xf32>
    %79 = vector.multi_reduction <add>, %78, %cst_43 [0] : vector<8x70xf32> to vector<70xf32>
    %80 = vector.shape_cast %79 : vector<70xf32> to vector<1x70xf32>
    %cst_44 = arith.constant 8.000000e+00 : f32
    %81 = vector.broadcast %cst_44 : f32 to vector<1x70xf32>
    %82 = arith.divf %80, %81 : vector<1x70xf32>
    %83 = arith.mulf %77, %77 : vector<1x70xf32>
    %84 = arith.subf %82, %83 : vector<1x70xf32>
    %cst_45 = arith.constant 0.000000e+00 : f32
    %85 = vector.broadcast %cst_45 : f32 to vector<1x70xf32>
    %86 = arith.maximumf %84, %85 : vector<1x70xf32>
    %87 = vector.broadcast %77 : vector<1x70xf32> to vector<8x70xf32>
    %88 = arith.subf %71, %87 : vector<8x70xf32>
    %cst_46 = arith.constant 9.99999974E-6 : f32
    %89 = vector.broadcast %cst_46 : f32 to vector<1x70xf32>
    %90 = arith.addf %86, %89 : vector<1x70xf32>
    %91 = math.rsqrt %90 : vector<1x70xf32>
    %92 = vector.broadcast %91 : vector<1x70xf32> to vector<8x70xf32>
    %93 = arith.mulf %88, %92 : vector<8x70xf32>
    %94 = vector.broadcast %72 : vector<1x70xf32> to vector<8x70xf32>
    %95 = arith.mulf %93, %94 : vector<8x70xf32>
    %96 = vector.broadcast %73 : vector<1x70xf32> to vector<8x70xf32>
    %97 = arith.addf %95, %96 : vector<8x70xf32>
    %cst_47 = arith.constant 0.000000e+00 : f32
    %98 = vector.broadcast %cst_47 : f32 to vector<8x70xf32>
    %99 = arith.maximumf %97, %98 : vector<8x70xf32>
    %c0_48 = arith.constant 0 : index
    %c0_49 = arith.constant 0 : index
    %100 = vector.load %arg13[%c0_48, %c0_49] : memref<70x88xf32, #tpu.memory_space<vmem>>, vector<70x88xf32>
    %cst_50 = arith.constant dense<0.000000e+00> : vector<8x88xf32>
    %101 = tpu.matmul %99, %100, %cst_50 {dimension_numbers = #tpu.dot_dimension_numbers<[1], [0], [0], [1], [0, 0, 1, 1], [], []>} : vector<8x70xf32>, vector<70x88xf32>, vector<8x88xf32> -> vector<8x88xf32>
    %c0_51 = arith.constant 0 : index
    %c0_52 = arith.constant 0 : index
    %102 = vector.load %arg14[%c0_51, %c0_52] : memref<1x88xf32, #tpu.memory_space<vmem>>, vector<1x88xf32>
    %103 = vector.broadcast %102 : vector<1x88xf32> to vector<8x88xf32>
    %104 = arith.addf %101, %103 : vector<8x88xf32>
    %c0_53 = arith.constant 0 : index
    %c0_54 = arith.constant 0 : index
    %105 = vector.load %arg40[%c0_53, %c0_54] : memref<8x88xf32, #tpu.memory_space<vmem>>, vector<8x88xf32>
    tpu.vector_store %arg40[%c0_53, %c0_54], %104 {strides = array<i32>} : memref<8x88xf32, #tpu.memory_space<vmem>>, vector<8x88xf32>,
    %c0_55 = arith.constant 0 : index
    %c0_56 = arith.constant 0 : index
    %106 = vector.load %arg41[%c0_55, %c0_56] : memref<8x54xf32, #tpu.memory_space<vmem>>, vector<8x54xf32>
    tpu.vector_store %arg41[%c0_55, %c0_56], %66 {strides = array<i32>} : memref<8x54xf32, #tpu.memory_space<vmem>>, vector<8x54xf32>,
    %c0_57 = arith.constant 0 : index
    %c0_58 = arith.constant 0 : index
    %107 = vector.load %arg15[%c0_57, %c0_58] : memref<54x128xf32, #tpu.memory_space<vmem>>, vector<54x128xf32>
    %cst_59 = arith.constant dense<0.000000e+00> : vector<8x128xf32>
    %108 = tpu.matmul %66, %107, %cst_59 {dimension_numbers = #tpu.dot_dimension_numbers<[1], [0], [0], [1], [0, 0, 1, 1], [], []>} : vector<8x54xf32>, vector<54x128xf32>, vector<8x128xf32> -> vector<8x128xf32>
    %c0_60 = arith.constant 0 : index
    %c0_61 = arith.constant 0 : index
    %109 = vector.load %arg16[%c0_60, %c0_61] : memref<1x128xf32, #tpu.memory_space<vmem>>, vector<1x128xf32>
    %110 = vector.broadcast %109 : vector<1x128xf32> to vector<8x128xf32>
    %111 = arith.addf %108, %110 : vector<8x128xf32>
    %112 = arith.truncf %111 : vector<8x128xf32> to vector<8x128xbf16>
    %c0_62 = arith.constant 0 : index
    %c0_63 = arith.constant 0 : index
    %113 = vector.load %arg17[%c0_62, %c0_63] : memref<128x512xbf16, #tpu.memory_space<vmem>>, vector<128x512xbf16>
    %cst_64 = arith.constant dense<0.000000e+00> : vector<8x512xf32>
    %114 = tpu.matmul %112, %113, %cst_64 {dimension_numbers = #tpu.dot_dimension_numbers<[1], [0], [0], [1], [0, 0, 1, 1], [], []>} : vector<8x128xbf16>, vector<128x512xbf16>, vector<8x512xf32> -> vector<8x512xf32>
    %c0_65 = arith.constant 0 : index
    %c0_66 = arith.constant 0 : index
    %115 = vector.load %arg19[%c0_65, %c0_66] : memref<1x512xf32, #tpu.memory_space<vmem>>, vector<1x512xf32>
    %116 = vector.broadcast %115 : vector<1x512xf32> to vector<8x512xf32>
    %117 = arith.addf %114, %116 : vector<8x512xf32>
    %c0_67 = arith.constant 0 : index
    %c0_68 = arith.constant 0 : index
    %118 = vector.load %arg20[%c0_67, %c0_68] : memref<128x512xbf16, #tpu.memory_space<vmem>>, vector<128x512xbf16>
    %cst_69 = arith.constant dense<0.000000e+00> : vector<8x512xf32>
    %119 = tpu.matmul %112, %118, %cst_69 {dimension_numbers = #tpu.dot_dimension_numbers<[1], [0], [0], [1], [0, 0, 1, 1], [], []>} : vector<8x128xbf16>, vector<128x512xbf16>, vector<8x512xf32> -> vector<8x512xf32>
    %c0_70 = arith.constant 0 : index
    %c0_71 = arith.constant 0 : index
    %120 = vector.load %arg22[%c0_70, %c0_71] : memref<1x512xf32, #tpu.memory_space<vmem>>, vector<1x512xf32>
    %121 = vector.broadcast %120 : vector<1x512xf32> to vector<8x512xf32>
    %122 = arith.addf %119, %121 : vector<8x512xf32>
    %cst_72 = arith.constant 0.000000e+00 : f32
    %123 = vector.broadcast %cst_72 : f32 to vector<1x128xf32>
    %cst_73 = arith.constant 0.000000e+00 : f32
    %124 = vector.broadcast %cst_73 : f32 to vector<1x128xf32>
    %cst_74 = arith.constant 0.000000e+00 : f32
    %125 = vector.broadcast %cst_74 : f32 to vector<1x128xf32>
    %cst_75 = arith.constant 0.000000e+00 : f32
    %126 = vector.broadcast %cst_75 : f32 to vector<1x128xf32>
    %127 = vector.extract_strided_slice %117 {offsets = [0, 0], sizes = [1, 512], strides = [1, 1]} : vector<8x512xf32> to vector<1x512xf32>
    %128 = arith.truncf %123 : vector<1x128xf32> to vector<1x128xbf16>
    %c0_76 = arith.constant 0 : index
    %c0_77 = arith.constant 0 : index
    %129 = vector.load %arg18[%c0_76, %c0_77] : memref<128x512xbf16, #tpu.memory_space<vmem>>, vector<128x512xbf16>
    %cst_78 = arith.constant dense<0.000000e+00> : vector<1x512xf32>
    %130 = tpu.matmul %128, %129, %cst_78 {dimension_numbers = #tpu.dot_dimension_numbers<[1], [0], [0], [1], [0, 0, 1, 1], [], []>} : vector<1x128xbf16>, vector<128x512xbf16>, vector<1x512xf32> -> vector<1x512xf32>
    %131 = arith.addf %127, %130 : vector<1x512xf32>
    %132 = vector.extract_strided_slice %131 {offsets = [0, 0], sizes = [1, 128], strides = [1, 1]} : vector<1x512xf32> to vector<1x128xf32>
    %133 = arith.negf %132 : vector<1x128xf32>
    %134 = math.exp %133 : vector<1x128xf32>
    %cst_79 = arith.constant 1.000000e+00 : f32
    %135 = vector.broadcast %cst_79 : f32 to vector<1x128xf32>
    %136 = arith.addf %135, %134 : vector<1x128xf32>
    %137 = arith.divf %135, %136 : vector<1x128xf32>
    %138 = vector.extract_strided_slice %131 {offsets = [0, 128], sizes = [1, 128], strides = [1, 1]} : vector<1x512xf32> to vector<1x128xf32>
    %139 = arith.negf %138 : vector<1x128xf32>
    %140 = math.exp %139 : vector<1x128xf32>
    %cst_80 = arith.constant 1.000000e+00 : f32
    %141 = vector.broadcast %cst_80 : f32 to vector<1x128xf32>
    %142 = arith.addf %141, %140 : vector<1x128xf32>
    %143 = arith.divf %141, %142 : vector<1x128xf32>
    %144 = vector.extract_strided_slice %131 {offsets = [0, 256], sizes = [1, 128], strides = [1, 1]} : vector<1x512xf32> to vector<1x128xf32>
    %145 = math.tanh %144 : vector<1x128xf32>
    %146 = vector.extract_strided_slice %131 {offsets = [0, 384], sizes = [1, 128], strides = [1, 1]} : vector<1x512xf32> to vector<1x128xf32>
    %147 = arith.negf %146 : vector<1x128xf32>
    %148 = math.exp %147 : vector<1x128xf32>
    %cst_81 = arith.constant 1.000000e+00 : f32
    %149 = vector.broadcast %cst_81 : f32 to vector<1x128xf32>
    %150 = arith.addf %149, %148 : vector<1x128xf32>
    %151 = arith.divf %149, %150 : vector<1x128xf32>
    %152 = arith.mulf %143, %124 : vector<1x128xf32>
    %153 = arith.mulf %137, %145 : vector<1x128xf32>
    %154 = arith.addf %152, %153 : vector<1x128xf32>
    %155 = math.tanh %154 : vector<1x128xf32>
    %156 = arith.mulf %151, %155 : vector<1x128xf32>
    %157 = vector.extract_strided_slice %122 {offsets = [7, 0], sizes = [1, 512], strides = [1, 1]} : vector<8x512xf32> to vector<1x512xf32>
    %158 = arith.truncf %125 : vector<1x128xf32> to vector<1x128xbf16>
    %c0_82 = arith.constant 0 : index
    %c0_83 = arith.constant 0 : index
    %159 = vector.load %arg21[%c0_82, %c0_83] : memref<128x512xbf16, #tpu.memory_space<vmem>>, vector<128x512xbf16>
    %cst_84 = arith.constant dense<0.000000e+00> : vector<1x512xf32>
    %160 = tpu.matmul %158, %159, %cst_84 {dimension_numbers = #tpu.dot_dimension_numbers<[1], [0], [0], [1], [0, 0, 1, 1], [], []>} : vector<1x128xbf16>, vector<128x512xbf16>, vector<1x512xf32> -> vector<1x512xf32>
    %161 = arith.addf %157, %160 : vector<1x512xf32>
    %162 = vector.extract_strided_slice %161 {offsets = [0, 0], sizes = [1, 128], strides = [1, 1]} : vector<1x512xf32> to vector<1x128xf32>
    %163 = arith.negf %162 : vector<1x128xf32>
    %164 = math.exp %163 : vector<1x128xf32>
    %cst_85 = arith.constant 1.000000e+00 : f32
    %165 = vector.broadcast %cst_85 : f32 to vector<1x128xf32>
    %166 = arith.addf %165, %164 : vector<1x128xf32>
    %167 = arith.divf %165, %166 : vector<1x128xf32>
    %168 = vector.extract_strided_slice %161 {offsets = [0, 128], sizes = [1, 128], strides = [1, 1]} : vector<1x512xf32> to vector<1x128xf32>
    %169 = arith.negf %168 : vector<1x128xf32>
    %170 = math.exp %169 : vector<1x128xf32>
    %cst_86 = arith.constant 1.000000e+00 : f32
    %171 = vector.broadcast %cst_86 : f32 to vector<1x128xf32>
    %172 = arith.addf %171, %170 : vector<1x128xf32>
    %173 = arith.divf %171, %172 : vector<1x128xf32>
    %174 = vector.extract_strided_slice %161 {offsets = [0, 256], sizes = [1, 128], strides = [1, 1]} : vector<1x512xf32> to vector<1x128xf32>
    %175 = math.tanh %174 : vector<1x128xf32>
    %176 = vector.extract_strided_slice %161 {offsets = [0, 384], sizes = [1, 128], strides = [1, 1]} : vector<1x512xf32> to vector<1x128xf32>
    %177 = arith.negf %176 : vector<1x128xf32>
    %178 = math.exp %177 : vector<1x128xf32>
    %cst_87 = arith.constant 1.000000e+00 : f32
    %179 = vector.broadcast %cst_87 : f32 to vector<1x128xf32>
    %180 = arith.addf %179, %178 : vector<1x128xf32>
    %181 = arith.divf %179, %180 : vector<1x128xf32>
    %182 = arith.mulf %173, %126 : vector<1x128xf32>
    %183 = arith.mulf %167, %175 : vector<1x128xf32>
    %184 = arith.addf %182, %183 : vector<1x128xf32>
    %185 = math.tanh %184 : vector<1x128xf32>
    %186 = arith.mulf %181, %185 : vector<1x128xf32>
    %187 = vector.extract_strided_slice %117 {offsets = [1, 0], sizes = [1, 512], strides = [1, 1]} : vector<8x512xf32> to vector<1x512xf32>
    %188 = arith.truncf %156 : vector<1x128xf32> to vector<1x128xbf16>
    %c0_88 = arith.constant 0 : index
    %c0_89 = arith.constant 0 : index
    %189 = vector.load %arg18[%c0_88, %c0_89] : memref<128x512xbf16, #tpu.memory_space<vmem>>, vector<128x512xbf16>
    %cst_90 = arith.constant dense<0.000000e+00> : vector<1x512xf32>
    %190 = tpu.matmul %188, %189, %cst_90 {dimension_numbers = #tpu.dot_dimension_numbers<[1], [0], [0], [1], [0, 0, 1, 1], [], []>} : vector<1x128xbf16>, vector<128x512xbf16>, vector<1x512xf32> -> vector<1x512xf32>
    %191 = arith.addf %187, %190 : vector<1x512xf32>
    %192 = vector.extract_strided_slice %191 {offsets = [0, 0], sizes = [1, 128], strides = [1, 1]} : vector<1x512xf32> to vector<1x128xf32>
    %193 = arith.negf %192 : vector<1x128xf32>
    %194 = math.exp %193 : vector<1x128xf32>
    %cst_91 = arith.constant 1.000000e+00 : f32
    %195 = vector.broadcast %cst_91 : f32 to vector<1x128xf32>
    %196 = arith.addf %195, %194 : vector<1x128xf32>
    %197 = arith.divf %195, %196 : vector<1x128xf32>
    %198 = vector.extract_strided_slice %191 {offsets = [0, 128], sizes = [1, 128], strides = [1, 1]} : vector<1x512xf32> to vector<1x128xf32>
    %199 = arith.negf %198 : vector<1x128xf32>
    %200 = math.exp %199 : vector<1x128xf32>
    %cst_92 = arith.constant 1.000000e+00 : f32
    %201 = vector.broadcast %cst_92 : f32 to vector<1x128xf32>
    %202 = arith.addf %201, %200 : vector<1x128xf32>
    %203 = arith.divf %201, %202 : vector<1x128xf32>
    %204 = vector.extract_strided_slice %191 {offsets = [0, 256], sizes = [1, 128], strides = [1, 1]} : vector<1x512xf32> to vector<1x128xf32>
    %205 = math.tanh %204 : vector<1x128xf32>
    %206 = vector.extract_strided_slice %191 {offsets = [0, 384], sizes = [1, 128], strides = [1, 1]} : vector<1x512xf32> to vector<1x128xf32>
    %207 = arith.negf %206 : vector<1x128xf32>
    %208 = math.exp %207 : vector<1x128xf32>
    %cst_93 = arith.constant 1.000000e+00 : f32
    %209 = vector.broadcast %cst_93 : f32 to vector<1x128xf32>
    %210 = arith.addf %209, %208 : vector<1x128xf32>
    %211 = arith.divf %209, %210 : vector<1x128xf32>
    %212 = arith.mulf %203, %154 : vector<1x128xf32>
    %213 = arith.mulf %197, %205 : vector<1x128xf32>
    %214 = arith.addf %212, %213 : vector<1x128xf32>
    %215 = math.tanh %214 : vector<1x128xf32>
    %216 = arith.mulf %211, %215 : vector<1x128xf32>
    %217 = vector.extract_strided_slice %122 {offsets = [6, 0], sizes = [1, 512], strides = [1, 1]} : vector<8x512xf32> to vector<1x512xf32>
    %218 = arith.truncf %186 : vector<1x128xf32> to vector<1x128xbf16>
    %c0_94 = arith.constant 0 : index
    %c0_95 = arith.constant 0 : index
    %219 = vector.load %arg21[%c0_94, %c0_95] : memref<128x512xbf16, #tpu.memory_space<vmem>>, vector<128x512xbf16>
    %cst_96 = arith.constant dense<0.000000e+00> : vector<1x512xf32>
    %220 = tpu.matmul %218, %219, %cst_96 {dimension_numbers = #tpu.dot_dimension_numbers<[1], [0], [0], [1], [0, 0, 1, 1], [], []>} : vector<1x128xbf16>, vector<128x512xbf16>, vector<1x512xf32> -> vector<1x512xf32>
    %221 = arith.addf %217, %220 : vector<1x512xf32>
    %222 = vector.extract_strided_slice %221 {offsets = [0, 0], sizes = [1, 128], strides = [1, 1]} : vector<1x512xf32> to vector<1x128xf32>
    %223 = arith.negf %222 : vector<1x128xf32>
    %224 = math.exp %223 : vector<1x128xf32>
    %cst_97 = arith.constant 1.000000e+00 : f32
    %225 = vector.broadcast %cst_97 : f32 to vector<1x128xf32>
    %226 = arith.addf %225, %224 : vector<1x128xf32>
    %227 = arith.divf %225, %226 : vector<1x128xf32>
    %228 = vector.extract_strided_slice %221 {offsets = [0, 128], sizes = [1, 128], strides = [1, 1]} : vector<1x512xf32> to vector<1x128xf32>
    %229 = arith.negf %228 : vector<1x128xf32>
    %230 = math.exp %229 : vector<1x128xf32>
    %cst_98 = arith.constant 1.000000e+00 : f32
    %231 = vector.broadcast %cst_98 : f32 to vector<1x128xf32>
    %232 = arith.addf %231, %230 : vector<1x128xf32>
    %233 = arith.divf %231, %232 : vector<1x128xf32>
    %234 = vector.extract_strided_slice %221 {offsets = [0, 256], sizes = [1, 128], strides = [1, 1]} : vector<1x512xf32> to vector<1x128xf32>
    %235 = math.tanh %234 : vector<1x128xf32>
    %236 = vector.extract_strided_slice %221 {offsets = [0, 384], sizes = [1, 128], strides = [1, 1]} : vector<1x512xf32> to vector<1x128xf32>
    %237 = arith.negf %236 : vector<1x128xf32>
    %238 = math.exp %237 : vector<1x128xf32>
    %cst_99 = arith.constant 1.000000e+00 : f32
    %239 = vector.broadcast %cst_99 : f32 to vector<1x128xf32>
    %240 = arith.addf %239, %238 : vector<1x128xf32>
    %241 = arith.divf %239, %240 : vector<1x128xf32>
    %242 = arith.mulf %233, %184 : vector<1x128xf32>
    %243 = arith.mulf %227, %235 : vector<1x128xf32>
    %244 = arith.addf %242, %243 : vector<1x128xf32>
    %245 = math.tanh %244 : vector<1x128xf32>
    %246 = arith.mulf %241, %245 : vector<1x128xf32>
    %247 = vector.extract_strided_slice %117 {offsets = [2, 0], sizes = [1, 512], strides = [1, 1]} : vector<8x512xf32> to vector<1x512xf32>
    %248 = arith.truncf %216 : vector<1x128xf32> to vector<1x128xbf16>
    %c0_100 = arith.constant 0 : index
    %c0_101 = arith.constant 0 : index
    %249 = vector.load %arg18[%c0_100, %c0_101] : memref<128x512xbf16, #tpu.memory_space<vmem>>, vector<128x512xbf16>
    %cst_102 = arith.constant dense<0.000000e+00> : vector<1x512xf32>
    %250 = tpu.matmul %248, %249, %cst_102 {dimension_numbers = #tpu.dot_dimension_numbers<[1], [0], [0], [1], [0, 0, 1, 1], [], []>} : vector<1x128xbf16>, vector<128x512xbf16>, vector<1x512xf32> -> vector<1x512xf32>
    %251 = arith.addf %247, %250 : vector<1x512xf32>
    %252 = vector.extract_strided_slice %251 {offsets = [0, 0], sizes = [1, 128], strides = [1, 1]} : vector<1x512xf32> to vector<1x128xf32>
    %253 = arith.negf %252 : vector<1x128xf32>
    %254 = math.exp %253 : vector<1x128xf32>
    %cst_103 = arith.constant 1.000000e+00 : f32
    %255 = vector.broadcast %cst_103 : f32 to vector<1x128xf32>
    %256 = arith.addf %255, %254 : vector<1x128xf32>
    %257 = arith.divf %255, %256 : vector<1x128xf32>
    %258 = vector.extract_strided_slice %251 {offsets = [0, 128], sizes = [1, 128], strides = [1, 1]} : vector<1x512xf32> to vector<1x128xf32>
    %259 = arith.negf %258 : vector<1x128xf32>
    %260 = math.exp %259 : vector<1x128xf32>
    %cst_104 = arith.constant 1.000000e+00 : f32
    %261 = vector.broadcast %cst_104 : f32 to vector<1x128xf32>
    %262 = arith.addf %261, %260 : vector<1x128xf32>
    %263 = arith.divf %261, %262 : vector<1x128xf32>
    %264 = vector.extract_strided_slice %251 {offsets = [0, 256], sizes = [1, 128], strides = [1, 1]} : vector<1x512xf32> to vector<1x128xf32>
    %265 = math.tanh %264 : vector<1x128xf32>
    %266 = vector.extract_strided_slice %251 {offsets = [0, 384], sizes = [1, 128], strides = [1, 1]} : vector<1x512xf32> to vector<1x128xf32>
    %267 = arith.negf %266 : vector<1x128xf32>
    %268 = math.exp %267 : vector<1x128xf32>
    %cst_105 = arith.constant 1.000000e+00 : f32
    %269 = vector.broadcast %cst_105 : f32 to vector<1x128xf32>
    %270 = arith.addf %269, %268 : vector<1x128xf32>
    %271 = arith.divf %269, %270 : vector<1x128xf32>
    %272 = arith.mulf %263, %214 : vector<1x128xf32>
    %273 = arith.mulf %257, %265 : vector<1x128xf32>
    %274 = arith.addf %272, %273 : vector<1x128xf32>
    %275 = math.tanh %274 : vector<1x128xf32>
    %276 = arith.mulf %271, %275 : vector<1x128xf32>
    %277 = vector.extract_strided_slice %122 {offsets = [5, 0], sizes = [1, 512], strides = [1, 1]} : vector<8x512xf32> to vector<1x512xf32>
    %278 = arith.truncf %246 : vector<1x128xf32> to vector<1x128xbf16>
    %c0_106 = arith.constant 0 : index
    %c0_107 = arith.constant 0 : index
    %279 = vector.load %arg21[%c0_106, %c0_107] : memref<128x512xbf16, #tpu.memory_space<vmem>>, vector<128x512xbf16>
    %cst_108 = arith.constant dense<0.000000e+00> : vector<1x512xf32>
    %280 = tpu.matmul %278, %279, %cst_108 {dimension_numbers = #tpu.dot_dimension_numbers<[1], [0], [0], [1], [0, 0, 1, 1], [], []>} : vector<1x128xbf16>, vector<128x512xbf16>, vector<1x512xf32> -> vector<1x512xf32>
    %281 = arith.addf %277, %280 : vector<1x512xf32>
    %282 = vector.extract_strided_slice %281 {offsets = [0, 0], sizes = [1, 128], strides = [1, 1]} : vector<1x512xf32> to vector<1x128xf32>
    %283 = arith.negf %282 : vector<1x128xf32>
    %284 = math.exp %283 : vector<1x128xf32>
    %cst_109 = arith.constant 1.000000e+00 : f32
    %285 = vector.broadcast %cst_109 : f32 to vector<1x128xf32>
    %286 = arith.addf %285, %284 : vector<1x128xf32>
    %287 = arith.divf %285, %286 : vector<1x128xf32>
    %288 = vector.extract_strided_slice %281 {offsets = [0, 128], sizes = [1, 128], strides = [1, 1]} : vector<1x512xf32> to vector<1x128xf32>
    %289 = arith.negf %288 : vector<1x128xf32>
    %290 = math.exp %289 : vector<1x128xf32>
    %cst_110 = arith.constant 1.000000e+00 : f32
    %291 = vector.broadcast %cst_110 : f32 to vector<1x128xf32>
    %292 = arith.addf %291, %290 : vector<1x128xf32>
    %293 = arith.divf %291, %292 : vector<1x128xf32>
    %294 = vector.extract_strided_slice %281 {offsets = [0, 256], sizes = [1, 128], strides = [1, 1]} : vector<1x512xf32> to vector<1x128xf32>
    %295 = math.tanh %294 : vector<1x128xf32>
    %296 = vector.extract_strided_slice %281 {offsets = [0, 384], sizes = [1, 128], strides = [1, 1]} : vector<1x512xf32> to vector<1x128xf32>
    %297 = arith.negf %296 : vector<1x128xf32>
    %298 = math.exp %297 : vector<1x128xf32>
    %cst_111 = arith.constant 1.000000e+00 : f32
    %299 = vector.broadcast %cst_111 : f32 to vector<1x128xf32>
    %300 = arith.addf %299, %298 : vector<1x128xf32>
    %301 = arith.divf %299, %300 : vector<1x128xf32>
    %302 = arith.mulf %293, %244 : vector<1x128xf32>
    %303 = arith.mulf %287, %295 : vector<1x128xf32>
    %304 = arith.addf %302, %303 : vector<1x128xf32>
    %305 = math.tanh %304 : vector<1x128xf32>
    %306 = arith.mulf %301, %305 : vector<1x128xf32>
    %307 = vector.extract_strided_slice %117 {offsets = [3, 0], sizes = [1, 512], strides = [1, 1]} : vector<8x512xf32> to vector<1x512xf32>
    %308 = arith.truncf %276 : vector<1x128xf32> to vector<1x128xbf16>
    %c0_112 = arith.constant 0 : index
    %c0_113 = arith.constant 0 : index
    %309 = vector.load %arg18[%c0_112, %c0_113] : memref<128x512xbf16, #tpu.memory_space<vmem>>, vector<128x512xbf16>
    %cst_114 = arith.constant dense<0.000000e+00> : vector<1x512xf32>
    %310 = tpu.matmul %308, %309, %cst_114 {dimension_numbers = #tpu.dot_dimension_numbers<[1], [0], [0], [1], [0, 0, 1, 1], [], []>} : vector<1x128xbf16>, vector<128x512xbf16>, vector<1x512xf32> -> vector<1x512xf32>
    %311 = arith.addf %307, %310 : vector<1x512xf32>
    %312 = vector.extract_strided_slice %311 {offsets = [0, 0], sizes = [1, 128], strides = [1, 1]} : vector<1x512xf32> to vector<1x128xf32>
    %313 = arith.negf %312 : vector<1x128xf32>
    %314 = math.exp %313 : vector<1x128xf32>
    %cst_115 = arith.constant 1.000000e+00 : f32
    %315 = vector.broadcast %cst_115 : f32 to vector<1x128xf32>
    %316 = arith.addf %315, %314 : vector<1x128xf32>
    %317 = arith.divf %315, %316 : vector<1x128xf32>
    %318 = vector.extract_strided_slice %311 {offsets = [0, 128], sizes = [1, 128], strides = [1, 1]} : vector<1x512xf32> to vector<1x128xf32>
    %319 = arith.negf %318 : vector<1x128xf32>
    %320 = math.exp %319 : vector<1x128xf32>
    %cst_116 = arith.constant 1.000000e+00 : f32
    %321 = vector.broadcast %cst_116 : f32 to vector<1x128xf32>
    %322 = arith.addf %321, %320 : vector<1x128xf32>
    %323 = arith.divf %321, %322 : vector<1x128xf32>
    %324 = vector.extract_strided_slice %311 {offsets = [0, 256], sizes = [1, 128], strides = [1, 1]} : vector<1x512xf32> to vector<1x128xf32>
    %325 = math.tanh %324 : vector<1x128xf32>
    %326 = vector.extract_strided_slice %311 {offsets = [0, 384], sizes = [1, 128], strides = [1, 1]} : vector<1x512xf32> to vector<1x128xf32>
    %327 = arith.negf %326 : vector<1x128xf32>
    %328 = math.exp %327 : vector<1x128xf32>
    %cst_117 = arith.constant 1.000000e+00 : f32
    %329 = vector.broadcast %cst_117 : f32 to vector<1x128xf32>
    %330 = arith.addf %329, %328 : vector<1x128xf32>
    %331 = arith.divf %329, %330 : vector<1x128xf32>
    %332 = arith.mulf %323, %274 : vector<1x128xf32>
    %333 = arith.mulf %317, %325 : vector<1x128xf32>
    %334 = arith.addf %332, %333 : vector<1x128xf32>
    %335 = math.tanh %334 : vector<1x128xf32>
    %336 = arith.mulf %331, %335 : vector<1x128xf32>
    %337 = vector.extract_strided_slice %122 {offsets = [4, 0], sizes = [1, 512], strides = [1, 1]} : vector<8x512xf32> to vector<1x512xf32>
    %338 = arith.truncf %306 : vector<1x128xf32> to vector<1x128xbf16>
    %c0_118 = arith.constant 0 : index
    %c0_119 = arith.constant 0 : index
    %339 = vector.load %arg21[%c0_118, %c0_119] : memref<128x512xbf16, #tpu.memory_space<vmem>>, vector<128x512xbf16>
    %cst_120 = arith.constant dense<0.000000e+00> : vector<1x512xf32>
    %340 = tpu.matmul %338, %339, %cst_120 {dimension_numbers = #tpu.dot_dimension_numbers<[1], [0], [0], [1], [0, 0, 1, 1], [], []>} : vector<1x128xbf16>, vector<128x512xbf16>, vector<1x512xf32> -> vector<1x512xf32>
    %341 = arith.addf %337, %340 : vector<1x512xf32>
    %342 = vector.extract_strided_slice %341 {offsets = [0, 0], sizes = [1, 128], strides = [1, 1]} : vector<1x512xf32> to vector<1x128xf32>
    %343 = arith.negf %342 : vector<1x128xf32>
    %344 = math.exp %343 : vector<1x128xf32>
    %cst_121 = arith.constant 1.000000e+00 : f32
    %345 = vector.broadcast %cst_121 : f32 to vector<1x128xf32>
    %346 = arith.addf %345, %344 : vector<1x128xf32>
    %347 = arith.divf %345, %346 : vector<1x128xf32>
    %348 = vector.extract_strided_slice %341 {offsets = [0, 128], sizes = [1, 128], strides = [1, 1]} : vector<1x512xf32> to vector<1x128xf32>
    %349 = arith.negf %348 : vector<1x128xf32>
    %350 = math.exp %349 : vector<1x128xf32>
    %cst_122 = arith.constant 1.000000e+00 : f32
    %351 = vector.broadcast %cst_122 : f32 to vector<1x128xf32>
    %352 = arith.addf %351, %350 : vector<1x128xf32>
    %353 = arith.divf %351, %352 : vector<1x128xf32>
    %354 = vector.extract_strided_slice %341 {offsets = [0, 256], sizes = [1, 128], strides = [1, 1]} : vector<1x512xf32> to vector<1x128xf32>
    %355 = math.tanh %354 : vector<1x128xf32>
    %356 = vector.extract_strided_slice %341 {offsets = [0, 384], sizes = [1, 128], strides = [1, 1]} : vector<1x512xf32> to vector<1x128xf32>
    %357 = arith.negf %356 : vector<1x128xf32>
    %358 = math.exp %357 : vector<1x128xf32>
    %cst_123 = arith.constant 1.000000e+00 : f32
    %359 = vector.broadcast %cst_123 : f32 to vector<1x128xf32>
    %360 = arith.addf %359, %358 : vector<1x128xf32>
    %361 = arith.divf %359, %360 : vector<1x128xf32>
    %362 = arith.mulf %353, %304 : vector<1x128xf32>
    %363 = arith.mulf %347, %355 : vector<1x128xf32>
    %364 = arith.addf %362, %363 : vector<1x128xf32>
    %365 = math.tanh %364 : vector<1x128xf32>
    %366 = arith.mulf %361, %365 : vector<1x128xf32>
    %367 = vector.extract_strided_slice %117 {offsets = [4, 0], sizes = [1, 512], strides = [1, 1]} : vector<8x512xf32> to vector<1x512xf32>
    %368 = arith.truncf %336 : vector<1x128xf32> to vector<1x128xbf16>
    %c0_124 = arith.constant 0 : index
    %c0_125 = arith.constant 0 : index
    %369 = vector.load %arg18[%c0_124, %c0_125] : memref<128x512xbf16, #tpu.memory_space<vmem>>, vector<128x512xbf16>
    %cst_126 = arith.constant dense<0.000000e+00> : vector<1x512xf32>
    %370 = tpu.matmul %368, %369, %cst_126 {dimension_numbers = #tpu.dot_dimension_numbers<[1], [0], [0], [1], [0, 0, 1, 1], [], []>} : vector<1x128xbf16>, vector<128x512xbf16>, vector<1x512xf32> -> vector<1x512xf32>
    %371 = arith.addf %367, %370 : vector<1x512xf32>
    %372 = vector.extract_strided_slice %371 {offsets = [0, 0], sizes = [1, 128], strides = [1, 1]} : vector<1x512xf32> to vector<1x128xf32>
    %373 = arith.negf %372 : vector<1x128xf32>
    %374 = math.exp %373 : vector<1x128xf32>
    %cst_127 = arith.constant 1.000000e+00 : f32
    %375 = vector.broadcast %cst_127 : f32 to vector<1x128xf32>
    %376 = arith.addf %375, %374 : vector<1x128xf32>
    %377 = arith.divf %375, %376 : vector<1x128xf32>
    %378 = vector.extract_strided_slice %371 {offsets = [0, 128], sizes = [1, 128], strides = [1, 1]} : vector<1x512xf32> to vector<1x128xf32>
    %379 = arith.negf %378 : vector<1x128xf32>
    %380 = math.exp %379 : vector<1x128xf32>
    %cst_128 = arith.constant 1.000000e+00 : f32
    %381 = vector.broadcast %cst_128 : f32 to vector<1x128xf32>
    %382 = arith.addf %381, %380 : vector<1x128xf32>
    %383 = arith.divf %381, %382 : vector<1x128xf32>
    %384 = vector.extract_strided_slice %371 {offsets = [0, 256], sizes = [1, 128], strides = [1, 1]} : vector<1x512xf32> to vector<1x128xf32>
    %385 = math.tanh %384 : vector<1x128xf32>
    %386 = vector.extract_strided_slice %371 {offsets = [0, 384], sizes = [1, 128], strides = [1, 1]} : vector<1x512xf32> to vector<1x128xf32>
    %387 = arith.negf %386 : vector<1x128xf32>
    %388 = math.exp %387 : vector<1x128xf32>
    %cst_129 = arith.constant 1.000000e+00 : f32
    %389 = vector.broadcast %cst_129 : f32 to vector<1x128xf32>
    %390 = arith.addf %389, %388 : vector<1x128xf32>
    %391 = arith.divf %389, %390 : vector<1x128xf32>
    %392 = arith.mulf %383, %334 : vector<1x128xf32>
    %393 = arith.mulf %377, %385 : vector<1x128xf32>
    %394 = arith.addf %392, %393 : vector<1x128xf32>
    %395 = math.tanh %394 : vector<1x128xf32>
    %396 = arith.mulf %391, %395 : vector<1x128xf32>
    %397 = vector.extract_strided_slice %122 {offsets = [3, 0], sizes = [1, 512], strides = [1, 1]} : vector<8x512xf32> to vector<1x512xf32>
    %398 = arith.truncf %366 : vector<1x128xf32> to vector<1x128xbf16>
    %c0_130 = arith.constant 0 : index
    %c0_131 = arith.constant 0 : index
    %399 = vector.load %arg21[%c0_130, %c0_131] : memref<128x512xbf16, #tpu.memory_space<vmem>>, vector<128x512xbf16>
    %cst_132 = arith.constant dense<0.000000e+00> : vector<1x512xf32>
    %400 = tpu.matmul %398, %399, %cst_132 {dimension_numbers = #tpu.dot_dimension_numbers<[1], [0], [0], [1], [0, 0, 1, 1], [], []>} : vector<1x128xbf16>, vector<128x512xbf16>, vector<1x512xf32> -> vector<1x512xf32>
    %401 = arith.addf %397, %400 : vector<1x512xf32>
    %402 = vector.extract_strided_slice %401 {offsets = [0, 0], sizes = [1, 128], strides = [1, 1]} : vector<1x512xf32> to vector<1x128xf32>
    %403 = arith.negf %402 : vector<1x128xf32>
    %404 = math.exp %403 : vector<1x128xf32>
    %cst_133 = arith.constant 1.000000e+00 : f32
    %405 = vector.broadcast %cst_133 : f32 to vector<1x128xf32>
    %406 = arith.addf %405, %404 : vector<1x128xf32>
    %407 = arith.divf %405, %406 : vector<1x128xf32>
    %408 = vector.extract_strided_slice %401 {offsets = [0, 128], sizes = [1, 128], strides = [1, 1]} : vector<1x512xf32> to vector<1x128xf32>
    %409 = arith.negf %408 : vector<1x128xf32>
    %410 = math.exp %409 : vector<1x128xf32>
    %cst_134 = arith.constant 1.000000e+00 : f32
    %411 = vector.broadcast %cst_134 : f32 to vector<1x128xf32>
    %412 = arith.addf %411, %410 : vector<1x128xf32>
    %413 = arith.divf %411, %412 : vector<1x128xf32>
    %414 = vector.extract_strided_slice %401 {offsets = [0, 256], sizes = [1, 128], strides = [1, 1]} : vector<1x512xf32> to vector<1x128xf32>
    %415 = math.tanh %414 : vector<1x128xf32>
    %416 = vector.extract_strided_slice %401 {offsets = [0, 384], sizes = [1, 128], strides = [1, 1]} : vector<1x512xf32> to vector<1x128xf32>
    %417 = arith.negf %416 : vector<1x128xf32>
    %418 = math.exp %417 : vector<1x128xf32>
    %cst_135 = arith.constant 1.000000e+00 : f32
    %419 = vector.broadcast %cst_135 : f32 to vector<1x128xf32>
    %420 = arith.addf %419, %418 : vector<1x128xf32>
    %421 = arith.divf %419, %420 : vector<1x128xf32>
    %422 = arith.mulf %413, %364 : vector<1x128xf32>
    %423 = arith.mulf %407, %415 : vector<1x128xf32>
    %424 = arith.addf %422, %423 : vector<1x128xf32>
    %425 = math.tanh %424 : vector<1x128xf32>
    %426 = arith.mulf %421, %425 : vector<1x128xf32>
    %427 = vector.extract_strided_slice %117 {offsets = [5, 0], sizes = [1, 512], strides = [1, 1]} : vector<8x512xf32> to vector<1x512xf32>
    %428 = arith.truncf %396 : vector<1x128xf32> to vector<1x128xbf16>
    %c0_136 = arith.constant 0 : index
    %c0_137 = arith.constant 0 : index
    %429 = vector.load %arg18[%c0_136, %c0_137] : memref<128x512xbf16, #tpu.memory_space<vmem>>, vector<128x512xbf16>
    %cst_138 = arith.constant dense<0.000000e+00> : vector<1x512xf32>
    %430 = tpu.matmul %428, %429, %cst_138 {dimension_numbers = #tpu.dot_dimension_numbers<[1], [0], [0], [1], [0, 0, 1, 1], [], []>} : vector<1x128xbf16>, vector<128x512xbf16>, vector<1x512xf32> -> vector<1x512xf32>
    %431 = arith.addf %427, %430 : vector<1x512xf32>
    %432 = vector.extract_strided_slice %431 {offsets = [0, 0], sizes = [1, 128], strides = [1, 1]} : vector<1x512xf32> to vector<1x128xf32>
    %433 = arith.negf %432 : vector<1x128xf32>
    %434 = math.exp %433 : vector<1x128xf32>
    %cst_139 = arith.constant 1.000000e+00 : f32
    %435 = vector.broadcast %cst_139 : f32 to vector<1x128xf32>
    %436 = arith.addf %435, %434 : vector<1x128xf32>
    %437 = arith.divf %435, %436 : vector<1x128xf32>
    %438 = vector.extract_strided_slice %431 {offsets = [0, 128], sizes = [1, 128], strides = [1, 1]} : vector<1x512xf32> to vector<1x128xf32>
    %439 = arith.negf %438 : vector<1x128xf32>
    %440 = math.exp %439 : vector<1x128xf32>
    %cst_140 = arith.constant 1.000000e+00 : f32
    %441 = vector.broadcast %cst_140 : f32 to vector<1x128xf32>
    %442 = arith.addf %441, %440 : vector<1x128xf32>
    %443 = arith.divf %441, %442 : vector<1x128xf32>
    %444 = vector.extract_strided_slice %431 {offsets = [0, 256], sizes = [1, 128], strides = [1, 1]} : vector<1x512xf32> to vector<1x128xf32>
    %445 = math.tanh %444 : vector<1x128xf32>
    %446 = vector.extract_strided_slice %431 {offsets = [0, 384], sizes = [1, 128], strides = [1, 1]} : vector<1x512xf32> to vector<1x128xf32>
    %447 = arith.negf %446 : vector<1x128xf32>
    %448 = math.exp %447 : vector<1x128xf32>
    %cst_141 = arith.constant 1.000000e+00 : f32
    %449 = vector.broadcast %cst_141 : f32 to vector<1x128xf32>
    %450 = arith.addf %449, %448 : vector<1x128xf32>
    %451 = arith.divf %449, %450 : vector<1x128xf32>
    %452 = arith.mulf %443, %394 : vector<1x128xf32>
    %453 = arith.mulf %437, %445 : vector<1x128xf32>
    %454 = arith.addf %452, %453 : vector<1x128xf32>
    %455 = math.tanh %454 : vector<1x128xf32>
    %456 = arith.mulf %451, %455 : vector<1x128xf32>
    %457 = vector.extract_strided_slice %122 {offsets = [2, 0], sizes = [1, 512], strides = [1, 1]} : vector<8x512xf32> to vector<1x512xf32>
    %458 = arith.truncf %426 : vector<1x128xf32> to vector<1x128xbf16>
    %c0_142 = arith.constant 0 : index
    %c0_143 = arith.constant 0 : index
    %459 = vector.load %arg21[%c0_142, %c0_143] : memref<128x512xbf16, #tpu.memory_space<vmem>>, vector<128x512xbf16>
    %cst_144 = arith.constant dense<0.000000e+00> : vector<1x512xf32>
    %460 = tpu.matmul %458, %459, %cst_144 {dimension_numbers = #tpu.dot_dimension_numbers<[1], [0], [0], [1], [0, 0, 1, 1], [], []>} : vector<1x128xbf16>, vector<128x512xbf16>, vector<1x512xf32> -> vector<1x512xf32>
    %461 = arith.addf %457, %460 : vector<1x512xf32>
    %462 = vector.extract_strided_slice %461 {offsets = [0, 0], sizes = [1, 128], strides = [1, 1]} : vector<1x512xf32> to vector<1x128xf32>
    %463 = arith.negf %462 : vector<1x128xf32>
    %464 = math.exp %463 : vector<1x128xf32>
    %cst_145 = arith.constant 1.000000e+00 : f32
    %465 = vector.broadcast %cst_145 : f32 to vector<1x128xf32>
    %466 = arith.addf %465, %464 : vector<1x128xf32>
    %467 = arith.divf %465, %466 : vector<1x128xf32>
    %468 = vector.extract_strided_slice %461 {offsets = [0, 128], sizes = [1, 128], strides = [1, 1]} : vector<1x512xf32> to vector<1x128xf32>
    %469 = arith.negf %468 : vector<1x128xf32>
    %470 = math.exp %469 : vector<1x128xf32>
    %cst_146 = arith.constant 1.000000e+00 : f32
    %471 = vector.broadcast %cst_146 : f32 to vector<1x128xf32>
    %472 = arith.addf %471, %470 : vector<1x128xf32>
    %473 = arith.divf %471, %472 : vector<1x128xf32>
    %474 = vector.extract_strided_slice %461 {offsets = [0, 256], sizes = [1, 128], strides = [1, 1]} : vector<1x512xf32> to vector<1x128xf32>
    %475 = math.tanh %474 : vector<1x128xf32>
    %476 = vector.extract_strided_slice %461 {offsets = [0, 384], sizes = [1, 128], strides = [1, 1]} : vector<1x512xf32> to vector<1x128xf32>
    %477 = arith.negf %476 : vector<1x128xf32>
    %478 = math.exp %477 : vector<1x128xf32>
    %cst_147 = arith.constant 1.000000e+00 : f32
    %479 = vector.broadcast %cst_147 : f32 to vector<1x128xf32>
    %480 = arith.addf %479, %478 : vector<1x128xf32>
    %481 = arith.divf %479, %480 : vector<1x128xf32>
    %482 = arith.mulf %473, %424 : vector<1x128xf32>
    %483 = arith.mulf %467, %475 : vector<1x128xf32>
    %484 = arith.addf %482, %483 : vector<1x128xf32>
    %485 = math.tanh %484 : vector<1x128xf32>
    %486 = arith.mulf %481, %485 : vector<1x128xf32>
    %487 = vector.extract_strided_slice %117 {offsets = [6, 0], sizes = [1, 512], strides = [1, 1]} : vector<8x512xf32> to vector<1x512xf32>
    %488 = arith.truncf %456 : vector<1x128xf32> to vector<1x128xbf16>
    %c0_148 = arith.constant 0 : index
    %c0_149 = arith.constant 0 : index
    %489 = vector.load %arg18[%c0_148, %c0_149] : memref<128x512xbf16, #tpu.memory_space<vmem>>, vector<128x512xbf16>
    %cst_150 = arith.constant dense<0.000000e+00> : vector<1x512xf32>
    %490 = tpu.matmul %488, %489, %cst_150 {dimension_numbers = #tpu.dot_dimension_numbers<[1], [0], [0], [1], [0, 0, 1, 1], [], []>} : vector<1x128xbf16>, vector<128x512xbf16>, vector<1x512xf32> -> vector<1x512xf32>
    %491 = arith.addf %487, %490 : vector<1x512xf32>
    %492 = vector.extract_strided_slice %491 {offsets = [0, 0], sizes = [1, 128], strides = [1, 1]} : vector<1x512xf32> to vector<1x128xf32>
    %493 = arith.negf %492 : vector<1x128xf32>
    %494 = math.exp %493 : vector<1x128xf32>
    %cst_151 = arith.constant 1.000000e+00 : f32
    %495 = vector.broadcast %cst_151 : f32 to vector<1x128xf32>
    %496 = arith.addf %495, %494 : vector<1x128xf32>
    %497 = arith.divf %495, %496 : vector<1x128xf32>
    %498 = vector.extract_strided_slice %491 {offsets = [0, 128], sizes = [1, 128], strides = [1, 1]} : vector<1x512xf32> to vector<1x128xf32>
    %499 = arith.negf %498 : vector<1x128xf32>
    %500 = math.exp %499 : vector<1x128xf32>
    %cst_152 = arith.constant 1.000000e+00 : f32
    %501 = vector.broadcast %cst_152 : f32 to vector<1x128xf32>
    %502 = arith.addf %501, %500 : vector<1x128xf32>
    %503 = arith.divf %501, %502 : vector<1x128xf32>
    %504 = vector.extract_strided_slice %491 {offsets = [0, 256], sizes = [1, 128], strides = [1, 1]} : vector<1x512xf32> to vector<1x128xf32>
    %505 = math.tanh %504 : vector<1x128xf32>
    %506 = vector.extract_strided_slice %491 {offsets = [0, 384], sizes = [1, 128], strides = [1, 1]} : vector<1x512xf32> to vector<1x128xf32>
    %507 = arith.negf %506 : vector<1x128xf32>
    %508 = math.exp %507 : vector<1x128xf32>
    %cst_153 = arith.constant 1.000000e+00 : f32
    %509 = vector.broadcast %cst_153 : f32 to vector<1x128xf32>
    %510 = arith.addf %509, %508 : vector<1x128xf32>
    %511 = arith.divf %509, %510 : vector<1x128xf32>
    %512 = arith.mulf %503, %454 : vector<1x128xf32>
    %513 = arith.mulf %497, %505 : vector<1x128xf32>
    %514 = arith.addf %512, %513 : vector<1x128xf32>
    %515 = math.tanh %514 : vector<1x128xf32>
    %516 = arith.mulf %511, %515 : vector<1x128xf32>
    %517 = vector.extract_strided_slice %122 {offsets = [1, 0], sizes = [1, 512], strides = [1, 1]} : vector<8x512xf32> to vector<1x512xf32>
    %518 = arith.truncf %486 : vector<1x128xf32> to vector<1x128xbf16>
    %c0_154 = arith.constant 0 : index
    %c0_155 = arith.constant 0 : index
    %519 = vector.load %arg21[%c0_154, %c0_155] : memref<128x512xbf16, #tpu.memory_space<vmem>>, vector<128x512xbf16>
    %cst_156 = arith.constant dense<0.000000e+00> : vector<1x512xf32>
    %520 = tpu.matmul %518, %519, %cst_156 {dimension_numbers = #tpu.dot_dimension_numbers<[1], [0], [0], [1], [0, 0, 1, 1], [], []>} : vector<1x128xbf16>, vector<128x512xbf16>, vector<1x512xf32> -> vector<1x512xf32>
    %521 = arith.addf %517, %520 : vector<1x512xf32>
    %522 = vector.extract_strided_slice %521 {offsets = [0, 0], sizes = [1, 128], strides = [1, 1]} : vector<1x512xf32> to vector<1x128xf32>
    %523 = arith.negf %522 : vector<1x128xf32>
    %524 = math.exp %523 : vector<1x128xf32>
    %cst_157 = arith.constant 1.000000e+00 : f32
    %525 = vector.broadcast %cst_157 : f32 to vector<1x128xf32>
    %526 = arith.addf %525, %524 : vector<1x128xf32>
    %527 = arith.divf %525, %526 : vector<1x128xf32>
    %528 = vector.extract_strided_slice %521 {offsets = [0, 128], sizes = [1, 128], strides = [1, 1]} : vector<1x512xf32> to vector<1x128xf32>
    %529 = arith.negf %528 : vector<1x128xf32>
    %530 = math.exp %529 : vector<1x128xf32>
    %cst_158 = arith.constant 1.000000e+00 : f32
    %531 = vector.broadcast %cst_158 : f32 to vector<1x128xf32>
    %532 = arith.addf %531, %530 : vector<1x128xf32>
    %533 = arith.divf %531, %532 : vector<1x128xf32>
    %534 = vector.extract_strided_slice %521 {offsets = [0, 256], sizes = [1, 128], strides = [1, 1]} : vector<1x512xf32> to vector<1x128xf32>
    %535 = math.tanh %534 : vector<1x128xf32>
    %536 = vector.extract_strided_slice %521 {offsets = [0, 384], sizes = [1, 128], strides = [1, 1]} : vector<1x512xf32> to vector<1x128xf32>
    %537 = arith.negf %536 : vector<1x128xf32>
    %538 = math.exp %537 : vector<1x128xf32>
    %cst_159 = arith.constant 1.000000e+00 : f32
    %539 = vector.broadcast %cst_159 : f32 to vector<1x128xf32>
    %540 = arith.addf %539, %538 : vector<1x128xf32>
    %541 = arith.divf %539, %540 : vector<1x128xf32>
    %542 = arith.mulf %533, %484 : vector<1x128xf32>
    %543 = arith.mulf %527, %535 : vector<1x128xf32>
    %544 = arith.addf %542, %543 : vector<1x128xf32>
    %545 = math.tanh %544 : vector<1x128xf32>
    %546 = arith.mulf %541, %545 : vector<1x128xf32>
    %547 = vector.extract_strided_slice %117 {offsets = [7, 0], sizes = [1, 512], strides = [1, 1]} : vector<8x512xf32> to vector<1x512xf32>
    %548 = arith.truncf %516 : vector<1x128xf32> to vector<1x128xbf16>
    %c0_160 = arith.constant 0 : index
    %c0_161 = arith.constant 0 : index
    %549 = vector.load %arg18[%c0_160, %c0_161] : memref<128x512xbf16, #tpu.memory_space<vmem>>, vector<128x512xbf16>
    %cst_162 = arith.constant dense<0.000000e+00> : vector<1x512xf32>
    %550 = tpu.matmul %548, %549, %cst_162 {dimension_numbers = #tpu.dot_dimension_numbers<[1], [0], [0], [1], [0, 0, 1, 1], [], []>} : vector<1x128xbf16>, vector<128x512xbf16>, vector<1x512xf32> -> vector<1x512xf32>
    %551 = arith.addf %547, %550 : vector<1x512xf32>
    %552 = vector.extract_strided_slice %551 {offsets = [0, 0], sizes = [1, 128], strides = [1, 1]} : vector<1x512xf32> to vector<1x128xf32>
    %553 = arith.negf %552 : vector<1x128xf32>
    %554 = math.exp %553 : vector<1x128xf32>
    %cst_163 = arith.constant 1.000000e+00 : f32
    %555 = vector.broadcast %cst_163 : f32 to vector<1x128xf32>
    %556 = arith.addf %555, %554 : vector<1x128xf32>
    %557 = arith.divf %555, %556 : vector<1x128xf32>
    %558 = vector.extract_strided_slice %551 {offsets = [0, 128], sizes = [1, 128], strides = [1, 1]} : vector<1x512xf32> to vector<1x128xf32>
    %559 = arith.negf %558 : vector<1x128xf32>
    %560 = math.exp %559 : vector<1x128xf32>
    %cst_164 = arith.constant 1.000000e+00 : f32
    %561 = vector.broadcast %cst_164 : f32 to vector<1x128xf32>
    %562 = arith.addf %561, %560 : vector<1x128xf32>
    %563 = arith.divf %561, %562 : vector<1x128xf32>
    %564 = vector.extract_strided_slice %551 {offsets = [0, 256], sizes = [1, 128], strides = [1, 1]} : vector<1x512xf32> to vector<1x128xf32>
    %565 = math.tanh %564 : vector<1x128xf32>
    %566 = vector.extract_strided_slice %551 {offsets = [0, 384], sizes = [1, 128], strides = [1, 1]} : vector<1x512xf32> to vector<1x128xf32>
    %567 = arith.negf %566 : vector<1x128xf32>
    %568 = math.exp %567 : vector<1x128xf32>
    %cst_165 = arith.constant 1.000000e+00 : f32
    %569 = vector.broadcast %cst_165 : f32 to vector<1x128xf32>
    %570 = arith.addf %569, %568 : vector<1x128xf32>
    %571 = arith.divf %569, %570 : vector<1x128xf32>
    %572 = arith.mulf %563, %514 : vector<1x128xf32>
    %573 = arith.mulf %557, %565 : vector<1x128xf32>
    %574 = arith.addf %572, %573 : vector<1x128xf32>
    %575 = math.tanh %574 : vector<1x128xf32>
    %576 = arith.mulf %571, %575 : vector<1x128xf32>
    %577 = vector.extract_strided_slice %122 {offsets = [0, 0], sizes = [1, 512], strides = [1, 1]} : vector<8x512xf32> to vector<1x512xf32>
    %578 = arith.truncf %546 : vector<1x128xf32> to vector<1x128xbf16>
    %c0_166 = arith.constant 0 : index
    %c0_167 = arith.constant 0 : index
    %579 = vector.load %arg21[%c0_166, %c0_167] : memref<128x512xbf16, #tpu.memory_space<vmem>>, vector<128x512xbf16>
    %cst_168 = arith.constant dense<0.000000e+00> : vector<1x512xf32>
    %580 = tpu.matmul %578, %579, %cst_168 {dimension_numbers = #tpu.dot_dimension_numbers<[1], [0], [0], [1], [0, 0, 1, 1], [], []>} : vector<1x128xbf16>, vector<128x512xbf16>, vector<1x512xf32> -> vector<1x512xf32>
    %581 = arith.addf %577, %580 : vector<1x512xf32>
    %582 = vector.extract_strided_slice %581 {offsets = [0, 0], sizes = [1, 128], strides = [1, 1]} : vector<1x512xf32> to vector<1x128xf32>
    %583 = arith.negf %582 : vector<1x128xf32>
    %584 = math.exp %583 : vector<1x128xf32>
    %cst_169 = arith.constant 1.000000e+00 : f32
    %585 = vector.broadcast %cst_169 : f32 to vector<1x128xf32>
    %586 = arith.addf %585, %584 : vector<1x128xf32>
    %587 = arith.divf %585, %586 : vector<1x128xf32>
    %588 = vector.extract_strided_slice %581 {offsets = [0, 128], sizes = [1, 128], strides = [1, 1]} : vector<1x512xf32> to vector<1x128xf32>
    %589 = arith.negf %588 : vector<1x128xf32>
    %590 = math.exp %589 : vector<1x128xf32>
    %cst_170 = arith.constant 1.000000e+00 : f32
    %591 = vector.broadcast %cst_170 : f32 to vector<1x128xf32>
    %592 = arith.addf %591, %590 : vector<1x128xf32>
    %593 = arith.divf %591, %592 : vector<1x128xf32>
    %594 = vector.extract_strided_slice %581 {offsets = [0, 256], sizes = [1, 128], strides = [1, 1]} : vector<1x512xf32> to vector<1x128xf32>
    %595 = math.tanh %594 : vector<1x128xf32>
    %596 = vector.extract_strided_slice %581 {offsets = [0, 384], sizes = [1, 128], strides = [1, 1]} : vector<1x512xf32> to vector<1x128xf32>
    %597 = arith.negf %596 : vector<1x128xf32>
    %598 = math.exp %597 : vector<1x128xf32>
    %cst_171 = arith.constant 1.000000e+00 : f32
    %599 = vector.broadcast %cst_171 : f32 to vector<1x128xf32>
    %600 = arith.addf %599, %598 : vector<1x128xf32>
    %601 = arith.divf %599, %600 : vector<1x128xf32>
    %602 = arith.mulf %593, %544 : vector<1x128xf32>
    %603 = arith.mulf %587, %595 : vector<1x128xf32>
    %604 = arith.addf %602, %603 : vector<1x128xf32>
    %605 = math.tanh %604 : vector<1x128xf32>
    %606 = arith.mulf %601, %605 : vector<1x128xf32>
    %607 = tpu.concatenate %156, %216, %276, %336, %396, %456, %516, %576 in 0 : vector<1x128xf32>, vector<1x128xf32>, vector<1x128xf32>, vector<1x128xf32>, vector<1x128xf32>, vector<1x128xf32>, vector<1x128xf32>, vector<1x128xf32> -> vector<8x128xf32>
    %608 = tpu.concatenate %606, %546, %486, %426, %366, %306, %246, %186 in 0 : vector<1x128xf32>, vector<1x128xf32>, vector<1x128xf32>, vector<1x128xf32>, vector<1x128xf32>, vector<1x128xf32>, vector<1x128xf32>, vector<1x128xf32> -> vector<8x128xf32>
    %c0_172 = arith.constant 0 : index
    %c0_173 = arith.constant 0 : index
    %609 = vector.load %arg23[%c0_172, %c0_173] : memref<1x128xf32, #tpu.memory_space<vmem>>, vector<1x128xf32>
    %c0_174 = arith.constant 0 : index
    %c0_175 = arith.constant 0 : index
    %610 = vector.load %arg24[%c0_174, %c0_175] : memref<1x128xf32, #tpu.memory_space<vmem>>, vector<1x128xf32>
    %cst_176 = arith.constant dense<0.000000e+00> : vector<128xf32>
    %611 = vector.multi_reduction <add>, %607, %cst_176 [0] : vector<8x128xf32> to vector<128xf32>
    %612 = vector.shape_cast %611 : vector<128xf32> to vector<1x128xf32>
    %cst_177 = arith.constant 8.000000e+00 : f32
    %613 = vector.broadcast %cst_177 : f32 to vector<1x128xf32>
    %614 = arith.divf %612, %613 : vector<1x128xf32>
    %615 = arith.mulf %607, %607 : vector<8x128xf32>
    %cst_178 = arith.constant dense<0.000000e+00> : vector<128xf32>
    %616 = vector.multi_reduction <add>, %615, %cst_178 [0] : vector<8x128xf32> to vector<128xf32>
    %617 = vector.shape_cast %616 : vector<128xf32> to vector<1x128xf32>
    %cst_179 = arith.constant 8.000000e+00 : f32
    %618 = vector.broadcast %cst_179 : f32 to vector<1x128xf32>
    %619 = arith.divf %617, %618 : vector<1x128xf32>
    %620 = arith.mulf %614, %614 : vector<1x128xf32>
    %621 = arith.subf %619, %620 : vector<1x128xf32>
    %cst_180 = arith.constant 0.000000e+00 : f32
    %622 = vector.broadcast %cst_180 : f32 to vector<1x128xf32>
    %623 = arith.maximumf %621, %622 : vector<1x128xf32>
    %624 = vector.broadcast %614 : vector<1x128xf32> to vector<8x128xf32>
    %625 = arith.subf %607, %624 : vector<8x128xf32>
    %cst_181 = arith.constant 9.99999974E-6 : f32
    %626 = vector.broadcast %cst_181 : f32 to vector<1x128xf32>
    %627 = arith.addf %623, %626 : vector<1x128xf32>
    %628 = math.rsqrt %627 : vector<1x128xf32>
    %629 = vector.broadcast %628 : vector<1x128xf32> to vector<8x128xf32>
    %630 = arith.mulf %625, %629 : vector<8x128xf32>
    %631 = vector.broadcast %609 : vector<1x128xf32> to vector<8x128xf32>
    %632 = arith.mulf %630, %631 : vector<8x128xf32>
    %633 = vector.broadcast %610 : vector<1x128xf32> to vector<8x128xf32>
    %634 = arith.addf %632, %633 : vector<8x128xf32>
    %c0_182 = arith.constant 0 : index
    %c0_183 = arith.constant 0 : index
    %635 = vector.load %arg25[%c0_182, %c0_183] : memref<1x128xf32, #tpu.memory_space<vmem>>, vector<1x128xf32>
    %c0_184 = arith.constant 0 : index
    %c0_185 = arith.constant 0 : index
    %636 = vector.load %arg26[%c0_184, %c0_185] : memref<1x128xf32, #tpu.memory_space<vmem>>, vector<1x128xf32>
    %cst_186 = arith.constant dense<0.000000e+00> : vector<128xf32>
    %637 = vector.multi_reduction <add>, %608, %cst_186 [0] : vector<8x128xf32> to vector<128xf32>
    %638 = vector.shape_cast %637 : vector<128xf32> to vector<1x128xf32>
    %cst_187 = arith.constant 8.000000e+00 : f32
    %639 = vector.broadcast %cst_187 : f32 to vector<1x128xf32>
    %640 = arith.divf %638, %639 : vector<1x128xf32>
    %641 = arith.mulf %608, %608 : vector<8x128xf32>
    %cst_188 = arith.constant dense<0.000000e+00> : vector<128xf32>
    %642 = vector.multi_reduction <add>, %641, %cst_188 [0] : vector<8x128xf32> to vector<128xf32>
    %643 = vector.shape_cast %642 : vector<128xf32> to vector<1x128xf32>
    %cst_189 = arith.constant 8.000000e+00 : f32
    %644 = vector.broadcast %cst_189 : f32 to vector<1x128xf32>
    %645 = arith.divf %643, %644 : vector<1x128xf32>
    %646 = arith.mulf %640, %640 : vector<1x128xf32>
    %647 = arith.subf %645, %646 : vector<1x128xf32>
    %cst_190 = arith.constant 0.000000e+00 : f32
    %648 = vector.broadcast %cst_190 : f32 to vector<1x128xf32>
    %649 = arith.maximumf %647, %648 : vector<1x128xf32>
    %650 = vector.broadcast %640 : vector<1x128xf32> to vector<8x128xf32>
    %651 = arith.subf %608, %650 : vector<8x128xf32>
    %cst_191 = arith.constant 9.99999974E-6 : f32
    %652 = vector.broadcast %cst_191 : f32 to vector<1x128xf32>
    %653 = arith.addf %649, %652 : vector<1x128xf32>
    %654 = math.rsqrt %653 : vector<1x128xf32>
    %655 = vector.broadcast %654 : vector<1x128xf32> to vector<8x128xf32>
    %656 = arith.mulf %651, %655 : vector<8x128xf32>
    %657 = vector.broadcast %635 : vector<1x128xf32> to vector<8x128xf32>
    %658 = arith.mulf %656, %657 : vector<8x128xf32>
    %659 = vector.broadcast %636 : vector<1x128xf32> to vector<8x128xf32>
    %660 = arith.addf %658, %659 : vector<8x128xf32>
    %c0_192 = arith.constant 0 : index
    %c0_193 = arith.constant 0 : index
    %661 = vector.load %arg27[%c0_192, %c0_193] : memref<128x128xf32, #tpu.memory_space<vmem>>, vector<128x128xf32>
    %cst_194 = arith.constant dense<0.000000e+00> : vector<8x128xf32>
    %662 = tpu.matmul %634, %661, %cst_194 {dimension_numbers = #tpu.dot_dimension_numbers<[1], [0], [0], [1], [0, 0, 1, 1], [], []>} : vector<8x128xf32>, vector<128x128xf32>, vector<8x128xf32> -> vector<8x128xf32>
    %c0_195 = arith.constant 0 : index
    %c0_196 = arith.constant 0 : index
    %663 = vector.load %arg28[%c0_195, %c0_196] : memref<128x128xf32, #tpu.memory_space<vmem>>, vector<128x128xf32>
    %cst_197 = arith.constant dense<0.000000e+00> : vector<8x128xf32>
    %664 = tpu.matmul %660, %663, %cst_197 {dimension_numbers = #tpu.dot_dimension_numbers<[1], [0], [0], [1], [0, 0, 1, 1], [], []>} : vector<8x128xf32>, vector<128x128xf32>, vector<8x128xf32> -> vector<8x128xf32>
    %665 = arith.addf %662, %664 : vector<8x128xf32>
    %c0_198 = arith.constant 0 : index
    %c0_199 = arith.constant 0 : index
    %666 = vector.load %arg29[%c0_198, %c0_199] : memref<1x128xf32, #tpu.memory_space<vmem>>, vector<1x128xf32>
    %667 = vector.broadcast %666 : vector<1x128xf32> to vector<8x128xf32>
    %668 = arith.addf %665, %667 : vector<8x128xf32>
    %c0_200 = arith.constant 0 : index
    %c0_201 = arith.constant 0 : index
    %669 = vector.load %arg30[%c0_200, %c0_201] : memref<1x128xf32, #tpu.memory_space<vmem>>, vector<1x128xf32>
    %c0_202 = arith.constant 0 : index
    %c0_203 = arith.constant 0 : index
    %670 = vector.load %arg31[%c0_202, %c0_203] : memref<1x128xf32, #tpu.memory_space<vmem>>, vector<1x128xf32>
    %cst_204 = arith.constant dense<0.000000e+00> : vector<128xf32>
    %671 = vector.multi_reduction <add>, %668, %cst_204 [0] : vector<8x128xf32> to vector<128xf32>
    %672 = vector.shape_cast %671 : vector<128xf32> to vector<1x128xf32>
    %cst_205 = arith.constant 8.000000e+00 : f32
    %673 = vector.broadcast %cst_205 : f32 to vector<1x128xf32>
    %674 = arith.divf %672, %673 : vector<1x128xf32>
    %675 = arith.mulf %668, %668 : vector<8x128xf32>
    %cst_206 = arith.constant dense<0.000000e+00> : vector<128xf32>
    %676 = vector.multi_reduction <add>, %675, %cst_206 [0] : vector<8x128xf32> to vector<128xf32>
    %677 = vector.shape_cast %676 : vector<128xf32> to vector<1x128xf32>
    %cst_207 = arith.constant 8.000000e+00 : f32
    %678 = vector.broadcast %cst_207 : f32 to vector<1x128xf32>
    %679 = arith.divf %677, %678 : vector<1x128xf32>
    %680 = arith.mulf %674, %674 : vector<1x128xf32>
    %681 = arith.subf %679, %680 : vector<1x128xf32>
    %cst_208 = arith.constant 0.000000e+00 : f32
    %682 = vector.broadcast %cst_208 : f32 to vector<1x128xf32>
    %683 = arith.maximumf %681, %682 : vector<1x128xf32>
    %684 = vector.broadcast %674 : vector<1x128xf32> to vector<8x128xf32>
    %685 = arith.subf %668, %684 : vector<8x128xf32>
    %cst_209 = arith.constant 9.99999974E-6 : f32
    %686 = vector.broadcast %cst_209 : f32 to vector<1x128xf32>
    %687 = arith.addf %683, %686 : vector<1x128xf32>
    %688 = math.rsqrt %687 : vector<1x128xf32>
    %689 = vector.broadcast %688 : vector<1x128xf32> to vector<8x128xf32>
    %690 = arith.mulf %685, %689 : vector<8x128xf32>
    %691 = vector.broadcast %669 : vector<1x128xf32> to vector<8x128xf32>
    %692 = arith.mulf %690, %691 : vector<8x128xf32>
    %693 = vector.broadcast %670 : vector<1x128xf32> to vector<8x128xf32>
    %694 = arith.addf %692, %693 : vector<8x128xf32>
    %cst_210 = arith.constant 0.000000e+00 : f32
    %695 = vector.broadcast %cst_210 : f32 to vector<8x128xf32>
    %696 = arith.maximumf %694, %695 : vector<8x128xf32>
    %c0_211 = arith.constant 0 : index
    %c0_212 = arith.constant 0 : index
    %697 = vector.load %arg32[%c0_211, %c0_212] : memref<128x64xf32, #tpu.memory_space<vmem>>, vector<128x64xf32>
    %cst_213 = arith.constant dense<0.000000e+00> : vector<8x64xf32>
    %698 = tpu.matmul %696, %697, %cst_213 {dimension_numbers = #tpu.dot_dimension_numbers<[1], [0], [0], [1], [0, 0, 1, 1], [], []>} : vector<8x128xf32>, vector<128x64xf32>, vector<8x64xf32> -> vector<8x64xf32>
    %c0_214 = arith.constant 0 : index
    %c0_215 = arith.constant 0 : index
    %699 = vector.load %arg33[%c0_214, %c0_215] : memref<1x64xf32, #tpu.memory_space<vmem>>, vector<1x64xf32>
    %700 = vector.broadcast %699 : vector<1x64xf32> to vector<8x64xf32>
    %701 = arith.addf %698, %700 : vector<8x64xf32>
    %c0_216 = arith.constant 0 : index
    %c0_217 = arith.constant 0 : index
    %702 = vector.load %arg34[%c0_216, %c0_217] : memref<1x64xf32, #tpu.memory_space<vmem>>, vector<1x64xf32>
    %c0_218 = arith.constant 0 : index
    %c0_219 = arith.constant 0 : index
    %703 = vector.load %arg35[%c0_218, %c0_219] : memref<1x64xf32, #tpu.memory_space<vmem>>, vector<1x64xf32>
    %cst_220 = arith.constant dense<0.000000e+00> : vector<64xf32>
    %704 = vector.multi_reduction <add>, %701, %cst_220 [0] : vector<8x64xf32> to vector<64xf32>
    %705 = vector.shape_cast %704 : vector<64xf32> to vector<1x64xf32>
    %cst_221 = arith.constant 8.000000e+00 : f32
    %706 = vector.broadcast %cst_221 : f32 to vector<1x64xf32>
    %707 = arith.divf %705, %706 : vector<1x64xf32>
    %708 = arith.mulf %701, %701 : vector<8x64xf32>
    %cst_222 = arith.constant dense<0.000000e+00> : vector<64xf32>
    %709 = vector.multi_reduction <add>, %708, %cst_222 [0] : vector<8x64xf32> to vector<64xf32>
    %710 = vector.shape_cast %709 : vector<64xf32> to vector<1x64xf32>
    %cst_223 = arith.constant 8.000000e+00 : f32
    %711 = vector.broadcast %cst_223 : f32 to vector<1x64xf32>
    %712 = arith.divf %710, %711 : vector<1x64xf32>
    %713 = arith.mulf %707, %707 : vector<1x64xf32>
    %714 = arith.subf %712, %713 : vector<1x64xf32>
    %cst_224 = arith.constant 0.000000e+00 : f32
    %715 = vector.broadcast %cst_224 : f32 to vector<1x64xf32>
    %716 = arith.maximumf %714, %715 : vector<1x64xf32>
    %717 = vector.broadcast %707 : vector<1x64xf32> to vector<8x64xf32>
    %718 = arith.subf %701, %717 : vector<8x64xf32>
    %cst_225 = arith.constant 9.99999974E-6 : f32
    %719 = vector.broadcast %cst_225 : f32 to vector<1x64xf32>
    %720 = arith.addf %716, %719 : vector<1x64xf32>
    %721 = math.rsqrt %720 : vector<1x64xf32>
    %722 = vector.broadcast %721 : vector<1x64xf32> to vector<8x64xf32>
    %723 = arith.mulf %718, %722 : vector<8x64xf32>
    %724 = vector.broadcast %702 : vector<1x64xf32> to vector<8x64xf32>
    %725 = arith.mulf %723, %724 : vector<8x64xf32>
    %726 = vector.broadcast %703 : vector<1x64xf32> to vector<8x64xf32>
    %727 = arith.addf %725, %726 : vector<8x64xf32>
    %cst_226 = arith.constant 0.000000e+00 : f32
    %728 = vector.broadcast %cst_226 : f32 to vector<8x64xf32>
    %729 = arith.maximumf %727, %728 : vector<8x64xf32>
    %c0_227 = arith.constant 0 : index
    %c0_228 = arith.constant 0 : index
    %730 = vector.load %arg36[%c0_227, %c0_228] : memref<64x2xf32, #tpu.memory_space<vmem>>, vector<64x2xf32>
    %cst_229 = arith.constant dense<0.000000e+00> : vector<8x2xf32>
    %731 = tpu.matmul %729, %730, %cst_229 {dimension_numbers = #tpu.dot_dimension_numbers<[1], [0], [0], [1], [0, 0, 1, 1], [], []>} : vector<8x64xf32>, vector<64x2xf32>, vector<8x2xf32> -> vector<8x2xf32>
    %c0_230 = arith.constant 0 : index
    %c0_231 = arith.constant 0 : index
    %732 = vector.load %arg37[%c0_230, %c0_231] : memref<1x2xf32, #tpu.memory_space<vmem>>, vector<1x2xf32>
    %733 = vector.broadcast %732 : vector<1x2xf32> to vector<8x2xf32>
    %734 = arith.addf %731, %733 : vector<8x2xf32>
    %c0_232 = arith.constant 0 : index
    %c0_233 = arith.constant 0 : index
    %735 = vector.load %arg38[%c0_232, %c0_233] : memref<1x2xf32, #tpu.memory_space<vmem>>, vector<1x2xf32>
    %c0_234 = arith.constant 0 : index
    %c0_235 = arith.constant 0 : index
    %736 = vector.load %arg39[%c0_234, %c0_235] : memref<1x2xf32, #tpu.memory_space<vmem>>, vector<1x2xf32>
    %cst_236 = arith.constant dense<0.000000e+00> : vector<2xf32>
    %737 = vector.multi_reduction <add>, %734, %cst_236 [0] : vector<8x2xf32> to vector<2xf32>
    %738 = vector.shape_cast %737 : vector<2xf32> to vector<1x2xf32>
    %cst_237 = arith.constant 8.000000e+00 : f32
    %739 = vector.broadcast %cst_237 : f32 to vector<1x2xf32>
    %740 = arith.divf %738, %739 : vector<1x2xf32>
    %741 = arith.mulf %734, %734 : vector<8x2xf32>
    %cst_238 = arith.constant dense<0.000000e+00> : vector<2xf32>
    %742 = vector.multi_reduction <add>, %741, %cst_238 [0] : vector<8x2xf32> to vector<2xf32>
    %743 = vector.shape_cast %742 : vector<2xf32> to vector<1x2xf32>
    %cst_239 = arith.constant 8.000000e+00 : f32
    %744 = vector.broadcast %cst_239 : f32 to vector<1x2xf32>
    %745 = arith.divf %743, %744 : vector<1x2xf32>
    %746 = arith.mulf %740, %740 : vector<1x2xf32>
    %747 = arith.subf %745, %746 : vector<1x2xf32>
    %cst_240 = arith.constant 0.000000e+00 : f32
    %748 = vector.broadcast %cst_240 : f32 to vector<1x2xf32>
    %749 = arith.maximumf %747, %748 : vector<1x2xf32>
    %750 = vector.broadcast %740 : vector<1x2xf32> to vector<8x2xf32>
    %751 = arith.subf %734, %750 : vector<8x2xf32>
    %cst_241 = arith.constant 9.99999974E-6 : f32
    %752 = vector.broadcast %cst_241 : f32 to vector<1x2xf32>
    %753 = arith.addf %749, %752 : vector<1x2xf32>
    %754 = math.rsqrt %753 : vector<1x2xf32>
    %755 = vector.broadcast %754 : vector<1x2xf32> to vector<8x2xf32>
    %756 = arith.mulf %751, %755 : vector<8x2xf32>
    %757 = vector.broadcast %735 : vector<1x2xf32> to vector<8x2xf32>
    %758 = arith.mulf %756, %757 : vector<8x2xf32>
    %759 = vector.broadcast %736 : vector<1x2xf32> to vector<8x2xf32>
    %760 = arith.addf %758, %759 : vector<8x2xf32>
    %cst_242 = arith.constant 0.000000e+00 : f32
    %761 = vector.broadcast %cst_242 : f32 to vector<8x2xf32>
    %762 = arith.maximumf %760, %761 : vector<8x2xf32>
    %cst_243 = arith.constant dense<0xFF800000> : vector<8xf32>
    %763 = vector.multi_reduction <maximumf>, %762, %cst_243 [1] : vector<8x2xf32> to vector<8xf32>
    %764 = vector.shape_cast %763 : vector<8xf32> to vector<8x1xf32>
    %765 = vector.broadcast %764 : vector<8x1xf32> to vector<8x2xf32>
    %766 = arith.subf %762, %765 : vector<8x2xf32>
    %767 = math.exp %766 : vector<8x2xf32>
    %cst_244 = arith.constant dense<0.000000e+00> : vector<8xf32>
    %768 = vector.multi_reduction <add>, %767, %cst_244 [1] : vector<8x2xf32> to vector<8xf32>
    %769 = vector.shape_cast %768 : vector<8xf32> to vector<8x1xf32>
    %770 = tpu.reciprocal %769 {approx = true} : vector<8x1xf32> -> vector<8x1xf32>
    %771 = vector.broadcast %770 : vector<8x1xf32> to vector<8x2xf32>
    %772 = arith.mulf %767, %771 : vector<8x2xf32>
    %c0_245 = arith.constant 0 : index
    %c0_246 = arith.constant 0 : index
    %773 = vector.load %arg42[%c0_245, %c0_246] : memref<8x2xf32, #tpu.memory_space<vmem>>, vector<8x2xf32>
    tpu.vector_store %arg42[%c0_245, %c0_246], %772 {strides = array<i32>} : memref<8x2xf32, #tpu.memory_space<vmem>>, vector<8x2xf32>,
    return
  }
}

</mosaic_0001>

<bundles_post_ra>
// kernel: tpu_custom_call.1
= control target key start
LH: loop header
LB: loop body
LE: loop exit
PB: predicated region body
PF: predicated region fallthrough
CT: control target
= control target key end

     0   :  { %s6625_s6 = smov 1   ;;  %s6626_s10 = smov 2   ;;  %s8354_s0 = inlined_call_operand.smem [shape: u32[43], index: -1, kind: input, shape index: {}] }
   0x1   :  { %s6708_s5 = sld [smem:[%s8354_s0]]   ;;  %s6627_s14 = smov 3  }
   0x2   :  { %s6713_s9 = sld [smem:[%s8354_s0 + %s6625_s6]]   ;;  %s6628_s18 = smov 4  }
   0x3   :  { %s6718_s13 = sld [smem:[%s8354_s0 + %s6626_s10]]   ;;  %s6629_s22 = smov 5  }
   0x4   :  { %s6723_s17 = sld [smem:[%s8354_s0 + %s6627_s14]]   ;;  %s6630_s26 = smov 6  }
   0x5   :  { %s6728_s21 = sld [smem:[%s8354_s0 + %s6628_s18]]   ;;  %s6631_s30 = smov 7  }
   0x6   :  { %s6733_s25 = sld [smem:[%s8354_s0 + %s6629_s22]]   ;;  %s6632_s4 = smov 8  }
   0x7   :  { %s6738_s29 = sld [smem:[%s8354_s0 + %s6630_s26]]   ;;  %s6633_s10 = smov 9  }
   0x8   :  { %8490 = sst [smem:[#allocation55_spill]] %s6713_s9  ;;  %s6634_s15 = smov 10  }
   0x9   :  { %s6743_s3 = sld [smem:[%s8354_s0 + %s6631_s30]]   ;;  %s6635_s20 = smov 11  }
   0xa   :  { %s6748_s8 = sld [smem:[%s8354_s0 + %s6632_s4]]   ;;  %s6636_s26 = smov 12  }
   0xb   :  { %s6753_s14 = sld [smem:[%s8354_s0 + %s6633_s10]]   ;;  %s6637_s1 = smov 13  }
   0xc   :  { %8491 = sst [smem:[#allocation56_spill]] %s6733_s25  ;;  %s6638_s7 = smov 14  }
   0xd   :  { %s6758_s19 = sld [smem:[%s8354_s0 + %s6634_s15]]   ;;  %s6639_s15 = smov 15  }
   0xe   :  { %s6763_s24 = sld [smem:[%s8354_s0 + %s6635_s20]]   ;;  %s6640_s22 = smov 16  }
   0xf   :  { %s6768_s30 = sld [smem:[%s8354_s0 + %s6636_s26]]   ;;  %s6641_s28 = smov 17  }
  0x10   :  { %8492 = sst [smem:[#allocation57_spill]] %s6748_s8 }
  0x11   :  { %s6773_s6 = sld [smem:[%s8354_s0 + %s6637_s1]]  }
  0x12   :  { %s6778_s12 = sld [smem:[%s8354_s0 + %s6638_s7]]   ;;  %s6642_s7 = smov 18  }
  0x13   :  { %8493 = sst [smem:[#allocation58_spill]] %s6758_s19 }
  0x14   :  { %s6783_s20 = sld [smem:[%s8354_s0 + %s6639_s15]]   ;;  %s6643_s15 = smov 19  }
  0x15   :  { %8494 = sst [smem:[#allocation59_spill]] %s6768_s30 }
  0x16   :  { %s6788_s27 = sld [smem:[%s8354_s0 + %s6640_s22]]   ;;  %s6644_s22 = smov 20  }
  0x17   :  { %s6793_s4 = sld [smem:[%s8354_s0 + %s6641_s28]]   ;;  %s6645_s28 = smov 21  }
  0x18   :  { %8495 = sst [smem:[#allocation60_spill]] %s6778_s12 }
  0x19   :  { %s6798_s25 = sld [smem:[%s8354_s0 + %s6642_s7]]   ;;  %s6646_s7 = smov 22  }
  0x1a   :  { %s6803_s9 = sld [smem:[%s8354_s0 + %s6643_s15]]   ;;  %s6647_s15 = smov 23  }
  0x1c   :  { %8496 = sst [smem:[#allocation61_spill]] %s6788_s27 }
  0x1d   :  { %8497 = sst [smem:[#allocation62_spill]] %s6793_s4 }
  0x1e   :  { %s6808_s27 = sld [smem:[%s8354_s0 + %s6644_s22]]   ;;  %s6648_s22 = smov 24  }
  0x1f   :  { %8498 = sst [smem:[#allocation63_spill]] %s6798_s25 }
  0x20   :  { %8499 = sst [smem:[#allocation64_spill]] %s6803_s9 }
  0x21   :  { %s6813_s4 = sld [smem:[%s8354_s0 + %s6645_s28]]   ;;  %s6649_s28 = smov 25  }
  0x22   :  { %s6818_s25 = sld [smem:[%s8354_s0 + %s6646_s7]]   ;;  %s6650_s7 = smov 26  }
  0x23   :  { %s6823_s9 = sld [smem:[%s8354_s0 + %s6647_s15]]   ;;  %s6651_s15 = smov 27  }
  0x24   :  { %s6828_s12 = sld [smem:[%s8354_s0 + %s6648_s22]]   ;;  %s6652_s22 = smov 28  }
  0x25   :  { %s6838_s30 = sld [smem:[%s8354_s0 + %s6650_s7]]   ;;  %s6654_s7 = smov 30  }
  0x26   :  { %s6848_s19 = sld [smem:[%s8354_s0 + %s6652_s22]]   ;;  %s6656_s22 = smov 32  }
  0x27   :  { %8500 = sst [smem:[#allocation65_spill]] %s6813_s4 }
  0x28   :  { %s6833_s4 = sld [smem:[%s8354_s0 + %s6649_s28]]   ;;  %s6653_s28 = smov 29  }
  0x29   :  { %8501 = sst [smem:[#allocation66_spill]] %s6823_s9 }
  0x2a   :  { %s6843_s9 = sld [smem:[%s8354_s0 + %s6651_s15]]   ;;  %s6655_s15 = smov 31  }
  0x2b   :  { %s6858_s8 = sld [smem:[%s8354_s0 + %s6654_s7]]   ;;  %s6658_s7 = smov 34  }
  0x2c   :  { %8504 = sst [smem:[#allocation69_spill]] %s6848_s19 }
  0x2d   :  { %s6868_s19 = sld [smem:[%s8354_s0 + %s6656_s22]]   ;;  %s6660_s22 = smov 36  }
  0x2e   :  { %8502 = sst [smem:[#allocation67_spill]] %s6833_s4 }
  0x2f   :  { %s6853_s4 = sld [smem:[%s8354_s0 + %s6653_s28]]   ;;  %s6657_s28 = smov 33  }
  0x30   :  { %8503 = sst [smem:[#allocation68_spill]] %s6843_s9 }
  0x31   :  { %8506 = sst [smem:[#allocation71_spill]] %s6858_s8 }
  0x32   :  { %s6863_s9 = sld [smem:[%s8354_s0 + %s6655_s15]]   ;;  %s6659_s15 = smov 35  }
  0x33   :  { %8508 = sst [smem:[#allocation73_spill]] %s6868_s19 }
  0x34   :  { %s6878_s8 = sld [smem:[%s8354_s0 + %s6658_s7]]   ;;  %s6662_s7 = smov 38  }
  0x35   :  { %8505 = sst [smem:[#allocation70_spill]] %s6853_s4 }
  0x36   :  { %s6873_s4 = sld [smem:[%s8354_s0 + %s6657_s28]]   ;;  %s6661_s28 = smov 37  }
  0x37   :  { %s6888_s19 = sld [smem:[%s8354_s0 + %s6660_s22]]   ;;  %s6664_s22 = smov 40  }
  0x38   :  { %8507 = sst [smem:[#allocation72_spill]] %s6863_s9 }
  0x39   :  { %s6883_s9 = sld [smem:[%s8354_s0 + %s6659_s15]]   ;;  %s6663_s15 = smov 39  }
  0x3a   :  { %8510 = sst [smem:[#allocation75_spill]] %s6878_s8 }
  0x3b   :  { %s6898_s8 = sld [smem:[%s8354_s0 + %s6662_s7]]   ;;  %s6666_s7 = smov 42  }
  0x3c   :  { %8509 = sst [smem:[#allocation74_spill]] %s6873_s4 }
  0x3d   :  { %8512 = sst [smem:[#allocation77_spill]] %s6888_s19 }
  0x3e   :  { %s6893_s4 = sld [smem:[%s8354_s0 + %s6661_s28]]   ;;  %s6665_s28 = smov 41  }
  0x3f   :  { %8511 = sst [smem:[#allocation76_spill]] %s6883_s9 }
  0x40   :  { %s6903_s9 = sld [smem:[%s8354_s0 + %s6663_s15]]  }
  0x41   :  { %8514 = sst [smem:[#allocation79_spill]] %s6898_s8 }
  0x42   :  { %s6908_s19 = sld [smem:[%s8354_s0 + %s6664_s22]]  }
  0x43   :  { %s6918_s8 = sld [smem:[%s8354_s0 + %s6666_s7]]  }
  0x44   :  { %8513 = sst [smem:[#allocation78_spill]] %s6893_s4 }
  0x45   :  { %s6913_s4 = sld [smem:[%s8354_s0 + %s6665_s28]]  }
  0x46   :  { %91 = vsyncpa [#allocation3], 0 }
  0x47   :  { %92 = vsyncpa [#allocation6], 0 }
  0x48   :  { %93 = vsyncpa [#allocation9], 0 }
  0x49   :  { %94 = vsyncpa [#allocation12], 0 }
  0x4a   :  { %95 = vsyncpa [#allocation15], 0 }
  0x4b   :  { %96 = vsyncpa [#allocation18], 0 }
  0x4c   :  { %97 = vsyncpa [#allocation21], 0 }
  0x4d   :  { %98 = vsyncpa [#allocation24], 0 }
  0x4e   :  { %99 = vsyncpa [#allocation27], 0 }
  0x4f   :  { %100 = vsyncpa [#allocation30], 0 }
  0x50   :  { %101 = vsyncpa [#allocation33], 0 }
  0x51   :  { %102 = vsyncpa [#allocation36], 0 }
  0x52   :  { %103 = vsyncpa [#allocation4], 0 }
  0x53   :  { %104 = vsyncpa [#allocation40], 0  ;;  %s6667_s15 = smov [#allocation5]   ;;  %s6668_s16 = smov [#allocation8]  }
  0x54   :  { %s123_s0 = sshll.u32 %s6667_s15, 4  ;;  %s143_s18 = sshll.u32 %s6668_s16, 4  ;;  %s124_s0 = int_to_ptr.vmem [resolvable:$true] %s123_s0  ;;  %s144_s18 = int_to_ptr.vmem [resolvable:$true] %s143_s18 }
  0x55   :  { %s6047_s22 = scalar_lea.hbm %s6718_s13, 16 }
  0x56   :  { %p6048_p0 = scmp.ne.s32.totalorder %s6718_s13, %s6047_s22  ;;  %p6051_p1 = scmp.lt.u32.totalorder %s6047_s22, %s6718_s13 }
  0x58   :  { %p6053_p2 = pnand %p6051_p1, %p6048_p0 }
  0x5a   :  { %6056 = shalt.err (!%p6053_p2)
}
  0x5b   :  { %s6057_s23 = scalar_lea.vmem %s124_s0, 16  ;;  %s6061_s26 = scalar_lea.vmem %s124_s0, 32 }
  0x5c   :  { %p6058_p3 = scmp.ne.s32.totalorder %s124_s0, %s6057_s23  ;;  %p6062_p4 = scmp.lt.s32.totalorder %s124_s0, %s124_s0 }
  0x5d   :  { %p6063_p5 = scmp.lt.s32.totalorder %s6061_s26, %s6057_s23 }
  0x5f   :  { %p6064_p6 = por %p6063_p5, %p6062_p4 }
  0x61   :  { %p6065_p7 = pnand %p6064_p6, %p6058_p3 }
  0x63   :  { %6068 = shalt.err (!%p6065_p7)
}
  0x64   :  { %126 = dma.hbm_to_vmem [thread:$0]  %s6718_s13, 16, %s124_s0, [#allocation6]  }
  0x65   :  { %s6069_s28 = scalar_lea.hbm %s6728_s21, 16 }
  0x66   :  { %p6070_p8 = scmp.ne.s32.totalorder %s6728_s21, %s6069_s28  ;;  %p6073_p9 = scmp.lt.u32.totalorder %s6069_s28, %s6728_s21 }
  0x68   :  { %p6075_p10 = pnand %p6073_p9, %p6070_p8 }
  0x6a   :  { %6078 = shalt.err (!%p6075_p10)
}
  0x6b   :  { %s6079_s1 = scalar_lea.vmem %s144_s18, 16  ;;  %s6083_s2 = scalar_lea.vmem %s144_s18, 32 }
  0x6c   :  { %p6080_p11 = scmp.ne.s32.totalorder %s144_s18, %s6079_s1  ;;  %p6084_p12 = scmp.lt.s32.totalorder %s144_s18, %s144_s18 }
  0x6d   :  { %p6085_p13 = scmp.lt.s32.totalorder %s6083_s2, %s6079_s1 }
  0x6f   :  { %p6086_p0 = por %p6085_p13, %p6084_p12 }
  0x71   :  { %p6087_p1 = pnand %p6086_p0, %p6080_p11 }
  0x73   :  { %6090 = shalt.err (!%p6087_p1)
}
  0x74   :  { %146 = dma.hbm_to_vmem [thread:$0]  %s6728_s21, 16, %s144_s18, [#allocation9]  }
  0x75   :  { %s6669_s7 = smov [#allocation11]   ;;  %s6670_s10 = smov [#allocation14]  }
  0x76   :  { %s165_s13 = sshll.u32 %s6669_s7, 4  ;;  %s184_s11 = sshll.u32 %s6670_s10, 4  ;;  %s166_s13 = int_to_ptr.vmem [resolvable:$true] %s165_s13  ;;  %s6928_s11 = int_to_ptr.vmem [resolvable:$true] %s184_s11 }
  0x77   :  { %s6091_s15 = scalar_lea.hbm %s6743_s3, 16 }
  0x78   :  { %p6092_p2 = scmp.ne.s32.totalorder %s6743_s3, %s6091_s15  ;;  %p6095_p3 = scmp.lt.u32.totalorder %s6091_s15, %s6743_s3 }
  0x7a   :  { %p6097_p4 = pnand %p6095_p3, %p6092_p2 }
  0x7c   :  { %6100 = shalt.err (!%p6097_p4)
}
  0x7d   :  { %s6101_s0 = scalar_lea.vmem %s166_s13, 16  ;;  %s6105_s16 = scalar_lea.vmem %s166_s13, 32 }
  0x7e   :  { %p6102_p5 = scmp.ne.s32.totalorder %s166_s13, %s6101_s0  ;;  %p6106_p6 = scmp.lt.s32.totalorder %s166_s13, %s166_s13 }
  0x7f   :  { %p6107_p7 = scmp.lt.s32.totalorder %s6105_s16, %s6101_s0 }
  0x81   :  { %p6108_p8 = por %p6107_p7, %p6106_p6 }
  0x83   :  { %p6109_p9 = pnand %p6108_p8, %p6102_p5 }
  0x85   :  { %6112 = shalt.err (!%p6109_p9)
}
  0x86   :  { %168 = dma.hbm_to_vmem [thread:$0]  %s6743_s3, 16, %s166_s13, [#allocation12]  }
  0x87   :  { %s6113_s21 = scalar_lea.hbm %s6753_s14, 896 }
  0x88   :  { %p6114_p10 = scmp.ne.s32.totalorder %s6753_s14, %s6113_s21  ;;  %p6117_p11 = scmp.lt.u32.totalorder %s6113_s21, %s6753_s14 }
  0x8a   :  { %p6119_p12 = pnand %p6117_p11, %p6114_p10 }
  0x8c   :  { %6122 = shalt.err (!%p6119_p12)
}
  0x8d   :  { %s6123_s18 = scalar_lea.vmem %s6928_s11, 896  ;;  %p6128_p0 = scmp.lt.s32.totalorder %s6928_s11, %s6928_s11 }
  0x8e   :  { %p6124_p13 = scmp.ne.s32.totalorder %s6928_s11, %s6123_s18  ;;  %p6129_p1 = scmp.lt.s32.totalorder %s6123_s18, %s6123_s18 }
  0x90   :  { %p6130_p2 = por %p6129_p1, %p6128_p0 }
  0x92   :  { %p6131_p3 = pnand %p6130_p2, %p6124_p13 }
  0x94   :  { %6134 = shalt.err (!%p6131_p3)
}
  0x95   :  { %s6671_s22 = smov 128   ;;  %s6672_s3 = smov 8  }
  0x96   :  { %190 = dma.hbm_to_vmem [thread:$0]  %s6753_s14, 896, %s6928_s11, [#allocation15], %s6671_s22, %s6671_s22, %s6672_s3  }
  0x97   :  { %s6673_s23 = smov [#allocation17]   ;;  %s6674_s28 = smov [#allocation20]  }
  0x98   :  { %s207_s26 = sshll.u32 %s6673_s23, 4  ;;  %s226_s1 = sshll.u32 %s6674_s28, 4  ;;  %s208_s26 = int_to_ptr.vmem [resolvable:$true] %s207_s26  ;;  %s6946_s1 = int_to_ptr.vmem [resolvable:$true] %s226_s1 }
  0x99   :  { %s6135_s2 = scalar_lea.hbm %s6763_s24, 16 }
  0x9a   :  { %p6136_p4 = scmp.ne.s32.totalorder %s6763_s24, %s6135_s2  ;;  %p6139_p5 = scmp.lt.u32.totalorder %s6135_s2, %s6763_s24 }
  0x9c   :  { %p6141_p6 = pnand %p6139_p5, %p6136_p4 }
  0x9e   :  { %6144 = shalt.err (!%p6141_p6)
}
  0x9f   :  { %s6145_s7 = scalar_lea.vmem %s208_s26, 16  ;;  %s6149_s13 = scalar_lea.vmem %s208_s26, 32 }
  0xa0   :  { %p6146_p7 = scmp.ne.s32.totalorder %s208_s26, %s6145_s7  ;;  %p6150_p8 = scmp.lt.s32.totalorder %s208_s26, %s208_s26 }
  0xa1   :  { %p6151_p9 = scmp.lt.s32.totalorder %s6149_s13, %s6145_s7 }
  0xa3   :  { %p6152_p10 = por %p6151_p9, %p6150_p8 }
  0xa5   :  { %p6153_p11 = pnand %p6152_p10, %p6146_p7 }
  0xa7   :  { %6156 = shalt.err (!%p6153_p11)
}
  0xa8   :  { %210 = dma.hbm_to_vmem [thread:$0]  %s6763_s24, 16, %s208_s26, [#allocation18]  }
  0xa9   :  { %s6157_s14 = scalar_lea.hbm %s6773_s6, 1152 }
  0xaa   :  { %p6158_p12 = scmp.ne.s32.totalorder %s6773_s6, %s6157_s14  ;;  %p6161_p13 = scmp.lt.u32.totalorder %s6157_s14, %s6773_s6 }
  0xac   :  { %p6163_p0 = pnand %p6161_p13, %p6158_p12 }
  0xae   :  { %6166 = shalt.err (!%p6163_p0)
}
  0xaf   :  { %s6167_s10 = scalar_lea.vmem %s6946_s1, 1152  ;;  %p6172_p2 = scmp.lt.s32.totalorder %s6946_s1, %s6946_s1 }
  0xb0   :  { %p6168_p1 = scmp.ne.s32.totalorder %s6946_s1, %s6167_s10  ;;  %p6173_p3 = scmp.lt.s32.totalorder %s6167_s10, %s6167_s10 }
  0xb2   :  { %p6174_p4 = por %p6173_p3, %p6172_p2 }
  0xb4   :  { %p6175_p5 = pnand %p6174_p4, %p6168_p1 }
  0xb6   :  { %6178 = shalt.err (!%p6175_p5)
}
  0xb7   :  { %232 = dma.hbm_to_vmem [thread:$0]  %s6773_s6, 1152, %s6946_s1, [#allocation21], %s6671_s22, %s6671_s22, %s6672_s3  }
  0xb8   :  { %s6675_s24 = smov [#allocation23]   ;;  %s6676_s15 = smov [#allocation26]  }
  0xb9   :  { %s248_s11 = sshll.u32 %s6675_s24, 4  ;;  %s276_s0 = sshll.u32 %s6676_s15, 4  ;;  %s249_s11 = int_to_ptr.vmem [resolvable:$true] %s248_s11  ;;  %s6964_s0 = int_to_ptr.vmem [resolvable:$true] %s276_s0 }
  0xba   :  { %s6179_s16 = scalar_lea.hbm %s6783_s20, 896 }
  0xbb   :  { %p6180_p6 = scmp.ne.s32.totalorder %s6783_s20, %s6179_s16  ;;  %p6183_p7 = scmp.lt.u32.totalorder %s6179_s16, %s6783_s20 }
  0xbd   :  { %p6185_p8 = pnand %p6183_p7, %p6180_p6 }
  0xbf   :  { %6188 = shalt.err (!%p6185_p8)
}
  0xc0   :  { %s6189_s21 = scalar_lea.vmem %s249_s11, 896  ;;  %p6194_p10 = scmp.lt.s32.totalorder %s249_s11, %s249_s11 }
  0xc1   :  { %p6190_p9 = scmp.ne.s32.totalorder %s249_s11, %s6189_s21  ;;  %p6195_p11 = scmp.lt.s32.totalorder %s6189_s21, %s6189_s21 }
  0xc3   :  { %p6196_p12 = por %p6195_p11, %p6194_p10 }
  0xc5   :  { %p6197_p13 = pnand %p6196_p12, %p6190_p9 }
  0xc7   :  { %6200 = shalt.err (!%p6197_p13)
}
  0xc8   :  { %254 = dma.hbm_to_vmem [thread:$0]  %s6783_s20, 896, %s249_s11, [#allocation24], %s6671_s22, %s6671_s22, %s6672_s3  }
  0xc9   :  { %s6201_s6 = scalar_lea.hbm %s6808_s27, 4096 }
  0xca   :  { %p6202_p0 = scmp.ne.s32.totalorder %s6808_s27, %s6201_s6  ;;  %p6205_p1 = scmp.lt.u32.totalorder %s6201_s6, %s6808_s27 }
  0xcc   :  { %p6207_p2 = pnand %p6205_p1, %p6202_p0 }
  0xce   :  { %6210 = shalt.err (!%p6207_p2)
}
  0xcf   :  { %s6211_s18 = scalar_lea.vmem %s6964_s0, 4096  ;;  %p6216_p4 = scmp.lt.s32.totalorder %s6964_s0, %s6964_s0 }
  0xd0   :  { %p6212_p3 = scmp.ne.s32.totalorder %s6964_s0, %s6211_s18  ;;  %p6217_p5 = scmp.lt.s32.totalorder %s6211_s18, %s6211_s18 }
  0xd2   :  { %p6218_p6 = por %p6217_p5, %p6216_p4 }
  0xd4   :  { %p6219_p7 = pnand %p6218_p6, %p6212_p3 }
  0xd6   :  { %6222 = shalt.err (!%p6219_p7)
}
  0xd7   :  { %s6677_s23 = smov 256   ;;  %s6678_s20 = smov 16  }
  0xd8   :  { %282 = dma.hbm_to_vmem [thread:$0]  %s6808_s27, 4096, %s6964_s0, [#allocation27], %s6677_s23, %s6677_s23, %s6678_s20  }
  0xd9   :  { %s6679_s26 = smov [#allocation29]   ;;  %s6680_s1 = smov [#allocation32]  }
  0xda   :  { %s301_s28 = sshll.u32 %s6679_s26, 4  ;;  %s321_s2 = sshll.u32 %s6680_s1, 4  ;;  %s302_s28 = int_to_ptr.vmem [resolvable:$true] %s301_s28  ;;  %s322_s2 = int_to_ptr.vmem [resolvable:$true] %s321_s2 }
  0xdb   :  { %s6223_s7 = scalar_lea.hbm %s6818_s25, 64 }
  0xdc   :  { %p6224_p8 = scmp.ne.s32.totalorder %s6818_s25, %s6223_s7  ;;  %p6227_p9 = scmp.lt.u32.totalorder %s6223_s7, %s6818_s25 }
  0xde   :  { %p6229_p10 = pnand %p6227_p9, %p6224_p8 }
  0xe0   :  { %6232 = shalt.err (!%p6229_p10)
}
  0xe1   :  { %s6233_s13 = scalar_lea.vmem %s302_s28, 64  ;;  %p6238_p12 = scmp.lt.s32.totalorder %s302_s28, %s302_s28 }
  0xe2   :  { %p6234_p11 = scmp.ne.s32.totalorder %s302_s28, %s6233_s13  ;;  %p6239_p13 = scmp.lt.s32.totalorder %s6233_s13, %s6233_s13 }
  0xe4   :  { %p6240_p0 = por %p6239_p13, %p6238_p12 }
  0xe6   :  { %p6241_p1 = pnand %p6240_p0, %p6234_p11 }
  0xe8   :  { %6244 = shalt.err (!%p6241_p1)
}
  0xe9   :  { %304 = dma.hbm_to_vmem [thread:$0]  %s6818_s25, 64, %s302_s28, [#allocation30]  }
  0xea   :  { %s6245_s27 = scalar_lea.hbm %s6828_s12, 16 }
  0xeb   :  { %p6246_p2 = scmp.ne.s32.totalorder %s6828_s12, %s6245_s27  ;;  %p6249_p3 = scmp.lt.u32.totalorder %s6245_s27, %s6828_s12 }
  0xed   :  { %p6251_p4 = pnand %p6249_p3, %p6246_p2 }
  0xef   :  { %6254 = shalt.err (!%p6251_p4)
}
  0xf0   :  { %s6255_s14 = scalar_lea.vmem %s322_s2, 16  ;;  %s6259_s10 = scalar_lea.vmem %s322_s2, 32 }
  0xf1   :  { %p6256_p5 = scmp.ne.s32.totalorder %s322_s2, %s6255_s14  ;;  %p6260_p6 = scmp.lt.s32.totalorder %s322_s2, %s322_s2 }
  0xf2   :  { %p6261_p7 = scmp.lt.s32.totalorder %s6259_s10, %s6255_s14 }
  0xf4   :  { %p6262_p8 = por %p6261_p7, %p6260_p6 }
  0xf6   :  { %p6263_p9 = pnand %p6262_p8, %p6256_p5 }
  0xf8   :  { %6266 = shalt.err (!%p6263_p9)
}
  0xf9   :  { %324 = dma.hbm_to_vmem [thread:$0]  %s6828_s12, 16, %s322_s2, [#allocation33]  }
  0xfa   :  { %s6681_s24 = smov [#allocation35]   ;;  %s6682_s11 = smov [#allocation2]  }
  0xfb   :  { %s341_s25 = sshll.u32 %s6681_s24, 4  ;;  %s111_s15 = sshll.u32 %s6682_s11, 4  ;;  %s342_s25 = int_to_ptr.vmem [resolvable:$true] %s341_s25  ;;  %s112_s15 = int_to_ptr.vmem [resolvable:$true] %s111_s15 }
  0xfc   :  { %s6267_s0 = scalar_lea.hbm %s6838_s30, 16 }
  0xfd   :  { %p6268_p10 = scmp.ne.s32.totalorder %s6838_s30, %s6267_s0  ;;  %p6271_p11 = scmp.lt.u32.totalorder %s6267_s0, %s6838_s30 }
  0xff   :  { %p6273_p12 = pnand %p6271_p11, %p6268_p10 }
 0x101   :  { %6276 = shalt.err (!%p6273_p12)
}
 0x102   :  { %s6277_s16 = scalar_lea.vmem %s342_s25, 16  ;;  %s6281_s21 = scalar_lea.vmem %s342_s25, 32 }
 0x103   :  { %p6278_p13 = scmp.ne.s32.totalorder %s342_s25, %s6277_s16  ;;  %p6282_p0 = scmp.lt.s32.totalorder %s342_s25, %s342_s25 }
 0x104   :  { %p6283_p1 = scmp.lt.s32.totalorder %s6281_s21, %s6277_s16 }
 0x106   :  { %p6284_p2 = por %p6283_p1, %p6282_p0 }
 0x108   :  { %p6285_p3 = pnand %p6284_p2, %p6278_p13 }
 0x10a   :  { %6288 = shalt.err (!%p6285_p3)
}
 0x10b   :  { %344 = dma.hbm_to_vmem [thread:$0]  %s6838_s30, 16, %s342_s25, [#allocation36]  }
 0x10c   :  { %s6289_s12 = scalar_lea.hbm %s6708_s5, 128 }
 0x10d   :  { %p6290_p4 = scmp.ne.s32.totalorder %s6708_s5, %s6289_s12  ;;  %p6293_p5 = scmp.lt.u32.totalorder %s6289_s12, %s6708_s5 }
 0x10f   :  { %p6295_p6 = pnand %p6293_p5, %p6290_p4 }
 0x111   :  { %6298 = shalt.err (!%p6295_p6)
}
 0x112   :  { %s6299_s6 = scalar_lea.vmem %s112_s15, 128  ;;  %p6304_p8 = scmp.lt.s32.totalorder %s112_s15, %s112_s15 }
 0x113   :  { %p6300_p7 = scmp.ne.s32.totalorder %s112_s15, %s6299_s6  ;;  %p6305_p9 = scmp.lt.s32.totalorder %s6299_s6, %s6299_s6 }
 0x115   :  { %p6306_p10 = por %p6305_p9, %p6304_p8 }
 0x117   :  { %p6307_p11 = pnand %p6306_p10, %p6300_p7 }
 0x119   :  { %6310 = shalt.err (!%p6307_p11)
}
 0x11a   :  { %114 = dma.hbm_to_vmem [thread:$0]  %s6708_s5, 128, %s112_s15, [#allocation3]  }
 0x11b   :  { %s6683_s18 = smov [#allocation7]   ;;  %s6684_s30 = smov [#allocation10]  }
 0x11c   :  { %s133_s26 = sshll.u32 %s6683_s18, 4  ;;  %s155_s28 = sshll.u32 %s6684_s30, 4  ;;  %s134_s26 = int_to_ptr.vmem [resolvable:$true] %s133_s26  ;;  %s156_s28 = int_to_ptr.vmem [resolvable:$true] %s155_s28 }
 0x11d   :  { %s6311_s1 = scalar_lea.hbm %s6723_s17, 16 }
 0x11e   :  { %p6312_p12 = scmp.ne.s32.totalorder %s6723_s17, %s6311_s1  ;;  %p6315_p13 = scmp.lt.u32.totalorder %s6311_s1, %s6723_s17 }
 0x120   :  { %p6317_p0 = pnand %p6315_p13, %p6312_p12 }
 0x122   :  { %6320 = shalt.err (!%p6317_p0)
}
 0x123   :  { %s6321_s2 = scalar_lea.vmem %s134_s26, 16  ;;  %s6325_s7 = scalar_lea.vmem %s134_s26, 32 }
 0x124   :  { %p6322_p1 = scmp.ne.s32.totalorder %s134_s26, %s6321_s2  ;;  %p6326_p2 = scmp.lt.s32.totalorder %s134_s26, %s134_s26 }
 0x125   :  { %p6327_p3 = scmp.lt.s32.totalorder %s6325_s7, %s6321_s2 }
 0x127   :  { %p6328_p4 = por %p6327_p3, %p6326_p2 }
 0x129   :  { %p6329_p5 = pnand %p6328_p4, %p6322_p1 }
 0x12b   :  { %6332 = shalt.err (!%p6329_p5)
}
 0x12c   :  { %136 = dma.hbm_to_vmem [thread:$0]  %s6723_s17, 16, %s134_s26, [#allocation6]  }
 0x12d   :  { %s6333_s5 = scalar_lea.hbm %s6738_s29, 16 }
 0x12e   :  { %p6334_p6 = scmp.ne.s32.totalorder %s6738_s29, %s6333_s5  ;;  %p6337_p7 = scmp.lt.u32.totalorder %s6333_s5, %s6738_s29 }
 0x130   :  { %p6339_p8 = pnand %p6337_p7, %p6334_p6 }
 0x132   :  { %6342 = shalt.err (!%p6339_p8)
}
 0x133   :  { %s6343_s13 = scalar_lea.vmem %s156_s28, 16  ;;  %s6347_s27 = scalar_lea.vmem %s156_s28, 32 }
 0x134   :  { %p6344_p9 = scmp.ne.s32.totalorder %s156_s28, %s6343_s13  ;;  %p6348_p10 = scmp.lt.s32.totalorder %s156_s28, %s156_s28 }
 0x135   :  { %p6349_p11 = scmp.lt.s32.totalorder %s6347_s27, %s6343_s13 }
 0x137   :  { %p6350_p12 = por %p6349_p11, %p6348_p10 }
 0x139   :  { %p6351_p13 = pnand %p6350_p12, %p6344_p9 }
 0x13b   :  { %6354 = shalt.err (!%p6351_p13)
}
 0x13c   :  { %s8515_s14 = sld [smem:[#allocation57_spill]]  ;;  %s6685_s10 = smov [#allocation13]  }
 0x13d   :  { %158 = dma.hbm_to_vmem [thread:$0]  %s6738_s29, 16, %s156_s28, [#allocation9]  }
 0x13e   :  { %s175_s17 = sshll.u32 %s6685_s10, 4  ;;  %s6686_s24 = smov [#allocation16]   ;;  %s176_s17 = int_to_ptr.vmem [resolvable:$true] %s175_s17 }
 0x13f   :  { %s197_s25 = sshll.u32 %s6686_s24, 4  ;;  %s198_s25 = int_to_ptr.vmem [resolvable:$true] %s197_s25 }
 0x142   :  { %s6355_s11 = scalar_lea.hbm %s8515_s14, 16 }
 0x143   :  { %p6356_p0 = scmp.ne.s32.totalorder %s8515_s14, %s6355_s11  ;;  %p6359_p1 = scmp.lt.u32.totalorder %s6355_s11, %s8515_s14 }
 0x145   :  { %p6361_p2 = pnand %p6359_p1, %p6356_p0 }
 0x147   :  { %6364 = shalt.err (!%p6361_p2)
}
 0x148   :  { %s6365_s15 = scalar_lea.vmem %s176_s17, 16  ;;  %s6369_s0 = scalar_lea.vmem %s176_s17, 32 }
 0x149   :  { %p6366_p3 = scmp.ne.s32.totalorder %s176_s17, %s6365_s15  ;;  %p6370_p4 = scmp.lt.s32.totalorder %s176_s17, %s176_s17 }
 0x14a   :  { %p6371_p5 = scmp.lt.s32.totalorder %s6369_s0, %s6365_s15 }
 0x14c   :  { %p6372_p6 = por %p6371_p5, %p6370_p4 }
 0x14e   :  { %p6373_p7 = pnand %p6372_p6, %p6366_p3 }
 0x150   :  { %6376 = shalt.err (!%p6373_p7)
}
 0x151   :  { %s8516_s29 = sld [smem:[#allocation58_spill]] }
 0x152   :  { %178 = dma.hbm_to_vmem [thread:$0]  %s8515_s14, 16, %s176_s17, [#allocation12]  }
 0x157   :  { %s6377_s16 = scalar_lea.hbm %s8516_s29, 16 }
 0x158   :  { %p6378_p8 = scmp.ne.s32.totalorder %s8516_s29, %s6377_s16  ;;  %p6381_p9 = scmp.lt.u32.totalorder %s6377_s16, %s8516_s29 }
 0x15a   :  { %p6383_p10 = pnand %p6381_p9, %p6378_p8 }
 0x15c   :  { %6386 = shalt.err (!%p6383_p10)
}
 0x15d   :  { %s6387_s21 = scalar_lea.vmem %s198_s25, 16  ;;  %s6391_s12 = scalar_lea.vmem %s198_s25, 32 }
 0x15e   :  { %p6388_p11 = scmp.ne.s32.totalorder %s198_s25, %s6387_s21  ;;  %p6392_p12 = scmp.lt.s32.totalorder %s198_s25, %s198_s25 }
 0x15f   :  { %p6393_p13 = scmp.lt.s32.totalorder %s6391_s12, %s6387_s21 }
 0x161   :  { %p6394_p0 = por %p6393_p13, %p6392_p12 }
 0x163   :  { %p6395_p1 = pnand %p6394_p0, %p6388_p11 }
 0x165   :  { %6398 = shalt.err (!%p6395_p1)
}
 0x166   :  { %s8517_s6 = sld [smem:[#allocation59_spill]]  ;;  %s6687_s18 = smov [#allocation19]  }
 0x167   :  { %200 = dma.hbm_to_vmem [thread:$0]  %s8516_s29, 16, %s198_s25, [#allocation15]  }
 0x168   :  { %s217_s26 = sshll.u32 %s6687_s18, 4  ;;  %s6688_s30 = smov [#allocation22]   ;;  %s218_s26 = int_to_ptr.vmem [resolvable:$true] %s217_s26 }
 0x169   :  { %s239_s28 = sshll.u32 %s6688_s30, 4  ;;  %s240_s28 = int_to_ptr.vmem [resolvable:$true] %s239_s28 }
 0x16c   :  { %s6399_s1 = scalar_lea.hbm %s8517_s6, 16 }
 0x16d   :  { %p6400_p2 = scmp.ne.s32.totalorder %s8517_s6, %s6399_s1  ;;  %p6403_p3 = scmp.lt.u32.totalorder %s6399_s1, %s8517_s6 }
 0x16f   :  { %p6405_p4 = pnand %p6403_p3, %p6400_p2 }
 0x171   :  { %6408 = shalt.err (!%p6405_p4)
}
 0x172   :  { %s6409_s2 = scalar_lea.vmem %s218_s26, 16  ;;  %s6413_s7 = scalar_lea.vmem %s218_s26, 32 }
 0x173   :  { %p6410_p5 = scmp.ne.s32.totalorder %s218_s26, %s6409_s2  ;;  %p6414_p6 = scmp.lt.s32.totalorder %s218_s26, %s218_s26 }
 0x174   :  { %p6415_p7 = scmp.lt.s32.totalorder %s6413_s7, %s6409_s2 }
 0x176   :  { %p6416_p8 = por %p6415_p7, %p6414_p6 }
 0x178   :  { %p6417_p9 = pnand %p6416_p8, %p6410_p5 }
 0x17a   :  { %6420 = shalt.err (!%p6417_p9)
}
 0x17b   :  { %s8518_s5 = sld [smem:[#allocation60_spill]] }
 0x17c   :  { %220 = dma.hbm_to_vmem [thread:$0]  %s8517_s6, 16, %s218_s26, [#allocation18]  }
 0x181   :  { %s6421_s13 = scalar_lea.hbm %s8518_s5, 16 }
 0x182   :  { %p6422_p10 = scmp.ne.s32.totalorder %s8518_s5, %s6421_s13  ;;  %p6425_p11 = scmp.lt.u32.totalorder %s6421_s13, %s8518_s5 }
 0x184   :  { %p6427_p12 = pnand %p6425_p11, %p6422_p10 }
 0x186   :  { %6430 = shalt.err (!%p6427_p12)
}
 0x187   :  { %s6431_s27 = scalar_lea.vmem %s240_s28, 16  ;;  %s6435_s14 = scalar_lea.vmem %s240_s28, 32 }
 0x188   :  { %p6432_p13 = scmp.ne.s32.totalorder %s240_s28, %s6431_s27  ;;  %p6436_p0 = scmp.lt.s32.totalorder %s240_s28, %s240_s28 }
 0x189   :  { %p6437_p1 = scmp.lt.s32.totalorder %s6435_s14, %s6431_s27 }
 0x18b   :  { %p6438_p2 = por %p6437_p1, %p6436_p0 }
 0x18d   :  { %p6439_p3 = pnand %p6438_p2, %p6432_p13 }
 0x18f   :  { %6442 = shalt.err (!%p6439_p3)
}
 0x190   :  { %s8519_s10 = sld [smem:[#allocation61_spill]]  ;;  %s6689_s17 = smov [#allocation25]  }
 0x191   :  { %242 = dma.hbm_to_vmem [thread:$0]  %s8518_s5, 16, %s240_s28, [#allocation21]  }
 0x192   :  { %s261_s24 = sshll.u32 %s6689_s17, 4  ;;  %s6690_s25 = smov [#allocation28]   ;;  %s262_s24 = int_to_ptr.vmem [resolvable:$true] %s261_s24 }
 0x193   :  { %s288_s11 = sshll.u32 %s6690_s25, 4  ;;  %s7025_s11 = int_to_ptr.vmem [resolvable:$true] %s288_s11 }
 0x196   :  { %s6443_s15 = scalar_lea.hbm %s8519_s10, 16 }
 0x197   :  { %p6444_p4 = scmp.ne.s32.totalorder %s8519_s10, %s6443_s15  ;;  %p6447_p5 = scmp.lt.u32.totalorder %s6443_s15, %s8519_s10 }
 0x199   :  { %p6449_p6 = pnand %p6447_p5, %p6444_p4 }
 0x19b   :  { %6452 = shalt.err (!%p6449_p6)
}
 0x19c   :  { %s6453_s0 = scalar_lea.vmem %s262_s24, 16  ;;  %s6457_s29 = scalar_lea.vmem %s262_s24, 32 }
 0x19d   :  { %p6454_p7 = scmp.ne.s32.totalorder %s262_s24, %s6453_s0  ;;  %p6458_p8 = scmp.lt.s32.totalorder %s262_s24, %s262_s24 }
 0x19e   :  { %p6459_p9 = scmp.lt.s32.totalorder %s6457_s29, %s6453_s0 }
 0x1a0   :  { %p6460_p10 = por %p6459_p9, %p6458_p8 }
 0x1a2   :  { %p6461_p11 = pnand %p6460_p10, %p6454_p7 }
 0x1a4   :  { %6464 = shalt.err (!%p6461_p11)
}
 0x1a5   :  { %s8520_s16 = sld [smem:[#allocation65_spill]] }
 0x1a6   :  { %264 = dma.hbm_to_vmem [thread:$0]  %s8519_s10, 16, %s262_s24, [#allocation24]  }
 0x1ab   :  { %s6465_s21 = scalar_lea.hbm %s8520_s16, 4096 }
 0x1ac   :  { %p6466_p12 = scmp.ne.s32.totalorder %s8520_s16, %s6465_s21  ;;  %p6469_p13 = scmp.lt.u32.totalorder %s6465_s21, %s8520_s16 }
 0x1ae   :  { %p6471_p0 = pnand %p6469_p13, %p6466_p12 }
 0x1b0   :  { %6474 = shalt.err (!%p6471_p0)
}
 0x1b1   :  { %s6475_s12 = scalar_lea.vmem %s7025_s11, 4096  ;;  %p6480_p2 = scmp.lt.s32.totalorder %s7025_s11, %s7025_s11 }
 0x1b2   :  { %p6476_p1 = scmp.ne.s32.totalorder %s7025_s11, %s6475_s12  ;;  %p6481_p3 = scmp.lt.s32.totalorder %s6475_s12, %s6475_s12 }
 0x1b4   :  { %p6482_p4 = por %p6481_p3, %p6480_p2 }
 0x1b6   :  { %p6483_p5 = pnand %p6482_p4, %p6476_p1 }
 0x1b8   :  { %6486 = shalt.err (!%p6483_p5)
}
 0x1b9   :  { %s8521_s6 = sld [smem:[#allocation66_spill]]  ;;  %s6691_s18 = smov [#allocation31]  }
 0x1ba   :  { %294 = dma.hbm_to_vmem [thread:$0]  %s8520_s16, 4096, %s7025_s11, [#allocation27], %s6677_s23, %s6677_s23, %s6678_s20  }
 0x1bb   :  { %s311_s26 = sshll.u32 %s6691_s18, 4  ;;  %s6692_s30 = smov [#allocation34]   ;;  %s312_s26 = int_to_ptr.vmem [resolvable:$true] %s311_s26 }
 0x1bc   :  { %s331_s28 = sshll.u32 %s6692_s30, 4  ;;  %s332_s28 = int_to_ptr.vmem [resolvable:$true] %s331_s28 }
 0x1bf   :  { %s6487_s1 = scalar_lea.hbm %s8521_s6, 16 }
 0x1c0   :  { %p6488_p6 = scmp.ne.s32.totalorder %s8521_s6, %s6487_s1  ;;  %p6491_p7 = scmp.lt.u32.totalorder %s6487_s1, %s8521_s6 }
 0x1c2   :  { %p6493_p8 = pnand %p6491_p7, %p6488_p6 }
 0x1c4   :  { %6496 = shalt.err (!%p6493_p8)
}
 0x1c5   :  { %s6497_s2 = scalar_lea.vmem %s312_s26, 16  ;;  %s6501_s7 = scalar_lea.vmem %s312_s26, 32 }
 0x1c6   :  { %p6498_p9 = scmp.ne.s32.totalorder %s312_s26, %s6497_s2  ;;  %p6502_p10 = scmp.lt.s32.totalorder %s312_s26, %s312_s26 }
 0x1c7   :  { %p6503_p11 = scmp.lt.s32.totalorder %s6501_s7, %s6497_s2 }
 0x1c9   :  { %p6504_p12 = por %p6503_p11, %p6502_p10 }
 0x1cb   :  { %p6505_p13 = pnand %p6504_p12, %p6498_p9 }
 0x1cd   :  { %6508 = shalt.err (!%p6505_p13)
}
 0x1ce   :  { %s8522_s23 = sld [smem:[#allocation67_spill]] }
 0x1cf   :  { %314 = dma.hbm_to_vmem [thread:$0]  %s8521_s6, 16, %s312_s26, [#allocation30]  }
 0x1d4   :  { %s6509_s20 = scalar_lea.hbm %s8522_s23, 16 }
 0x1d5   :  { %p6510_p0 = scmp.ne.s32.totalorder %s8522_s23, %s6509_s20  ;;  %p6513_p1 = scmp.lt.u32.totalorder %s6509_s20, %s8522_s23 }
 0x1d7   :  { %p6515_p2 = pnand %p6513_p1, %p6510_p0 }
 0x1d9   :  { %6518 = shalt.err (!%p6515_p2)
}
 0x1da   :  { %s6519_s5 = scalar_lea.vmem %s332_s28, 16  ;;  %s6523_s13 = scalar_lea.vmem %s332_s28, 32 }
 0x1db   :  { %p6520_p3 = scmp.ne.s32.totalorder %s332_s28, %s6519_s5  ;;  %p6524_p4 = scmp.lt.s32.totalorder %s332_s28, %s332_s28 }
 0x1dc   :  { %p6525_p5 = scmp.lt.s32.totalorder %s6523_s13, %s6519_s5 }
 0x1de   :  { %p6526_p6 = por %p6525_p5, %p6524_p4 }
 0x1e0   :  { %p6527_p7 = pnand %p6526_p6, %p6520_p3 }
 0x1e2   :  { %6530 = shalt.err (!%p6527_p7)
}
 0x1e3   :  { %s8523_s27 = sld [smem:[#allocation69_spill]]  ;;  %s6693_s14 = smov [#allocation37]  }
 0x1e4   :  { %334 = dma.hbm_to_vmem [thread:$0]  %s8522_s23, 16, %s332_s28, [#allocation33]  }
 0x1e5   :  { %s352_s10 = sshll.u32 %s6693_s14, 4  ;;  %s353_s10 = int_to_ptr.vmem [resolvable:$true] %s352_s10 }
 0x1e9   :  { %s6531_s17 = scalar_lea.hbm %s8523_s27, 2048 }
 0x1ea   :  { %p6532_p8 = scmp.ne.s32.totalorder %s8523_s27, %s6531_s17  ;;  %p6535_p9 = scmp.lt.u32.totalorder %s6531_s17, %s8523_s27 }
 0x1ec   :  { %p6537_p10 = pnand %p6535_p9, %p6532_p8 }
 0x1ee   :  { %6540 = shalt.err (!%p6537_p10)
}
 0x1ef   :  { %s6541_s24 = scalar_lea.vmem %s353_s10, 2048  ;;  %p6546_p12 = scmp.lt.s32.totalorder %s353_s10, %s353_s10 }
 0x1f0   :  { %p6542_p11 = scmp.ne.s32.totalorder %s353_s10, %s6541_s24  ;;  %p6547_p13 = scmp.lt.s32.totalorder %s6541_s24, %s6541_s24 }
 0x1f2   :  { %p6548_p0 = por %p6547_p13, %p6546_p12 }
 0x1f4   :  { %p6549_p1 = pnand %p6548_p0, %p6542_p11 }
 0x1f6   :  { %6552 = shalt.err (!%p6549_p1)
}
 0x1f7   :  { %358 = dma.hbm_to_vmem [thread:$0]  %s8523_s27, 2048, %s353_s10, [#allocation36], %s6671_s22, %s6671_s22, %s6672_s3  }
 0x1f8   :  { %6597 = dma.done.wait [#allocation3], 128  }
 0x1f9   :  { %6598 = vsyncadd [#allocation3], 4294967168 }
 0x1fa   :  { %6599 = dma.done.wait [#allocation6], 32  }
 0x1fb   :  { %6600 = vsyncadd [#allocation6], 4294967264 }
 0x1fc   :  { %6601 = dma.done.wait [#allocation9], 32  }
 0x1fd   :  { %6602 = vsyncadd [#allocation9], 4294967264 }
 0x1fe   :  { %6603 = dma.done.wait [#allocation12], 32  }
 0x1ff   :  { %6604 = vsyncadd [#allocation12], 4294967264 }
 0x200   :  { %6605 = dma.done.wait [#allocation15], 912  }
 0x201   :  { %6606 = vsyncadd [#allocation15], 4294966384 }
 0x202   :  { %6607 = dma.done.wait [#allocation18], 32  }
 0x203   :  { %6608 = vsyncadd [#allocation18], 4294967264 }
 0x204   :  { %6609 = dma.done.wait [#allocation21], 1168  }
 0x205   :  { %6610 = vsyncadd [#allocation21], 4294966128 }
 0x206   :  { %6611 = dma.done.wait [#allocation24], 912  }
 0x207   :  { %6612 = vsyncadd [#allocation24], 4294966384 }
 0x208   :  { %6613 = dma.done.wait [#allocation27], 8192  }
 0x209   :  { %6614 = vsyncadd [#allocation27], 4294959104 }
 0x20a   :  { %6615 = dma.done.wait [#allocation30], 80  }
 0x20b   :  { %6616 = vsyncadd [#allocation30], 4294967216 }
 0x20c   :  { %6617 = dma.done.wait [#allocation33], 32  }
 0x20d   :  { %6618 = vsyncadd [#allocation33], 4294967264 }
 0x20e   :  { %6619 = dma.done.wait [#allocation36], 2064  }
 0x20f   :  { %6620 = vsyncadd [#allocation36], 4294965232  ;;  %s8524_s22 = sld [smem:[#allocation55_spill]]  ;;  %v8373_v0 = vmov 0.0|0.0   ;;  %vm6695_vm0 = vmmov 0   ;;  %v8371_v1 = vmov 0.0  }
 0x210   :  { %5267 = vmatprep.subr.bf16.mxu0 %v8373_v0  ;;  %5064 = vmatprep.mubr.msk.f32.mxu0 %vm6695_vm0, %v8371_v1  ;;  %s8525_s3 = sld [smem:[#allocation56_spill]]  ;;  %v451_v18 = vld [vmem:[#allocation2] sm:$0xff]  ;;  %vm470_vm1 = vcmask 719872   ;;  %vm606_vm2 = vcmask 1045504   ;;  %v4724_v32 = vld [vmem:[#allocation5] ss:$0 sm:$0xff] }
 0x211   :  { %5282 = vmatprep.subr.bf16.mxu1 %v8373_v0  ;;  %5085 = vmatprep.mubr.msk.f32.mxu1 %vm6695_vm0, %v8371_v1  ;;  %vm546_vm3 = vcmask 572416   ;;  %v4726_v59 = vld [vmem:[#allocation7] ss:$0 sm:$0xff]  ;;  %v4727_v61 = vld [vmem:[#allocation8] ss:$0 sm:$0xff]  ;;  %vm682_vm4 = vcmask 441344  }
 0x212   :  { %s8526_s25 = sld [smem:[#allocation62_spill]]  ;;  %s8527_s11 = sld [smem:[#allocation63_spill]]  ;;  %vm4046_vm5 = vcmask 1040384   ;;  %vm4048_vm6 = vcmask 1041408   ;;  %vm4050_vm7 = vcmask 1042432   ;;  %vm4052_vm8 = vcmask 1043456  }
 0x213   :  { %s8562_s15 = sld [smem:[#allocation64_spill]]  ;;  %vm4054_vm9 = vcmask 1044480   ;;  %s8710_s0 = sld [smem:[#allocation68_spill]]  ;;  %vm4057_vm10 = vcmask 1046528   ;;  %vm4456_vm11 = vcmask 523264   ;;  %vm4586_vm12 = vcmask 15360  }
 0x214   :  { %s8718_s29 = sld [smem:[#allocation73_spill]]  ;;  %s8719_s16 = sld [smem:[#allocation70_spill]] }
 0x215   :  { %v452_v2 = vld [vmem:[%s8524_s22] sm:$0xff]  ;;  %v453_v3 = vld [vmem:[%s8524_s22 + $0x8] sm:$0xff]  ;;  %v454_v4 = vld [vmem:[%s8524_s22 + $0x10] sm:$0xff]  ;;  %s8720_s21 = sld [smem:[#allocation71_spill]]  ;;  %s8721_s12 = sld [smem:[#allocation72_spill]] }
 0x216   :  { %v5268_v5 = vpack.c.bf16 %v453_v3, %v452_v2  ;;  %v455_v6 = vld [vmem:[%s8524_s22 + $0x18] sm:$0xff]  ;;  %v456_v8 = vld [vmem:[%s8524_s22 + $0x20] sm:$0xff]  ;;  %v457_v9 = vld [vmem:[%s8524_s22 + $0x28] sm:$0xff]  ;;  %s8722_s6 = sld [smem:[#allocation77_spill]]  ;;  %s8723_s18 = sld [smem:[#allocation74_spill]] }
 0x217   :  { %v5271_v7 = vpack.c.bf16 %v455_v6, %v454_v4  ;;  %v458_v10 = vld [vmem:[%s8524_s22 + $0x30] sm:$0xff]  ;;  %v459_v11 = vld [vmem:[%s8524_s22 + $0x38] sm:$0xff]  ;;  %v5274_v12 = vpack.c.bf16 %v457_v9, %v456_v8  ;;  %v460_v13 = vld [vmem:[%s8524_s22 + $0x40] sm:$0xff]  ;;  %s8724_s26 = sld [smem:[#allocation75_spill]]  ;;  %s8725_s30 = sld [smem:[#allocation76_spill]] }
 0x218   :  { %5269 = vmatpush3.bf16.msra.mxu0 %v5268_v5  ;;  %v461_v14 = vld [vmem:[%s8524_s22 + $0x48] sm:$0xff]  ;;  %v5277_v15 = vpack.c.bf16 %v459_v11, %v458_v10  ;;  %v462_v17 = vld [vmem:[%s8524_s22 + $0x50] sm:$0xff]  ;;  %v587_v19 = vld [vmem:[%s8525_s3] sm:$0xff]  ;;  %s8726_s28 = sld [smem:[#allocation78_spill]]  ;;  %s8727_s1 = sld [smem:[#allocation79_spill]] }
 0x219   :  { %5270 = vmatprep.subr.bf16.mxu0 %v8373_v0  ;;  %v5280_v16 = vpack.c.bf16 %v461_v14, %v460_v13  ;;  %v588_v20 = vld [vmem:[%s8525_s3 + $0x8] sm:$0xff]  ;;  %v589_v22 = vld [vmem:[%s8525_s3 + $0x10] sm:$0xff]  ;;  %v590_v23 = vld [vmem:[%s8525_s3 + $0x18] sm:$0xff]  ;;  %s6698_s2 = smov [#allocation38]   ;;  %s6699_s23 = smov [#allocation39]  }
 0x21a   :  { %v5283_v21 = vpack.c.bf16 %v588_v20, %v587_v19  ;;  %v5286_v24 = vpack.c.bf16 %v590_v23, %v589_v22  ;;  %v591_v25 = vld [vmem:[%s8525_s3 + $0x20] sm:$0xff]  ;;  %v592_v26 = vld [vmem:[%s8525_s3 + $0x28] sm:$0xff]  ;;  %v593_v28 = vld [vmem:[%s8525_s3 + $0x30] sm:$0xff]  ;;  %s4644_s7 = sshll.u32 %s6698_s2, 4  ;;  %s4654_s20 = sshll.u32 %s6699_s23, 4  ;;  %s4645_s7 = int_to_ptr.vmem [resolvable:$true] %s4644_s7  ;;  %s4655_s20 = int_to_ptr.vmem [resolvable:$true] %s4654_s20 }
 0x21b   :  { %v5289_v27 = vpack.c.bf16 %v592_v26, %v591_v25  ;;  %v594_v29 = vld [vmem:[%s8525_s3 + $0x38] sm:$0xff]  ;;  %v595_v31 = vld [vmem:[%s8525_s3 + $0x40] sm:$0x3f]  ;;  %v4728_v13 = vld [vmem:[#allocation10] ss:$0 sm:$0xff]  ;;  %p6558_p3 = scmp.lt.s32.totalorder %s4645_s7, %s4645_s7 }
 0x21c   :  { %5272 = vmatpush3.bf16.msra.mxu0 %v5271_v7  ;;  %5284 = vmatpush3.bf16.msra.mxu1 %v5283_v21  ;;  %v5292_v30 = vpack.c.bf16 %v594_v29, %v593_v28  ;;  %v722_v3 = vld [vmem:[#allocation14] sm:$0xff]  ;;  %v723_v4 = vld [vmem:[#allocation14 + $0x8] sm:$0xff]  ;;  %v724_v6 = vld [vmem:[#allocation14 + $0x10] sm:$0xff] }
 0x21d   :  { %5273 = vmatprep.subr.bf16.mxu0 %v8373_v0  ;;  %5285 = vmatprep.subr.bf16.mxu1 %v8373_v0  ;;  %v5295_v5 = vpack.c.bf16 %v723_v4, %v722_v3  ;;  %v725_v7 = vld [vmem:[#allocation14 + $0x18] sm:$0xff]  ;;  %v726_v9 = vld [vmem:[#allocation14 + $0x20] sm:$0xff]  ;;  %v727_v10 = vld [vmem:[#allocation14 + $0x28] sm:$0xff] }
 0x21e   :  { %v5298_v8 = vpack.c.bf16 %v725_v7, %v724_v6  ;;  %v5301_v11 = vpack.c.bf16 %v727_v10, %v726_v9  ;;  %v5495_v3 = vld [vmem:[%s8526_s25 + $0x88] ss:$16 sps:$4 sm:$0xff]   ;;  %v5500_v4 = vld [vmem:[%s8526_s25 + $0xac] ss:$16 sps:$4 sm:$0xff]   ;;  %v5509_v10 = vld [vmem:[#allocation26 + $0xc] ss:$16 sps:$4 sm:$0xff]  }
 0x21f   :  { %v5503_v6 = vld [vmem:[%s8526_s25 + $0xcc] ss:$16 sps:$4 sm:$0xff]   ;;  %v5501_v7 = vld [vmem:[%s8526_s25 + $0xc8] ss:$16 sps:$4 sm:$0xff]  }
 0x220   :  { %5275 = vmatpush3.bf16.msra.mxu0 %v5274_v12  ;;  %5287 = vmatpush3.bf16.msra.mxu1 %v5286_v24  ;;  %v728_v12 = vld [vmem:[#allocation14 + $0x30] sm:$0x3f] }
 0x221   :  { %5276 = vmatprep.subr.bf16.mxu0 %v8373_v0  ;;  %5288 = vmatprep.subr.bf16.mxu1 %v8373_v0  ;;  %v5504_v9 = vld [vmem:[%s8526_s25 + $0xe8] ss:$16 sps:$4 sm:$0xff]  }
 0x224   :  { %5278 = vmatpush3.bf16.msra.mxu0 %v5277_v15  ;;  %5290 = vmatpush3.bf16.msra.mxu1 %v5289_v27 }
 0x225   :  { %5279 = vmatprep.subr.bf16.mxu0 %v8373_v0  ;;  %5291 = vmatprep.subr.bf16.mxu1 %v8373_v0 }
 0x228   :  { %5281 = vmatpush3.bf16.msra.mxu0 %v5280_v16  ;;  %5293 = vmatpush3.bf16.msra.mxu1 %v5292_v30 }
 0x229   :  { %5062 = vmatprep.subr.mxu0 %v8371_v1  ;;  %5083 = vmatprep.subr.mxu1 %v8371_v1 }
 0x22c   :  { %5063 = vmatpush3.msra.mxu0 %v462_v17  ;;  %5084 = vmatpush3.msk.msra.mxu1 %vm606_vm2, %v595_v31 }
 0x22d   :  { %5065 = vmatmul.mubr.msk.f32.vlgmr.msra.gmra.mrb[0].mxu0 %vm470_vm1, %v451_v18  ;;  %5303 = vmatprep.subr.bf16.mxu0 %v8373_v0 }
 0x22e   :  { %5123 = vmatprep.mubr.msk.f32.mxu0 %vm6695_vm0, %v8371_v1  ;;  %5294 = vmatprep.subr.bf16.mxu1 %v8373_v0 }
 0x300   :  { %v540_v33 = vpop.f32.mrb[0].mxu0 }
 0x301   :  { %v541_v34 = vadd.f32 %v4724_v32, %v540_v33  ;;  %v5066_v35 = vpop.f32.mrb[1].mxu0 }
 0x303   :  { %v547_v36 = vsel %vm546_vm3, %v541_v34, 0.0  ;;  %v556_v37 = vmul.f32 %v541_v34, %v541_v34 }
 0x304   :  { %v548_v38 = vrot.slane %v547_v36, 4 }
 0x305   :  { %v557_v39 = vsel %vm546_vm3, %v556_v37, 0.0 }
 0x306   :  { %v549_v40 = vadd.f32 %v548_v38, %v547_v36  ;;  %v558_v41 = vrot.slane %v557_v39, 4 }
 0x308   :  { %v550_v42 = vrot.slane %v549_v40, 2  ;;  %v559_v43 = vadd.f32 %v558_v41, %v557_v39 }
 0x30a   :  { %v551_v44 = vadd.f32 %v550_v42, %v549_v40  ;;  %v560_v45 = vrot.slane %v559_v43, 2  ;;  %v4731_v40 = vld [vmem:[#allocation11] ss:$0 sm:$0xff]  ;;  %v4732_v42 = vld [vmem:[#allocation13] ss:$0 sm:$0xff] }
 0x30c   :  { %v552_v46 = vrot.slane %v551_v44, 1  ;;  %v561_v47 = vadd.f32 %v560_v45, %v559_v43  ;;  %v948_v45 = vld [vmem:[#allocation23 + $0x8] sm:$0xff] }
 0x30e   :  { %v553_v48 = vadd.f32 %v552_v46, %v551_v44  ;;  %v562_v49 = vrot.slane %v561_v47, 1  ;;  %v947_v44 = vld [vmem:[#allocation23] sm:$0xff] }
 0x310   :  { %v555_v50 = vmul.f32 0.125, %v553_v48  ;;  %v563_v51 = vadd.f32 %v562_v49, %v561_v47  ;;  %v5316_v47 = vpack.c.bf16 %v948_v45, %v947_v44  ;;  %v949_v49 = vld [vmem:[#allocation23 + $0x10] sm:$0xff] }
 0x312   :  { %v564_v52 = vmul.f32 0.125, %v563_v51  ;;  %v565_v53 = vmul.f32 %v555_v50, %v555_v50  ;;  %v568_v57 = vsub.f32 %v541_v34, %v555_v50  ;;  %v950_v50 = vld [vmem:[#allocation23 + $0x18] sm:$0xff] }
 0x313   :  { %v5319_v51 = vpack.c.bf16 %v950_v50, %v949_v49  ;;  %v5507_v50 = vld [vmem:[#allocation26 + $0x8] ss:$16 sps:$4 sm:$0xff]  }
 0x314   :  { %v566_v54 = vsub.f32 %v564_v52, %v565_v53  ;;  %v951_v52 = vld [vmem:[#allocation23 + $0x20] sm:$0xff]  ;;  %v952_v53 = vld [vmem:[#allocation23 + $0x28] sm:$0xff] }
 0x316   :  { %v567_v55 = vmax.f32 %v566_v54, 0.0  ;;  %v5322_v54 = vpack.c.bf16 %v952_v53, %v951_v52  ;;  %v5512_v52 = vld [vmem:[#allocation26 + $0x2c] ss:$16 sps:$4 sm:$0xff]  }
 0x318   :  { %v569_v56 = vadd.f32 1e-05, %v567_v55  ;;  %v953_v55 = vld [vmem:[#allocation23 + $0x30] sm:$0x3f] }
 0x31a   :  { %5675 = vrsqrt.f32 %v569_v56  ;;  %v5485_v56 = vld [vmem:[%s8526_s25 + $0xc] ss:$16 sps:$4 sm:$0xff]  }
 0x324   :  { %v5676_v58 = vpop.eup %5675 }
 0x325   :  { %v571_v60 = vmul.f32 %v5676_v58, %v568_v57  ;;  %v5483_v57 = vld [vmem:[%s8526_s25 + $0x8] ss:$16 sps:$4 sm:$0xff]   ;;  %v5488_v58 = vld [vmem:[%s8526_s25 + $0x2c] ss:$16 sps:$4 sm:$0xff]  }
 0x327   :  { %v578_v62 = vmul.f32 %v4726_v59, %v571_v60  ;;  %v5486_v59 = vld [vmem:[%s8526_s25 + $0x28] ss:$16 sps:$4 sm:$0xff]   ;;  %v5491_v60 = vld [vmem:[%s8526_s25 + $0x4c] ss:$16 sps:$4 sm:$0xff]  }
 0x329   :  { %v585_v63 = vadd.f32 %v4727_v61, %v578_v62  ;;  %v5489_v61 = vld [vmem:[%s8526_s25 + $0x48] ss:$16 sps:$4 sm:$0xff]   ;;  %v5494_v62 = vld [vmem:[%s8526_s25 + $0x6c] ss:$16 sps:$4 sm:$0xff]  }
 0x32b   :  { %v586_v2 = vmax.f32 %v585_v63, 0.0  ;;  %v5492_v63 = vld [vmem:[%s8526_s25 + $0x68] ss:$16 sps:$4 sm:$0xff]  }
 0x32d   :  { %5086 = vmatmul.mubr.msk.f32.vlgmr.msra.gmra.mrb[0].mxu1 %vm546_vm3, %v586_v2  ;;  %v5497_v2 = vld [vmem:[%s8526_s25 + $0x8c] ss:$16 sps:$4 sm:$0xff]  }
 0x32e   :  { %5102 = vmatprep.mubr.msk.f32.mxu1 %vm6695_vm0, %v8371_v1  ;;  %5296 = vmatpush3.bf16.msra.mxu1 %v5295_v5  ;;  %v5498_v5 = vld [vmem:[%s8526_s25 + $0xa8] ss:$16 sps:$4 sm:$0xff]  }
 0x32f   :  { %5297 = vmatprep.subr.bf16.mxu1 %v8373_v0 }
 0x332   :  { %5299 = vmatpush3.bf16.msra.mxu1 %v5298_v8  ;;  %v5506_v8 = vld [vmem:[%s8526_s25 + $0xec] ss:$16 sps:$4 sm:$0xff]  }
 0x333   :  { %5300 = vmatprep.subr.bf16.mxu1 %v8373_v0 }
 0x336   :  { %5302 = vmatpush3.bf16.msra.mxu1 %v5301_v11  ;;  %v8375_v11 = vmov 0  }
 0x337   :  { %5100 = vmatprep.subr.mxu1 %v8371_v1 }
 0x33a   :  { %5101 = vmatpush3.msk.msra.mxu1 %vm606_vm2, %v728_v12  ;;  %v853_v12 = vld [vmem:[#allocation20] sm:$0xff] }
 0x33b   :  { %5315 = vmatprep.subr.bf16.mxu1 %v8373_v0 }
 0x400   :  { %v676_v14 = vpop.f32.mrb[0].mxu1 }
 0x401   :  { %v677_v15 = vadd.f32 %v4728_v13, %v676_v14  ;;  %v5087_v16 = vpop.f32.mrb[1].mxu1  ;;  %v854_v13 = vld [vmem:[#allocation20 + $0x8] sm:$0xff] }
 0x402   :  { %v5304_v14 = vpack.c.bf16 %v854_v13, %v853_v12  ;;  %v856_v16 = vld [vmem:[#allocation20 + $0x18] sm:$0xff] }
 0x403   :  { %v683_v17 = vsel %vm682_vm4, %v677_v15, 0.0  ;;  %v691_v18 = vmul.f32 %v677_v15, %v677_v15  ;;  %v5525_v13 = vld [vmem:[#allocation26 + $0xc8] ss:$16 sps:$4 sm:$0xff]  }
 0x404   :  { %v684_v19 = vrot.slane %v683_v17, 4  ;;  %5305 = vmatpush3.bf16.msra.mxu0 %v5304_v14 }
 0x405   :  { %v692_v20 = vsel %vm682_vm4, %v691_v18, 0.0  ;;  %5306 = vmatprep.subr.bf16.mxu0 %v8373_v0  ;;  %v857_v18 = vld [vmem:[#allocation20 + $0x20] sm:$0xff] }
 0x406   :  { %v685_v21 = vadd.f32 %v684_v19, %v683_v17  ;;  %v693_v22 = vrot.slane %v692_v20, 4  ;;  %v858_v19 = vld [vmem:[#allocation20 + $0x28] sm:$0xff] }
 0x408   :  { %v686_v23 = vrot.slane %v685_v21, 2  ;;  %v694_v24 = vadd.f32 %v693_v22, %v692_v20  ;;  %v5310_v20 = vpack.c.bf16 %v858_v19, %v857_v18  ;;  %v860_v22 = vld [vmem:[#allocation20 + $0x38] sm:$0xff]  ;;  %v5536_v18 = vld [vmem:[%s8526_s25 + $0x24] ss:$16 sps:$4 sm:$0xff]  }
 0x409   :  { %v5531_v19 = vld [vmem:[#allocation26 + $0xe8] ss:$16 sps:$4 sm:$0xff]  }
 0x40a   :  { %v687_v25 = vadd.f32 %v686_v23, %v685_v21  ;;  %v695_v26 = vrot.slane %v694_v24, 2  ;;  %v859_v21 = vld [vmem:[#allocation20 + $0x30] sm:$0xff] }
 0x40b   :  { %v5313_v23 = vpack.c.bf16 %v860_v22, %v859_v21  ;;  %v5534_v21 = vld [vmem:[%s8526_s25 + $0x20] ss:$16 sps:$4 sm:$0xff]   ;;  %v5542_v22 = vld [vmem:[%s8526_s25 + $0x44] ss:$16 sps:$4 sm:$0xff]  }
 0x40c   :  { %v688_v27 = vrot.slane %v687_v25, 1  ;;  %v696_v28 = vadd.f32 %v695_v26, %v694_v24  ;;  %v861_v24 = vld [vmem:[#allocation20 + $0x40] sm:$0x3f]  ;;  %v4733_v26 = vld [vmem:[#allocation16] ss:$0 sm:$0xff] }
 0x40e   :  { %v689_v29 = vadd.f32 %v688_v27, %v687_v25  ;;  %v697_v30 = vrot.slane %v696_v28, 1  ;;  %v5530_v25 = vld [vmem:[%s8526_s25 + $0x4] ss:$16 sps:$4 sm:$0xff]  }
 0x410   :  { %v690_v31 = vmul.f32 0.125, %v689_v29  ;;  %v698_v32 = vadd.f32 %v697_v30, %v696_v28 }
 0x412   :  { %v699_v33 = vmul.f32 0.125, %v698_v32  ;;  %v700_v34 = vmul.f32 %v690_v31, %v690_v31  ;;  %v703_v38 = vsub.f32 %v677_v15, %v690_v31  ;;  %v855_v15 = vld [vmem:[#allocation20 + $0x10] sm:$0xff] }
 0x413   :  { %v5307_v17 = vpack.c.bf16 %v856_v16, %v855_v15  ;;  %v5533_v15 = vld [vmem:[#allocation26 + $0xec] ss:$16 sps:$4 sm:$0xff]  }
 0x414   :  { %v701_v35 = vsub.f32 %v699_v33, %v700_v34  ;;  %v5528_v16 = vld [vmem:[%s8526_s25] ss:$16 sps:$4 sm:$0xff]  }
 0x415   :  { %5308 = vmatpush3.bf16.msra.mxu0 %v5307_v17 }
 0x416   :  { %v702_v36 = vmax.f32 %v701_v35, 0.0  ;;  %5309 = vmatprep.subr.bf16.mxu0 %v8373_v0 }
 0x418   :  { %v704_v37 = vadd.f32 1e-05, %v702_v36 }
 0x419   :  { %5311 = vmatpush3.bf16.msra.mxu0 %v5310_v20  ;;  %v7153_v20 = vld [vmem:[%s8527_s11 + $0xc] ss:$16 sps:$4 sm:$0xff]  }
 0x41a   :  { %5677 = vrsqrt.f32 %v704_v37  ;;  %5312 = vmatprep.subr.bf16.mxu0 %v8373_v0  ;;  %8528 = vst [vmem:[#allocation80_spill] sm:$0xff] %v7153_v20 }
 0x41d   :  { %5314 = vmatpush3.bf16.msra.mxu0 %v5313_v23  ;;  %v7159_v23 = vld [vmem:[%s8527_s11 + $0x8] ss:$16 sps:$4 sm:$0xff]  }
 0x41e   :  { %5121 = vmatprep.subr.mxu0 %v8371_v1  ;;  %8529 = vst [vmem:[#allocation81_spill] sm:$0xff] %v7159_v23 }
 0x421   :  { %5122 = vmatpush3.msk.msra.mxu0 %vm606_vm2, %v861_v24  ;;  %v7163_v24 = vld [vmem:[%s8527_s11 + $0x2c] ss:$16 sps:$4 sm:$0xff]  }
 0x422   :  { %1249 = vmatprep.subr.bf16.mxu0 %v5530_v25  ;;  %8530 = vst [vmem:[#allocation82_spill] sm:$0xff] %v7163_v24  ;;  %v5540_v25 = vld [vmem:[%s8526_s25 + $0x40] ss:$16 sps:$4 sm:$0xff]  }
 0x424   :  { %v5678_v39 = vpop.eup %5677 }
 0x425   :  { %v706_v41 = vmul.f32 %v5678_v39, %v703_v38 }
 0x427   :  { %v713_v43 = vmul.f32 %v4731_v40, %v706_v41 }
 0x429   :  { %v720_v46 = vadd.f32 %v4732_v42, %v713_v43  ;;  %v4741_v42 = vld [vmem:[#allocation25] ss:$0 sm:$0xff] }
 0x42b   :  { %v721_v48 = vmax.f32 %v720_v46, 0.0 }
 0x42d   :  { %946 = vst.msk [vmem:[#allocation39] sm:$0xff] %vm682_vm4, %v721_v48  ;;  %5103 = vmatmul.mubr.msk.f32.vlgmr.msra.gmra.mrb[2].mxu1 %vm682_vm4, %v721_v48 }
 0x42e   :  { %5317 = vmatpush3.bf16.msra.mxu1 %v5316_v47  ;;  %5140 = vmatprep.mubr.msk.f32.mxu1 %vm6695_vm0, %v8371_v1 }
 0x42f   :  { %5318 = vmatprep.subr.bf16.mxu1 %v8373_v0 }
 0x432   :  { %5320 = vmatpush3.bf16.msra.mxu1 %v5319_v51 }
 0x433   :  { %5321 = vmatprep.subr.bf16.mxu1 %v8373_v0  ;;  %v7412_v0 = vld [vmem:[#allocation28 + $0xe4] ss:$16 sps:$4 sm:$0xff]  }
 0x436   :  { %5323 = vmatpush3.bf16.msra.mxu1 %v5322_v54 }
 0x437   :  { %5138 = vmatprep.subr.mxu1 %v8371_v1  ;;  %v7409_v1 = vld [vmem:[#allocation28 + $0xc0] ss:$16 sps:$4 sm:$0xff]  }
 0x43a   :  { %5139 = vmatpush3.msk.msra.mxu1 %vm606_vm2, %v953_v55 }
 0x43b   :  { %5141 = vmatmul.mubr.msk.f32.vlgmr.msra.gmra.mrb[4].mxu1 %vm682_vm4, %v721_v48  ;;  %1290 = vmatprep.subr.bf16.mxu1 %v5485_v56  ;;  %v5510_v56 = vld [vmem:[#allocation26 + $0x28] ss:$16 sps:$4 sm:$0xff]  }
 0x43c   :  { %1291 = vmatpush1.bf16.msra.mxu1 %v5483_v57  ;;  %1322 = vmatprep.mubr.bf16.mxu1 %v8375_v11  ;;  %v5515_v57 = vld [vmem:[#allocation26 + $0x4c] ss:$16 sps:$4 sm:$0xff]  }
 0x43d   :  { %1292 = vmatprep.subr.bf16.mxu1 %v5488_v58 }
 0x440   :  { %1293 = vmatpush1.bf16.msra.mxu1 %v5486_v59 }
 0x441   :  { %1294 = vmatprep.subr.bf16.mxu1 %v5491_v60  ;;  %v5513_v60 = vld [vmem:[#allocation26 + $0x48] ss:$16 sps:$4 sm:$0xff]  }
 0x444   :  { %1295 = vmatpush1.bf16.msra.mxu1 %v5489_v61  ;;  %v5518_v61 = vld [vmem:[#allocation26 + $0x6c] ss:$16 sps:$4 sm:$0xff]  }
 0x445   :  { %1296 = vmatprep.subr.bf16.mxu1 %v5494_v62  ;;  %v5516_v62 = vld [vmem:[#allocation26 + $0x68] ss:$16 sps:$4 sm:$0xff]  }
 0x448   :  { %1297 = vmatpush1.bf16.msra.mxu1 %v5492_v63  ;;  %v5521_v63 = vld [vmem:[#allocation26 + $0x8c] ss:$16 sps:$4 sm:$0xff]  }
 0x449   :  { %1298 = vmatprep.subr.bf16.mxu1 %v5497_v2  ;;  %v5519_v2 = vld [vmem:[#allocation26 + $0x88] ss:$16 sps:$4 sm:$0xff]  }
 0x44c   :  { %1299 = vmatpush1.bf16.msra.mxu1 %v5495_v3  ;;  %v5524_v3 = vld [vmem:[#allocation26 + $0xac] ss:$16 sps:$4 sm:$0xff]  }
 0x44d   :  { %1300 = vmatprep.subr.bf16.mxu1 %v5500_v4 }
 0x450   :  { %1301 = vmatpush1.bf16.msra.mxu1 %v5498_v5 }
 0x451   :  { %1302 = vmatprep.subr.bf16.mxu1 %v5503_v6  ;;  %v4736_v6 = vld [vmem:[#allocation17] ss:$0 sm:$0xff] }
 0x454   :  { %1303 = vmatpush1.bf16.msra.mxu1 %v5501_v7  ;;  %v5522_v7 = vld [vmem:[#allocation26 + $0xa8] ss:$16 sps:$4 sm:$0xff]  }
 0x455   :  { %1304 = vmatprep.subr.bf16.mxu1 %v5506_v8 }
 0x458   :  { %1305 = vmatpush1.bf16.msra.mxu1 %v5504_v9  ;;  %v5527_v9 = vld [vmem:[#allocation26 + $0xcc] ss:$16 sps:$4 sm:$0xff]  }
 0x459   :  { %1586 = vmatprep.subr.bf16.mxu1 %v5509_v10  ;;  %v4737_v10 = vld [vmem:[#allocation19] ss:$0 sm:$0xff] }
 0x500   :  { %v808_v27 = vpop.f32.mrb[2].mxu1 }
 0x501   :  { %v809_v28 = vadd.f32 %v4733_v26, %v808_v27  ;;  %v5104_v29 = vpop.f32.mrb[3].mxu1  ;;  %v5548_v26 = vld [vmem:[%s8526_s25 + $0x64] ss:$16 sps:$4 sm:$0xff]   ;;  %v7170_v27 = vld [vmem:[%s8527_s11 + $0x28] ss:$16 sps:$4 sm:$0xff]  }
 0x502   :  { %8531 = vst [vmem:[#allocation83_spill] sm:$0xff] %v7170_v27  ;;  %v5546_v29 = vld [vmem:[%s8526_s25 + $0x60] ss:$16 sps:$4 sm:$0xff]  }
 0x503   :  { %v814_v30 = vsel %vm546_vm3, %v809_v28, 0.0  ;;  %v822_v31 = vmul.f32 %v809_v28, %v809_v28 }
 0x504   :  { %v815_v32 = vrot.slane %v814_v30, 4 }
 0x505   :  { %v823_v33 = vsel %vm546_vm3, %v822_v31, 0.0  ;;  %v7181_v31 = vld [vmem:[%s8527_s11 + $0x48] ss:$16 sps:$4 sm:$0xff]  }
 0x506   :  { %v816_v34 = vadd.f32 %v815_v32, %v814_v30  ;;  %v824_v35 = vrot.slane %v823_v33, 4  ;;  %v5554_v30 = vld [vmem:[%s8526_s25 + $0x84] ss:$16 sps:$4 sm:$0xff]   ;;  %8533 = vst [vmem:[#allocation85_spill] sm:$0xff] %v7181_v31  ;;  %v7185_v32 = vld [vmem:[%s8527_s11 + $0x6c] ss:$16 sps:$4 sm:$0xff]  }
 0x507   :  { %8534 = vst [vmem:[#allocation86_spill] sm:$0xff] %v7185_v32 }
 0x508   :  { %v817_v36 = vrot.slane %v816_v34, 2  ;;  %v825_v37 = vadd.f32 %v824_v35, %v823_v33  ;;  %v5552_v33 = vld [vmem:[%s8526_s25 + $0x80] ss:$16 sps:$4 sm:$0xff]   ;;  %v7191_v35 = vld [vmem:[%s8527_s11 + $0x68] ss:$16 sps:$4 sm:$0xff]  }
 0x509   :  { %8535 = vst [vmem:[#allocation87_spill] sm:$0xff] %v7191_v35 }
 0x50a   :  { %v818_v38 = vadd.f32 %v817_v36, %v816_v34  ;;  %v826_v39 = vrot.slane %v825_v37, 2  ;;  %v5560_v34 = vld [vmem:[%s8526_s25 + $0xa4] ss:$16 sps:$4 sm:$0xff]   ;;  %v7195_v36 = vld [vmem:[%s8527_s11 + $0x8c] ss:$16 sps:$4 sm:$0xff]  }
 0x50b   :  { %8536 = vst [vmem:[#allocation88_spill] sm:$0xff] %v7195_v36 }
 0x50c   :  { %v819_v40 = vrot.slane %v818_v38, 1  ;;  %v827_v41 = vadd.f32 %v826_v39, %v825_v37  ;;  %v5558_v37 = vld [vmem:[%s8526_s25 + $0xa0] ss:$16 sps:$4 sm:$0xff]   ;;  %v7201_v39 = vld [vmem:[%s8527_s11 + $0x88] ss:$16 sps:$4 sm:$0xff]  }
 0x50d   :  { %8537 = vst [vmem:[#allocation89_spill] sm:$0xff] %v7201_v39 }
 0x50e   :  { %v820_v43 = vadd.f32 %v819_v40, %v818_v38  ;;  %v828_v44 = vrot.slane %v827_v41, 1  ;;  %v1030_v45 = vpop.f32.mrb[4].mxu1  ;;  %v5566_v38 = vld [vmem:[%s8526_s25 + $0xc4] ss:$16 sps:$4 sm:$0xff]   ;;  %v7205_v40 = vld [vmem:[%s8527_s11 + $0xac] ss:$16 sps:$4 sm:$0xff]  }
 0x50f   :  { %v1031_v46 = vadd.f32 %v4741_v42, %v1030_v45  ;;  %v5142_v47 = vpop.f32.mrb[5].mxu1  ;;  %8538 = vst [vmem:[#allocation90_spill] sm:$0xff] %v7205_v40  ;;  %v5572_v42 = vld [vmem:[%s8526_s25 + $0xe4] ss:$16 sps:$4 sm:$0xff]   ;;  %v5570_v45 = vld [vmem:[%s8526_s25 + $0xe0] ss:$16 sps:$4 sm:$0xff]  }
 0x510   :  { %v821_v48 = vmul.f32 0.125, %v820_v43  ;;  %v829_v49 = vadd.f32 %v828_v44, %v827_v41  ;;  %v5564_v41 = vld [vmem:[%s8526_s25 + $0xc0] ss:$16 sps:$4 sm:$0xff]   ;;  %v7211_v43 = vld [vmem:[%s8527_s11 + $0xa8] ss:$16 sps:$4 sm:$0xff]  }
 0x511   :  { %v7145_v51 = vpack.c.bf16 %v1031_v46, %v1031_v46  ;;  %8539 = vst [vmem:[#allocation91_spill] sm:$0xff] %v7211_v43  ;;  %v7215_v44 = vld [vmem:[%s8527_s11 + $0xcc] ss:$16 sps:$4 sm:$0xff]   ;;  %v7220_v47 = vld [vmem:[%s8527_s11 + $0xc8] ss:$16 sps:$4 sm:$0xff]  }
 0x512   :  { %v830_v53 = vmul.f32 0.125, %v829_v49  ;;  %v831_v54 = vmul.f32 %v821_v48, %v821_v48  ;;  %v834_v4 = vsub.f32 %v809_v28, %v821_v48  ;;  %v7175_v28 = vld [vmem:[%s8527_s11 + $0x4c] ss:$16 sps:$4 sm:$0xff]   ;;  %8540 = vst [vmem:[#allocation92_spill] sm:$0xff] %v7215_v44  ;;  %8541 = vst [vmem:[#allocation93_spill] sm:$0xff] %v7220_v47 }
 0x513   :  { %1323 = vmatmul.mubr.bf16.vlgmr.msra.gmra.mrb[8].mxu1 %v7145_v51  ;;  %8532 = vst [vmem:[#allocation84_spill] sm:$0xff] %v7175_v28  ;;  %v5578_v46 = vld [vmem:[#allocation26 + $0x4] ss:$16 sps:$4 sm:$0xff]   ;;  %v5576_v49 = vld [vmem:[#allocation26] ss:$16 sps:$4 sm:$0xff]  }
 0x514   :  { %v832_v55 = vsub.f32 %v830_v53, %v831_v54  ;;  %1587 = vmatpush1.bf16.msra.mxu1 %v5507_v50  ;;  %1618 = vmatprep.mubr.bf16.mxu1 %v8375_v11  ;;  %v7224_v48 = vld [vmem:[%s8527_s11 + $0xec] ss:$16 sps:$4 sm:$0xff]   ;;  %v7232_v53 = vld [vmem:[#allocation28 + $0xc] ss:$16 sps:$4 sm:$0xff]   ;;  %v5582_v54 = vld [vmem:[#allocation26 + $0x20] ss:$16 sps:$4 sm:$0xff]  }
 0x515   :  { %1588 = vmatprep.subr.bf16.mxu1 %v5512_v52  ;;  %8542 = vst [vmem:[#allocation94_spill] sm:$0xff] %v7224_v48  ;;  %v5584_v50 = vld [vmem:[#allocation26 + $0x24] ss:$16 sps:$4 sm:$0xff]   ;;  %8544 = vst [vmem:[#allocation96_spill] sm:$0xff] %v7232_v53 }
 0x516   :  { %v833_v58 = vmax.f32 %v832_v55, 0.0  ;;  %v7228_v52 = vld [vmem:[%s8527_s11 + $0xe8] ss:$16 sps:$4 sm:$0xff]  }
 0x517   :  { %8543 = vst [vmem:[#allocation95_spill] sm:$0xff] %v7228_v52  ;;  %v5590_v55 = vld [vmem:[#allocation26 + $0x44] ss:$16 sps:$4 sm:$0xff]  }
 0x518   :  { %v835_v59 = vadd.f32 1e-05, %v833_v58  ;;  %1589 = vmatpush1.bf16.msra.mxu1 %v5510_v56  ;;  %v7236_v56 = vld [vmem:[#allocation28 + $0x8] ss:$16 sps:$4 sm:$0xff]   ;;  %v5588_v58 = vld [vmem:[#allocation26 + $0x40] ss:$16 sps:$4 sm:$0xff]  }
 0x519   :  { %1590 = vmatprep.subr.bf16.mxu1 %v5515_v57  ;;  %v7239_v57 = vld [vmem:[#allocation28 + $0x2c] ss:$16 sps:$4 sm:$0xff]  }
 0x51a   :  { %5679 = vrsqrt.f32 %v835_v59  ;;  %v5596_v59 = vld [vmem:[#allocation26 + $0x64] ss:$16 sps:$4 sm:$0xff]  }
 0x51c   :  { %1591 = vmatpush1.bf16.msra.mxu1 %v5513_v60  ;;  %v7243_v60 = vld [vmem:[#allocation28 + $0x28] ss:$16 sps:$4 sm:$0xff]  }
 0x51d   :  { %1592 = vmatprep.subr.bf16.mxu1 %v5518_v61  ;;  %v7247_v61 = vld [vmem:[#allocation28 + $0x4c] ss:$16 sps:$4 sm:$0xff]  }
 0x520   :  { %1593 = vmatpush1.bf16.msra.mxu1 %v5516_v62  ;;  %v5594_v62 = vld [vmem:[#allocation26 + $0x60] ss:$16 sps:$4 sm:$0xff]  }
 0x521   :  { %1594 = vmatprep.subr.bf16.mxu1 %v5521_v63  ;;  %v5602_v63 = vld [vmem:[#allocation26 + $0x84] ss:$16 sps:$4 sm:$0xff]  }
 0x524   :  { %v5680_v5 = vpop.eup %5679  ;;  %1595 = vmatpush1.bf16.msra.mxu1 %v5519_v2  ;;  %v7250_v2 = vld [vmem:[#allocation28 + $0x48] ss:$16 sps:$4 sm:$0xff]  }
 0x525   :  { %v837_v8 = vmul.f32 %v5680_v5, %v834_v4  ;;  %1596 = vmatprep.subr.bf16.mxu1 %v5524_v3  ;;  %v7253_v3 = vld [vmem:[#allocation28 + $0x6c] ss:$16 sps:$4 sm:$0xff]   ;;  %v5600_v4 = vld [vmem:[#allocation26 + $0x80] ss:$16 sps:$4 sm:$0xff]   ;;  %v5608_v5 = vld [vmem:[#allocation26 + $0xa4] ss:$16 sps:$4 sm:$0xff]  }
 0x527   :  { %v844_v12 = vmul.f32 %v4736_v6, %v837_v8  ;;  %v7256_v6 = vld [vmem:[#allocation28 + $0x68] ss:$16 sps:$4 sm:$0xff]   ;;  %v5606_v8 = vld [vmem:[#allocation26 + $0xa0] ss:$16 sps:$4 sm:$0xff]  }
 0x528   :  { %1597 = vmatpush1.bf16.msra.mxu1 %v5522_v7  ;;  %v7259_v7 = vld [vmem:[#allocation28 + $0x8c] ss:$16 sps:$4 sm:$0xff]  }
 0x529   :  { %v851_v14 = vadd.f32 %v4737_v10, %v844_v12  ;;  %1598 = vmatprep.subr.bf16.mxu1 %v5527_v9  ;;  %v5614_v9 = vld [vmem:[#allocation26 + $0xc4] ss:$16 sps:$4 sm:$0xff]   ;;  %v7262_v10 = vld [vmem:[#allocation28 + $0x88] ss:$16 sps:$4 sm:$0xff]   ;;  %v7265_v12 = vld [vmem:[#allocation28 + $0xac] ss:$16 sps:$4 sm:$0xff]  }
 0x52b   :  { %v852_v17 = vmax.f32 %v851_v14, 0.0  ;;  %v5620_v14 = vld [vmem:[#allocation26 + $0xe4] ss:$16 sps:$4 sm:$0xff]  }
 0x52c   :  { %1599 = vmatpush1.bf16.msra.mxu1 %v5525_v13  ;;  %v5612_v13 = vld [vmem:[#allocation26 + $0xc0] ss:$16 sps:$4 sm:$0xff]  }
 0x52d   :  { %5124 = vmatmul.mubr.msk.f32.vlgmr.msra.gmra.mrb[2].mxu0 %vm546_vm3, %v852_v17  ;;  %1600 = vmatprep.subr.bf16.mxu1 %v5533_v15  ;;  %v7268_v15 = vld [vmem:[#allocation28 + $0xa8] ss:$16 sps:$4 sm:$0xff]   ;;  %v5618_v17 = vld [vmem:[#allocation26 + $0xe0] ss:$16 sps:$4 sm:$0xff]  }
 0x52e   :  { %1250 = vmatpush1.bf16.msra.mxu0 %v5528_v16  ;;  %1281 = vmatprep.mubr.bf16.mxu0 %v8375_v11  ;;  %v7271_v16 = vld [vmem:[#allocation28 + $0xcc] ss:$16 sps:$4 sm:$0xff]  }
 0x52f   :  { %1251 = vmatprep.subr.bf16.mxu0 %v5536_v18  ;;  %v7274_v18 = vld [vmem:[%s8527_s11 + $0x4] ss:$16 sps:$4 sm:$0xff]  }
 0x530   :  { %1601 = vmatpush1.bf16.msra.mxu1 %v5531_v19  ;;  %v7277_v19 = vld [vmem:[#allocation28 + $0xc8] ss:$16 sps:$4 sm:$0xff]  }
 0x531   :  { %1860 = vmatprep.subr.bf16.mxu1 %v7153_v20 }
 0x532   :  { %1252 = vmatpush1.bf16.msra.mxu0 %v5534_v21  ;;  %v7280_v21 = vld [vmem:[#allocation28 + $0xec] ss:$16 sps:$4 sm:$0xff]  }
 0x533   :  { %1619 = vmatmul.mubr.bf16.vlgmr.msra.gmra.mrb[12].mxu1 %v7145_v51  ;;  %1253 = vmatprep.subr.bf16.mxu0 %v5542_v22  ;;  %v7283_v22 = vld [vmem:[%s8527_s11] ss:$16 sps:$4 sm:$0xff]  }
 0x534   :  { %1861 = vmatpush1.bf16.msra.mxu1 %v7159_v23  ;;  %1892 = vmatprep.mubr.bf16.mxu1 %v8375_v11  ;;  %8545 = vst [vmem:[#allocation97_spill] sm:$0xff] %v7283_v22 }
 0x535   :  { %1862 = vmatprep.subr.bf16.mxu1 %v7163_v24 }
 0x536   :  { %1254 = vmatpush1.bf16.msra.mxu0 %v5540_v25  ;;  %v7287_v25 = vld [vmem:[%s8527_s11 + $0x24] ss:$16 sps:$4 sm:$0xff]  }
 0x537   :  { %1255 = vmatprep.subr.bf16.mxu0 %v5548_v26  ;;  %8546 = vst [vmem:[#allocation98_spill] sm:$0xff] %v7287_v25  ;;  %v7290_v26 = vld [vmem:[#allocation28 + $0xe8] ss:$16 sps:$4 sm:$0xff]  }
 0x538   :  { %1863 = vmatpush1.bf16.msra.mxu1 %v7170_v27 }
 0x539   :  { %1864 = vmatprep.subr.bf16.mxu1 %v7175_v28 }
 0x53a   :  { %1256 = vmatpush1.bf16.msra.mxu0 %v5546_v29  ;;  %v7296_v29 = vld [vmem:[%s8527_s11 + $0x20] ss:$16 sps:$4 sm:$0xff]  }
 0x53b   :  { %1257 = vmatprep.subr.bf16.mxu0 %v5554_v30  ;;  %8547 = vst [vmem:[#allocation99_spill] sm:$0xff] %v7296_v29  ;;  %v7301_v30 = vld [vmem:[%s8527_s11 + $0x44] ss:$16 sps:$4 sm:$0xff]  }
 0x53c   :  { %1865 = vmatpush1.bf16.msra.mxu1 %v7181_v31  ;;  %8548 = vst [vmem:[#allocation100_spill] sm:$0xff] %v7301_v30 }
 0x53d   :  { %1866 = vmatprep.subr.bf16.mxu1 %v7185_v32 }
 0x53e   :  { %1258 = vmatpush1.bf16.msra.mxu0 %v5552_v33  ;;  %v7312_v33 = vld [vmem:[%s8527_s11 + $0x64] ss:$16 sps:$4 sm:$0xff]  }
 0x53f   :  { %1259 = vmatprep.subr.bf16.mxu0 %v5560_v34  ;;  %8550 = vst [vmem:[#allocation102_spill] sm:$0xff] %v7312_v33  ;;  %v7319_v34 = vld [vmem:[%s8527_s11 + $0x60] ss:$16 sps:$4 sm:$0xff]  }
 0x540   :  { %1867 = vmatpush1.bf16.msra.mxu1 %v7191_v35  ;;  %8551 = vst [vmem:[#allocation103_spill] sm:$0xff] %v7319_v34 }
 0x541   :  { %1868 = vmatprep.subr.bf16.mxu1 %v7195_v36 }
 0x542   :  { %1260 = vmatpush1.bf16.msra.mxu0 %v5558_v37  ;;  %v7323_v37 = vld [vmem:[%s8527_s11 + $0x84] ss:$16 sps:$4 sm:$0xff]  }
 0x543   :  { %1261 = vmatprep.subr.bf16.mxu0 %v5566_v38  ;;  %8552 = vst [vmem:[#allocation104_spill] sm:$0xff] %v7323_v37  ;;  %v7329_v38 = vld [vmem:[%s8527_s11 + $0x80] ss:$16 sps:$4 sm:$0xff]  }
 0x544   :  { %1869 = vmatpush1.bf16.msra.mxu1 %v7201_v39  ;;  %8553 = vst [vmem:[#allocation105_spill] sm:$0xff] %v7329_v38 }
 0x545   :  { %1870 = vmatprep.subr.bf16.mxu1 %v7205_v40 }
 0x546   :  { %1262 = vmatpush1.bf16.msra.mxu0 %v5564_v41  ;;  %v7333_v41 = vld [vmem:[%s8527_s11 + $0xa4] ss:$16 sps:$4 sm:$0xff]  }
 0x547   :  { %1263 = vmatprep.subr.bf16.mxu0 %v5572_v42  ;;  %8554 = vst [vmem:[#allocation106_spill] sm:$0xff] %v7333_v41  ;;  %v7339_v42 = vld [vmem:[%s8527_s11 + $0xa0] ss:$16 sps:$4 sm:$0xff]  }
 0x548   :  { %1871 = vmatpush1.bf16.msra.mxu1 %v7211_v43  ;;  %8555 = vst [vmem:[#allocation107_spill] sm:$0xff] %v7339_v42 }
 0x549   :  { %1872 = vmatprep.subr.bf16.mxu1 %v7215_v44 }
 0x54a   :  { %1264 = vmatpush1.bf16.msra.mxu0 %v5570_v45  ;;  %v7343_v45 = vld [vmem:[%s8527_s11 + $0xc4] ss:$16 sps:$4 sm:$0xff]  }
 0x54b   :  { %1545 = vmatprep.subr.bf16.mxu0 %v5578_v46  ;;  %8556 = vst [vmem:[#allocation108_spill] sm:$0xff] %v7343_v45  ;;  %v7349_v46 = vld [vmem:[%s8527_s11 + $0xc0] ss:$16 sps:$4 sm:$0xff]  }
 0x54c   :  { %1873 = vmatpush1.bf16.msra.mxu1 %v7220_v47  ;;  %8557 = vst [vmem:[#allocation109_spill] sm:$0xff] %v7349_v46 }
 0x54d   :  { %1282 = vmatmul.mubr.bf16.vlgmr.msra.gmra.mrb[4].mxu0 %v7145_v51  ;;  %1874 = vmatprep.subr.bf16.mxu1 %v7224_v48 }
 0x54e   :  { %1546 = vmatpush1.bf16.msra.mxu0 %v5576_v49  ;;  %1577 = vmatprep.mubr.bf16.mxu0 %v8375_v11  ;;  %v7353_v49 = vld [vmem:[%s8527_s11 + $0xe4] ss:$16 sps:$4 sm:$0xff]  }
 0x54f   :  { %1547 = vmatprep.subr.bf16.mxu0 %v5584_v50  ;;  %8558 = vst [vmem:[#allocation110_spill] sm:$0xff] %v7353_v49  ;;  %v7359_v50 = vld [vmem:[%s8527_s11 + $0xe0] ss:$16 sps:$4 sm:$0xff]  }
 0x550   :  { %1875 = vmatpush1.bf16.msra.mxu1 %v7228_v52  ;;  %8559 = vst [vmem:[#allocation111_spill] sm:$0xff] %v7359_v50 }
 0x551   :  { %2162 = vmatprep.subr.bf16.mxu1 %v7232_v53 }
 0x552   :  { %1548 = vmatpush1.bf16.msra.mxu0 %v5582_v54  ;;  %v7362_v54 = vld [vmem:[#allocation28 + $0x4] ss:$16 sps:$4 sm:$0xff]  }
 0x553   :  { %1893 = vmatmul.mubr.bf16.vlgmr.msra.gmra.mrb[16].mxu1 %v8375_v11  ;;  %1549 = vmatprep.subr.bf16.mxu0 %v5590_v55  ;;  %8560 = vst [vmem:[#allocation112_spill] sm:$0xff] %v7362_v54  ;;  %v7367_v55 = vld [vmem:[#allocation28] ss:$16 sps:$4 sm:$0xff]  }
 0x554   :  { %2163 = vmatpush1.bf16.msra.mxu1 %v7236_v56  ;;  %2194 = vmatprep.mubr.bf16.mxu1 %v8375_v11 }
 0x555   :  { %2164 = vmatprep.subr.bf16.mxu1 %v7239_v57 }
 0x556   :  { %1550 = vmatpush1.bf16.msra.mxu0 %v5588_v58  ;;  %v7370_v58 = vld [vmem:[#allocation28 + $0x24] ss:$16 sps:$4 sm:$0xff]  }
 0x557   :  { %1551 = vmatprep.subr.bf16.mxu0 %v5596_v59  ;;  %v7376_v59 = vld [vmem:[#allocation28 + $0x20] ss:$16 sps:$4 sm:$0xff]  }
 0x558   :  { %2165 = vmatpush1.bf16.msra.mxu1 %v7243_v60 }
 0x559   :  { %2166 = vmatprep.subr.bf16.mxu1 %v7247_v61 }
 0x55a   :  { %1552 = vmatpush1.bf16.msra.mxu0 %v5594_v62  ;;  %v7380_v62 = vld [vmem:[#allocation28 + $0x44] ss:$16 sps:$4 sm:$0xff]  }
 0x55b   :  { %1553 = vmatprep.subr.bf16.mxu0 %v5602_v63  ;;  %v7385_v63 = vld [vmem:[#allocation28 + $0x40] ss:$16 sps:$4 sm:$0xff]  }
 0x55c   :  { %2167 = vmatpush1.bf16.msra.mxu1 %v7250_v2 }
 0x55d   :  { %2168 = vmatprep.subr.bf16.mxu1 %v7253_v3 }
 0x55e   :  { %1554 = vmatpush1.bf16.msra.mxu0 %v5600_v4  ;;  %v7388_v4 = vld [vmem:[#allocation28 + $0x64] ss:$16 sps:$4 sm:$0xff]  }
 0x55f   :  { %1555 = vmatprep.subr.bf16.mxu0 %v5608_v5  ;;  %v7391_v5 = vld [vmem:[#allocation28 + $0x60] ss:$16 sps:$4 sm:$0xff]  }
 0x560   :  { %2169 = vmatpush1.bf16.msra.mxu1 %v7256_v6 }
 0x561   :  { %2170 = vmatprep.subr.bf16.mxu1 %v7259_v7 }
 0x562   :  { %1556 = vmatpush1.bf16.msra.mxu0 %v5606_v8  ;;  %v7394_v8 = vld [vmem:[#allocation28 + $0x84] ss:$16 sps:$4 sm:$0xff]  }
 0x563   :  { %1557 = vmatprep.subr.bf16.mxu0 %v5614_v9  ;;  %v7397_v9 = vld [vmem:[#allocation28 + $0x80] ss:$16 sps:$4 sm:$0xff]  }
 0x564   :  { %2171 = vmatpush1.bf16.msra.mxu1 %v7262_v10 }
 0x565   :  { %2172 = vmatprep.subr.bf16.mxu1 %v7265_v12 }
 0x566   :  { %1558 = vmatpush1.bf16.msra.mxu0 %v5612_v13  ;;  %v7400_v13 = vld [vmem:[#allocation28 + $0xa4] ss:$16 sps:$4 sm:$0xff]  }
 0x567   :  { %1559 = vmatprep.subr.bf16.mxu0 %v5620_v14  ;;  %v7403_v14 = vld [vmem:[#allocation28 + $0xa0] ss:$16 sps:$4 sm:$0xff]  }
 0x568   :  { %2173 = vmatpush1.bf16.msra.mxu1 %v7268_v15 }
 0x569   :  { %2174 = vmatprep.subr.bf16.mxu1 %v7271_v16 }
 0x56a   :  { %1560 = vmatpush1.bf16.msra.mxu0 %v5618_v17  ;;  %v7406_v17 = vld [vmem:[#allocation28 + $0xc4] ss:$16 sps:$4 sm:$0xff]  }
 0x56b   :  { %1819 = vmatprep.subr.bf16.mxu0 %v7274_v18 }
 0x56c   :  { %2175 = vmatpush1.bf16.msra.mxu1 %v7277_v19 }
 0x56d   :  { %1578 = vmatmul.mubr.bf16.vlgmr.msra.gmra.mrb[8].mxu0 %v7145_v51  ;;  %2176 = vmatprep.subr.bf16.mxu1 %v7280_v21  ;;  %v7307_v51 = vld [vmem:[%s8527_s11 + $0x40] ss:$16 sps:$4 sm:$0xff]  }
 0x56e   :  { %1820 = vmatpush1.bf16.msra.mxu0 %v7283_v22  ;;  %1851 = vmatprep.mubr.bf16.mxu0 %v8375_v11  ;;  %8549 = vst [vmem:[#allocation101_spill] sm:$0xff] %v7307_v51 }
 0x56f   :  { %1821 = vmatprep.subr.bf16.mxu0 %v7287_v25 }
 0x570   :  { %2177 = vmatpush1.bf16.msra.mxu1 %v7290_v26 }
 0x571   :  { %2285 = vmatprep.subr.bf16.mxu1 %v7153_v20 }
 0x572   :  { %1822 = vmatpush1.bf16.msra.mxu0 %v7296_v29 }
 0x573   :  { %2195 = vmatmul.mubr.bf16.vlgmr.msra.gmra.mrb[20].mxu1 %v8375_v11  ;;  %1823 = vmatprep.subr.bf16.mxu0 %v7301_v30 }
 0x574   :  { %2286 = vmatpush1.bf16.msra.mxu1 %v7159_v23  ;;  %2317 = vmatprep.mubr.bf16.mxu1 %v8375_v11 }
 0x575   :  { %2287 = vmatprep.subr.bf16.mxu1 %v7163_v24 }
 0x576   :  { %1824 = vmatpush1.bf16.msra.mxu0 %v7307_v51 }
 0x577   :  { %1825 = vmatprep.subr.bf16.mxu0 %v7312_v33 }
 0x578   :  { %2288 = vmatpush1.bf16.msra.mxu1 %v7170_v27 }
 0x579   :  { %2289 = vmatprep.subr.bf16.mxu1 %v7175_v28 }
 0x57a   :  { %1826 = vmatpush1.bf16.msra.mxu0 %v7319_v34 }
 0x57b   :  { %1827 = vmatprep.subr.bf16.mxu0 %v7323_v37 }
 0x57c   :  { %2290 = vmatpush1.bf16.msra.mxu1 %v7181_v31 }
 0x57d   :  { %2291 = vmatprep.subr.bf16.mxu1 %v7185_v32 }
 0x57e   :  { %1828 = vmatpush1.bf16.msra.mxu0 %v7329_v38 }
 0x57f   :  { %1829 = vmatprep.subr.bf16.mxu0 %v7333_v41 }
 0x580   :  { %2292 = vmatpush1.bf16.msra.mxu1 %v7191_v35 }
 0x581   :  { %2293 = vmatprep.subr.bf16.mxu1 %v7195_v36 }
 0x582   :  { %1830 = vmatpush1.bf16.msra.mxu0 %v7339_v42 }
 0x583   :  { %1831 = vmatprep.subr.bf16.mxu0 %v7343_v45 }
 0x584   :  { %2294 = vmatpush1.bf16.msra.mxu1 %v7201_v39 }
 0x585   :  { %2295 = vmatprep.subr.bf16.mxu1 %v7205_v40 }
 0x586   :  { %1832 = vmatpush1.bf16.msra.mxu0 %v7349_v46 }
 0x587   :  { %1833 = vmatprep.subr.bf16.mxu0 %v7353_v49 }
 0x588   :  { %2296 = vmatpush1.bf16.msra.mxu1 %v7211_v43  ;;  %v4738_v43 = vld [vmem:[#allocation22] ss:$0 sm:$0xff] }
 0x589   :  { %2297 = vmatprep.subr.bf16.mxu1 %v7215_v44 }
 0x58a   :  { %1834 = vmatpush1.bf16.msra.mxu0 %v7359_v50 }
 0x58b   :  { %2121 = vmatprep.subr.bf16.mxu0 %v7362_v54 }
 0x58c   :  { %2298 = vmatpush1.bf16.msra.mxu1 %v7220_v47 }
 0x58d   :  { %1852 = vmatmul.mubr.bf16.vlgmr.msra.gmra.mrb[12].mxu0 %v8375_v11  ;;  %2299 = vmatprep.subr.bf16.mxu1 %v7224_v48 }
 0x58e   :  { %2122 = vmatpush1.bf16.msra.mxu0 %v7367_v55  ;;  %2153 = vmatprep.mubr.bf16.mxu0 %v8375_v11  ;;  %v7415_v11 = vld [vmem:[#allocation28 + $0xe0] ss:$16 sps:$4 sm:$0xff]  }
 0x58f   :  { %2123 = vmatprep.subr.bf16.mxu0 %v7370_v58 }
 0x590   :  { %2300 = vmatpush1.bf16.msra.mxu1 %v7228_v52 }
 0x591   :  { %2416 = vmatprep.subr.bf16.mxu1 %v7232_v53  ;;  %v8561_v53 = vmov 0  }
 0x592   :  { %2124 = vmatpush1.bf16.msra.mxu0 %v7376_v59 }
 0x593   :  { %2125 = vmatprep.subr.bf16.mxu0 %v7380_v62 }
 0x596   :  { %2126 = vmatpush1.bf16.msra.mxu0 %v7385_v63 }
 0x597   :  { %2127 = vmatprep.subr.bf16.mxu0 %v7388_v4 }
 0x59a   :  { %2128 = vmatpush1.bf16.msra.mxu0 %v7391_v5 }
 0x59b   :  { %2129 = vmatprep.subr.bf16.mxu0 %v7394_v8 }
 0x59e   :  { %2130 = vmatpush1.bf16.msra.mxu0 %v7397_v9 }
 0x59f   :  { %2131 = vmatprep.subr.bf16.mxu0 %v7400_v13 }
 0x5a2   :  { %2132 = vmatpush1.bf16.msra.mxu0 %v7403_v14 }
 0x5a3   :  { %2133 = vmatprep.subr.bf16.mxu0 %v7406_v17 }
 0x5a6   :  { %2134 = vmatpush1.bf16.msra.mxu0 %v7409_v1 }
 0x5a7   :  { %2135 = vmatprep.subr.bf16.mxu0 %v7412_v0 }
 0x5aa   :  { %2136 = vmatpush1.bf16.msra.mxu0 %v7415_v11 }
 0x5ab   :  { %2244 = vmatprep.subr.bf16.mxu0 %v7274_v18 }
 0x5ad   :  { %2154 = vmatmul.mubr.bf16.vlgmr.msra.gmra.mrb[16].mxu0 %v8561_v53 }
 0x5ae   :  { %2245 = vmatpush1.bf16.msra.mxu0 %v7283_v22  ;;  %2276 = vmatprep.mubr.bf16.mxu0 %v8561_v53 }
 0x5af   :  { %2246 = vmatprep.subr.bf16.mxu0 %v7287_v25 }
 0x5b2   :  { %2247 = vmatpush1.bf16.msra.mxu0 %v7296_v29 }
 0x5b3   :  { %2248 = vmatprep.subr.bf16.mxu0 %v7301_v30 }
 0x5b6   :  { %2249 = vmatpush1.bf16.msra.mxu0 %v7307_v51  ;;  %v1067_v51 = vld [vmem:[%s8562_s15] sm:$0xf] }
 0x5b7   :  { %2250 = vmatprep.subr.bf16.mxu0 %v7312_v33 }
 0x5ba   :  { %2251 = vmatpush1.bf16.msra.mxu0 %v7319_v34 }
 0x5bb   :  { %2252 = vmatprep.subr.bf16.mxu0 %v7323_v37 }
 0x5be   :  { %2253 = vmatpush1.bf16.msra.mxu0 %v7329_v38 }
 0x5bf   :  { %2254 = vmatprep.subr.bf16.mxu0 %v7333_v41 }
 0x5c2   :  { %2255 = vmatpush1.bf16.msra.mxu0 %v7339_v42 }
 0x5c3   :  { %2256 = vmatprep.subr.bf16.mxu0 %v7343_v45 }
 0x5c6   :  { %2257 = vmatpush1.bf16.msra.mxu0 %v7349_v46 }
 0x5c7   :  { %2258 = vmatprep.subr.bf16.mxu0 %v7353_v49 }
 0x5ca   :  { %2259 = vmatpush1.bf16.msra.mxu0 %v7359_v50 }
 0x5cb   :  { %2375 = vmatprep.subr.bf16.mxu0 %v7362_v54 }
 0x5e6   :  { %v1324_v52 = vpop.f32.mrb[8].mxu1 }
 0x5e7   :  { %v1326_v48 = vpop.f32.mrb[9].mxu1 }
 0x5e8   :  { %v1328_v47 = vpop.f32.mrb[10].mxu1 }
 0x5e9   :  { %v1329_v44 = vpop.f32.mrb[11].mxu1 }
 0x600   :  { %v941_v40 = vpop.f32.mrb[2].mxu0 }
 0x601   :  { %v942_v39 = vadd.f32 %v4738_v43, %v941_v40  ;;  %v5125_v41 = vpop.f32.mrb[3].mxu0 }
 0x603   :  { %945 = vst.msk [vmem:[#allocation38] sm:$0xff] %vm470_vm1, %v942_v39 }
 0x606   :  { %v7439_v42 = vpop.f32.mrb[12].mxu1 }
 0x607   :  { %v7441_v45 = vpop.f32.mrb[13].mxu1 }
 0x608   :  { %v1624_v46 = vpop.f32.mrb[14].mxu1 }
 0x609   :  { %v1625_v49 = vpop.f32.mrb[15].mxu1 }
 0x60a   :  { %v1069_v49 = vlaneseq }
 0x60c   :  { %v7447_v31 = vshrl.u32 %v1069_v49, 7 }
 0x60e   :  { %v1083_v28 = vsub.s32 3, %v7447_v31  ;;  %v1079_v24 = vsub.s32 2, %v7447_v31 }
 0x610   :  { %v1084_v27 = vrot.slane %v1067_v51, %v1083_v28 }
 0x612   :  { %v7460_v20 = vadd.f32 %v1326_v48, %v1084_v27 }
 0x620   :  { %v1283_v38 = vpop.f32.mrb[4].mxu0 }
 0x621   :  { %v1285_v50 = vpop.f32.mrb[5].mxu0 }
 0x622   :  { %v1287_v36 = vpop.f32.mrb[6].mxu0 }
 0x623   :  { %v1288_v54 = vpop.f32.mrb[7].mxu0  ;;  %v1071_v36 = vsub.s32 0, %v7447_v31 }
 0x624   :  { %v1075_v54 = vsub.s32 1, %v7447_v31 }
 0x626   :  { %v1894_v37 = vpop.f32.mrb[16].mxu1 }
 0x627   :  { %v1896_v47 = vpop.f32.mrb[17].mxu1 }
 0x628   :  { %v1898_v44 = vpop.f32.mrb[18].mxu1 }
 0x629   :  { %v1899_v35 = vpop.f32.mrb[19].mxu1  ;;  %v1072_v44 = vrot.slane %v1067_v51, %v1071_v36 }
 0x62a   :  { %v1076_v35 = vrot.slane %v1067_v51, %v1075_v54 }
 0x640   :  { %v1579_v34 = vpop.f32.mrb[8].mxu0 }
 0x641   :  { %v1581_v40 = vpop.f32.mrb[9].mxu0 }
 0x642   :  { %v1583_v43 = vpop.f32.mrb[10].mxu0 }
 0x643   :  { %v1584_v41 = vpop.f32.mrb[11].mxu0  ;;  %v7453_v43 = vadd.f32 %v1283_v38, %v1072_v44  ;;  %v1080_v38 = vrot.slane %v1067_v51, %v1079_v24 }
 0x644   :  { %v7455_v41 = vadd.f32 %v1285_v50, %v1076_v35  ;;  %v1904_v50 = vadd.f32 %v1896_v47, %v7460_v20 }
 0x645   :  { %8563 = vst [vmem:[#allocation113_spill] sm:$0xff] %v7453_v43  ;;  %v7463_v44 = vadd.f32 %v1324_v52, %v1080_v38 }
 0x646   :  { %v7443_v39 = vpop.f32.mrb[20].mxu1 }
 0x647   :  { %v7445_v32 = vpop.f32.mrb[21].mxu1  ;;  %8564 = vst [vmem:[#allocation114_spill] sm:$0xff] %v7463_v44  ;;  %v1903_v35 = vadd.f32 %v1894_v37, %v7463_v44 }
 0x648   :  { %v2200_v33 = vpop.f32.mrb[22].mxu1 }
 0x649   :  { %v2201_v46 = vpop.f32.mrb[23].mxu1 }
 0x660   :  { %v1853_v30 = vpop.f32.mrb[12].mxu0 }
 0x661   :  { %v1901_v33 = vadd.f32 %v1853_v30, %v7453_v43  ;;  %v1855_v46 = vpop.f32.mrb[13].mxu0  ;;  %v4842_v30 = vmul.f32 -1.442695, %v1904_v50 }
 0x662   :  { %v1902_v49 = vadd.f32 %v1855_v46, %v7455_v41  ;;  %v1857_v29 = vpop.f32.mrb[14].mxu0 }
 0x663   :  { %v4840_v25 = vmul.f32 -1.442695, %v1901_v33  ;;  %v1858_v23 = vpop.f32.mrb[15].mxu0 }
 0x664   :  { %v4841_v22 = vmul.f32 -1.442695, %v1902_v49 }
 0x665   :  { %5681 = vpow2.f32 %v4840_v25 }
 0x666   :  { %5683 = vpow2.f32 %v4841_v22  ;;  %v1363_v22 = vld [vmem:[#allocation29] sm:$0xf] }
 0x667   :  { %5685 = vpow2.f32 %v4842_v30  ;;  %v1368_v47 = vrot.slane %v1363_v22, %v1071_v36  ;;  %v1372_v33 = vrot.slane %v1363_v22, %v1075_v54 }
 0x668   :  { %5687 = vtanh.f32 %v1903_v35 }
 0x669   :  { %v7468_v50 = vadd.f32 %v1579_v34, %v1368_v47  ;;  %v7470_v35 = vadd.f32 %v1581_v40, %v1372_v33  ;;  %v1376_v40 = vrot.slane %v1363_v22, %v1079_v24 }
 0x66f   :  { %v5682_v43 = vpop.eup %5681 }
 0x670   :  { %v5684_v46 = vpop.eup %5683  ;;  %v1908_v29 = vadd.f32 1.0, %v5682_v43 }
 0x671   :  { %v1914_v31 = vadd.f32 1.0, %v5684_v46  ;;  %v5686_v23 = vpop.eup %5685 }
 0x672   :  { %5689 = vrcp.f32 %v1908_v29  ;;  %v5688_v27 = vpop.eup %5687  ;;  %v1921_v51 = vadd.f32 1.0, %v5686_v23  ;;  %v1380_v23 = vrot.slane %v1363_v22, %v1083_v28  ;;  %v7482_v28 = vadd.f32 %v7439_v42, %v1376_v40  ;;  %v8567_v40 = vld [vmem:[#allocation80_spill] sm:$0xff] }
 0x673   :  { %5691 = vrcp.f32 %v1914_v31 }
 0x674   :  { %5693 = vrcp.f32 %v1921_v51  ;;  %v7477_v34 = vadd.f32 %v7441_v45, %v1380_v23 }
 0x67c   :  { %v5690_v48 = vpop.eup %5689 }
 0x67d   :  { %v5692_v25 = vpop.eup %5691  ;;  %v1925_v52 = vmul.f32 %v5690_v48, %v5688_v27  ;;  %v2210_v48 = vrot.slane %v7445_v32, 1 }
 0x67e   :  { %v1924_v49 = vmul.f32 0.0, %v5692_v25  ;;  %v5694_v47 = vpop.eup %5693 }
 0x67f   :  { %v2218_v51 = vadd.f32 %v2210_v48, %v7477_v34 }
 0x680   :  { %v7466_v38 = vadd.f32 %v1925_v52, %v1924_v49  ;;  %v2155_v37 = vpop.f32.mrb[16].mxu0  ;;  %v2209_v52 = vrot.slane %v7443_v39, 1 }
 0x681   :  { %v2207_v43 = vrot.slane %v2155_v37, 1  ;;  %v2157_v30 = vpop.f32.mrb[17].mxu0  ;;  %v4877_v37 = vmul.f32 -1.442695, %v2218_v51 }
 0x682   :  { %5695 = vtanh.f32 %v7466_v38  ;;  %v2208_v46 = vrot.slane %v2157_v30, 1  ;;  %v2159_v29 = vpop.f32.mrb[18].mxu0  ;;  %v2217_v32 = vadd.f32 %v2209_v52, %v7482_v28 }
 0x683   :  { %v2215_v31 = vadd.f32 %v2207_v43, %v7468_v50  ;;  %v2160_v36 = vpop.f32.mrb[19].mxu0 }
 0x684   :  { %v2216_v54 = vadd.f32 %v2208_v46, %v7470_v35 }
 0x685   :  { %v4875_v27 = vmul.f32 -1.442695, %v2215_v31 }
 0x686   :  { %v4876_v25 = vmul.f32 -1.442695, %v2216_v54 }
 0x687   :  { %5697 = vpow2.f32 %v4875_v27 }
 0x688   :  { %5699 = vpow2.f32 %v4876_v25 }
 0x689   :  { %5701 = vpow2.f32 %v4877_v37  ;;  %v8569_v37 = vld [vmem:[#allocation81_spill] sm:$0xff] }
 0x68a   :  { %5703 = vtanh.f32 %v2217_v32  ;;  %v8570_v32 = vld [vmem:[#allocation98_spill] sm:$0xff] }
 0x68c   :  { %v5696_v33 = vpop.eup %5695 }
 0x68d   :  { %v7484_v49 = vmul.f32 %v5696_v33, %v5694_v47  ;;  %v8568_v33 = vld [vmem:[#allocation97_spill] sm:$0xff] }
 0x68f   :  { %8565 = vst [vmem:[#allocation115_spill] sm:$0xff] %v7484_v49  ;;  %v2243_v45 = vpack.c.bf16 %v7484_v49, %v7484_v49 }
 0x691   :  { %v5698_v43 = vpop.eup %5697  ;;  %2277 = vmatmul.mubr.bf16.vlgmr.msra.gmra.mrb[20].mxu0 %v2243_v45  ;;  %2318 = vmatmul.mubr.bf16.vlgmr.msra.gmra.mrb[24].mxu1 %v2243_v45  ;;  %v8571_v45 = vld [vmem:[#allocation82_spill] sm:$0xff] }
 0x692   :  { %v5700_v24 = vpop.eup %5699  ;;  %v2222_v22 = vadd.f32 1.0, %v5698_v43  ;;  %2376 = vmatpush1.bf16.msra.mxu0 %v7367_v55  ;;  %2417 = vmatpush1.bf16.msra.mxu1 %v7236_v56  ;;  %v8572_v43 = vld [vmem:[#allocation99_spill] sm:$0xff] }
 0x693   :  { %v2228_v42 = vadd.f32 1.0, %v5700_v24  ;;  %2377 = vmatprep.subr.bf16.mxu0 %v7370_v58  ;;  %2418 = vmatprep.subr.bf16.mxu1 %v7239_v57  ;;  %v5702_v39 = vpop.eup %5701  ;;  %v8573_v24 = vld [vmem:[#allocation83_spill] sm:$0xff] }
 0x694   :  { %5705 = vrcp.f32 %v2222_v22  ;;  %2407 = vmatprep.mubr.bf16.mxu0 %v8561_v53  ;;  %2448 = vmatprep.mubr.bf16.mxu1 %v8561_v53  ;;  %v5704_v30 = vpop.eup %5703  ;;  %v2235_v31 = vadd.f32 1.0, %v5702_v39  ;;  %v8574_v22 = vld [vmem:[#allocation100_spill] sm:$0xff]  ;;  %v8576_v39 = vld [vmem:[#allocation101_spill] sm:$0xff] }
 0x695   :  { %5707 = vrcp.f32 %v2228_v42  ;;  %v8575_v42 = vld [vmem:[#allocation84_spill] sm:$0xff] }
 0x696   :  { %2378 = vmatpush1.bf16.msra.mxu0 %v7376_v59  ;;  %2419 = vmatpush1.bf16.msra.mxu1 %v7243_v60  ;;  %5709 = vrcp.f32 %v2235_v31  ;;  %v8580_v31 = vld [vmem:[#allocation103_spill] sm:$0xff] }
 0x697   :  { %2379 = vmatprep.subr.bf16.mxu0 %v7380_v62  ;;  %2420 = vmatprep.subr.bf16.mxu1 %v7247_v61 }
 0x69a   :  { %2380 = vmatpush1.bf16.msra.mxu0 %v7385_v63  ;;  %2421 = vmatpush1.bf16.msra.mxu1 %v7250_v2 }
 0x69b   :  { %2381 = vmatprep.subr.bf16.mxu0 %v7388_v4  ;;  %2422 = vmatprep.subr.bf16.mxu1 %v7253_v3 }
 0x69e   :  { %v5706_v46 = vpop.eup %5705  ;;  %2382 = vmatpush1.bf16.msra.mxu0 %v7391_v5  ;;  %2423 = vmatpush1.bf16.msra.mxu1 %v7256_v6 }
 0x69f   :  { %v5708_v29 = vpop.eup %5707  ;;  %v2239_v36 = vmul.f32 %v5706_v46, %v5704_v30  ;;  %2383 = vmatprep.subr.bf16.mxu0 %v7394_v8  ;;  %2424 = vmatprep.subr.bf16.mxu1 %v7259_v7  ;;  %v8577_v30 = vld [vmem:[#allocation85_spill] sm:$0xff]  ;;  %v8578_v46 = vld [vmem:[#allocation102_spill] sm:$0xff] }
 0x6a0   :  { %v2238_v23 = vmul.f32 0.0, %v5708_v29  ;;  %v5710_v27 = vpop.eup %5709  ;;  %v8579_v29 = vld [vmem:[#allocation86_spill] sm:$0xff] }
 0x6a2   :  { %v7507_v54 = vadd.f32 %v2239_v36, %v2238_v23  ;;  %2384 = vmatpush1.bf16.msra.mxu0 %v7397_v9  ;;  %2425 = vmatpush1.bf16.msra.mxu1 %v7262_v10  ;;  %v8581_v36 = vld [vmem:[#allocation87_spill] sm:$0xff]  ;;  %v8582_v23 = vld [vmem:[#allocation104_spill] sm:$0xff] }
 0x6a3   :  { %2385 = vmatprep.subr.bf16.mxu0 %v7400_v13  ;;  %2426 = vmatprep.subr.bf16.mxu1 %v7265_v12 }
 0x6a4   :  { %5711 = vtanh.f32 %v7507_v54 }
 0x6a6   :  { %2386 = vmatpush1.bf16.msra.mxu0 %v7403_v14  ;;  %2427 = vmatpush1.bf16.msra.mxu1 %v7268_v15 }
 0x6a7   :  { %2387 = vmatprep.subr.bf16.mxu0 %v7406_v17  ;;  %2428 = vmatprep.subr.bf16.mxu1 %v7271_v16 }
 0x6aa   :  { %2388 = vmatpush1.bf16.msra.mxu0 %v7409_v1  ;;  %2429 = vmatpush1.bf16.msra.mxu1 %v7277_v19 }
 0x6ab   :  { %2389 = vmatprep.subr.bf16.mxu0 %v7412_v0  ;;  %2430 = vmatprep.subr.bf16.mxu1 %v7280_v21 }
 0x6ae   :  { %v5712_v48 = vpop.eup %5711  ;;  %2390 = vmatpush1.bf16.msra.mxu0 %v7415_v11  ;;  %2431 = vmatpush1.bf16.msra.mxu1 %v7290_v26 }
 0x6af   :  { %v7524_v25 = vmul.f32 %v5712_v48, %v5710_v27  ;;  %2505 = vmatprep.subr.bf16.mxu0 %v7274_v18  ;;  %2546 = vmatprep.subr.bf16.mxu1 %v8567_v40  ;;  %v8583_v27 = vld [vmem:[#allocation88_spill] sm:$0xff]  ;;  %v8584_v48 = vld [vmem:[#allocation105_spill] sm:$0xff] }
 0x6b0   :  { %v8585_v40 = vld [vmem:[#allocation89_spill] sm:$0xff] }
 0x6b1   :  { %8566 = vst [vmem:[#allocation116_spill] sm:$0xff] %v7524_v25  ;;  %v2369_v51 = vpack.c.bf16 %v7524_v25, %v7524_v25  ;;  %v8599_v25 = vld [vmem:[#allocation96_spill] sm:$0xff] }
 0x6b3   :  { %v2371_v47 = vshrl.u32 %v2369_v51, 16  ;;  %v8586_v51 = vld [vmem:[#allocation106_spill] sm:$0xff] }
 0x6b5   :  { %v2373_v52 = vrot.slane %v2371_v47, 3  ;;  %v8587_v47 = vld [vmem:[#allocation90_spill] sm:$0xff] }
 0x6b7   :  { %2408 = vmatmul.mubr.bf16.vlgmr.msra.gmra.mrb[24].mxu0 %v2373_v52  ;;  %2449 = vmatmul.mubr.bf16.vlgmr.msra.gmra.mrb[28].mxu1 %v2373_v52  ;;  %v8588_v52 = vld [vmem:[#allocation107_spill] sm:$0xff] }
 0x6b8   :  { %2506 = vmatpush1.bf16.msra.mxu0 %v8568_v33  ;;  %2547 = vmatpush1.bf16.msra.mxu1 %v8569_v37  ;;  %v8589_v37 = vld [vmem:[#allocation91_spill] sm:$0xff] }
 0x6b9   :  { %2507 = vmatprep.subr.bf16.mxu0 %v8570_v32  ;;  %2548 = vmatprep.subr.bf16.mxu1 %v8571_v45  ;;  %v8590_v45 = vld [vmem:[#allocation108_spill] sm:$0xff] }
 0x6ba   :  { %2537 = vmatprep.mubr.bf16.mxu0 %v8561_v53  ;;  %2578 = vmatprep.mubr.bf16.mxu1 %v8561_v53 }
 0x6bc   :  { %2508 = vmatpush1.bf16.msra.mxu0 %v8572_v43  ;;  %2549 = vmatpush1.bf16.msra.mxu1 %v8573_v24  ;;  %v8591_v24 = vld [vmem:[#allocation92_spill] sm:$0xff] }
 0x6bd   :  { %2509 = vmatprep.subr.bf16.mxu0 %v8574_v22  ;;  %2550 = vmatprep.subr.bf16.mxu1 %v8575_v42  ;;  %v8592_v42 = vld [vmem:[#allocation109_spill] sm:$0xff] }
 0x6c0   :  { %2510 = vmatpush1.bf16.msra.mxu0 %v8576_v39  ;;  %2551 = vmatpush1.bf16.msra.mxu1 %v8577_v30  ;;  %v8593_v30 = vld [vmem:[#allocation93_spill] sm:$0xff] }
 0x6c1   :  { %2511 = vmatprep.subr.bf16.mxu0 %v8578_v46  ;;  %2552 = vmatprep.subr.bf16.mxu1 %v8579_v29  ;;  %v8594_v29 = vld [vmem:[#allocation110_spill] sm:$0xff] }
 0x6c4   :  { %2512 = vmatpush1.bf16.msra.mxu0 %v8580_v31  ;;  %2553 = vmatpush1.bf16.msra.mxu1 %v8581_v36  ;;  %v8595_v36 = vld [vmem:[#allocation94_spill] sm:$0xff] }
 0x6c5   :  { %2513 = vmatprep.subr.bf16.mxu0 %v8582_v23  ;;  %2554 = vmatprep.subr.bf16.mxu1 %v8583_v27  ;;  %v8596_v27 = vld [vmem:[#allocation111_spill] sm:$0xff] }
 0x6c8   :  { %2514 = vmatpush1.bf16.msra.mxu0 %v8584_v48  ;;  %2555 = vmatpush1.bf16.msra.mxu1 %v8585_v40  ;;  %v8597_v40 = vld [vmem:[#allocation95_spill] sm:$0xff]  ;;  %v8600_v48 = vld [vmem:[#allocation113_spill] sm:$0xff] }
 0x6c9   :  { %2515 = vmatprep.subr.bf16.mxu0 %v8586_v51  ;;  %2556 = vmatprep.subr.bf16.mxu1 %v8587_v47  ;;  %v8598_v47 = vld [vmem:[#allocation112_spill] sm:$0xff] }
 0x6cc   :  { %2516 = vmatpush1.bf16.msra.mxu0 %v8588_v52  ;;  %2557 = vmatpush1.bf16.msra.mxu1 %v8589_v37 }
 0x6cd   :  { %2517 = vmatprep.subr.bf16.mxu0 %v8590_v45  ;;  %2558 = vmatprep.subr.bf16.mxu1 %v8591_v24 }
 0x6d0   :  { %2518 = vmatpush1.bf16.msra.mxu0 %v8592_v42  ;;  %2559 = vmatpush1.bf16.msra.mxu1 %v8593_v30 }
 0x6d1   :  { %2519 = vmatprep.subr.bf16.mxu0 %v8594_v29  ;;  %2560 = vmatprep.subr.bf16.mxu1 %v8595_v36 }
 0x6d4   :  { %2520 = vmatpush1.bf16.msra.mxu0 %v8596_v27  ;;  %2561 = vmatpush1.bf16.msra.mxu1 %v8597_v40 }
 0x6d5   :  { %2634 = vmatprep.subr.bf16.mxu0 %v8598_v47  ;;  %2675 = vmatprep.subr.bf16.mxu1 %v8599_v25 }
 0x764   :  { %v2278_v37 = vpop.f32.mrb[20].mxu0  ;;  %v2319_v49 = vpop.f32.mrb[24].mxu1 }
 0x765   :  { %v2330_v45 = vrot.slane %v2278_v37, 7  ;;  %v2280_v24 = vpop.f32.mrb[21].mxu0  ;;  %v2321_v52 = vpop.f32.mrb[25].mxu1  ;;  %v2332_v47 = vrot.slane %v2319_v49, 7 }
 0x766   :  { %v2331_v42 = vrot.slane %v2280_v24, 7  ;;  %v2282_v51 = vpop.f32.mrb[22].mxu0  ;;  %v2323_v30 = vpop.f32.mrb[26].mxu1  ;;  %v2333_v46 = vrot.slane %v2321_v52, 7 }
 0x767   :  { %v2338_v29 = vadd.f32 %v2330_v45, %v8600_v48  ;;  %v2283_v23 = vpop.f32.mrb[23].mxu0  ;;  %v2324_v36 = vpop.f32.mrb[27].mxu1  ;;  %v2340_v39 = vadd.f32 %v2332_v47, %v7463_v44 }
 0x768   :  { %v2339_v27 = vadd.f32 %v2331_v42, %v7455_v41  ;;  %v2341_v25 = vadd.f32 %v2333_v46, %v7460_v20 }
 0x769   :  { %v4878_v31 = vmul.f32 -1.442695, %v2338_v29 }
 0x76a   :  { %v4879_v40 = vmul.f32 -1.442695, %v2339_v27  ;;  %v4880_v37 = vmul.f32 -1.442695, %v2341_v25 }
 0x76b   :  { %5713 = vpow2.f32 %v4878_v31  ;;  %v2362_v31 = vrot.slane %v7466_v38, 7 }
 0x76c   :  { %5715 = vpow2.f32 %v4879_v40 }
 0x76d   :  { %5717 = vpow2.f32 %v4880_v37 }
 0x76e   :  { %5719 = vtanh.f32 %v2340_v39 }
 0x775   :  { %v5714_v24 = vpop.eup %5713 }
 0x776   :  { %v5716_v51 = vpop.eup %5715  ;;  %v2345_v30 = vadd.f32 1.0, %v5714_v24 }
 0x777   :  { %v2351_v23 = vadd.f32 1.0, %v5716_v51  ;;  %v5718_v45 = vpop.eup %5717 }
 0x778   :  { %5721 = vrcp.f32 %v2345_v30  ;;  %v5720_v42 = vpop.eup %5719  ;;  %v2358_v46 = vadd.f32 1.0, %v5718_v45 }
 0x779   :  { %5723 = vrcp.f32 %v2351_v23 }
 0x77a   :  { %5725 = vrcp.f32 %v2358_v46 }
 0x782   :  { %v5722_v29 = vpop.eup %5721 }
 0x783   :  { %v5724_v52 = vpop.eup %5723  ;;  %v2365_v27 = vmul.f32 %v5722_v29, %v5720_v42 }
 0x784   :  { %v2364_v49 = vmul.f32 %v5724_v52, %v2362_v31  ;;  %v5726_v52 = vpop.eup %5725 }
 0x786   :  { %v7569_v36 = vadd.f32 %v2365_v27, %v2364_v49 }
 0x788   :  { %5727 = vtanh.f32 %v7569_v36 }
 0x78a   :  { %v2409_v47 = vpop.f32.mrb[24].mxu0  ;;  %v2450_v40 = vpop.f32.mrb[28].mxu1 }
 0x78b   :  { %v2461_v39 = vrot.slane %v2409_v47, 2  ;;  %v2411_v25 = vpop.f32.mrb[25].mxu0  ;;  %v2452_v37 = vpop.f32.mrb[29].mxu1  ;;  %v2463_v47 = vrot.slane %v2450_v40, 2 }
 0x78c   :  { %v2462_v24 = vrot.slane %v2411_v25, 2  ;;  %v2413_v51 = vpop.f32.mrb[26].mxu0  ;;  %v2454_v30 = vpop.f32.mrb[30].mxu1  ;;  %v2464_v31 = vrot.slane %v2452_v37, 2 }
 0x78d   :  { %v2469_v23 = vadd.f32 %v2461_v39, %v7468_v50  ;;  %v2414_v38 = vpop.f32.mrb[27].mxu0  ;;  %v2455_v44 = vpop.f32.mrb[31].mxu1 }
 0x78e   :  { %v2470_v45 = vadd.f32 %v2462_v24, %v7470_v35  ;;  %v2472_v49 = vadd.f32 %v2464_v31, %v7477_v34  ;;  %v2471_v44 = vadd.f32 %v2463_v47, %v7482_v28  ;;  %v7664_v31 = vld [vmem:[%s8527_s11 + $0x8c] ss:$16 sps:$4 sm:$0xff]  }
 0x78f   :  { %v4881_v42 = vmul.f32 -1.442695, %v2469_v23  ;;  %8612 = vst [vmem:[#allocation100_spill] sm:$0xff] %v7664_v31  ;;  %v7674_v47 = vld [vmem:[%s8527_s11 + $0xac] ss:$16 sps:$4 sm:$0xff]  }
 0x790   :  { %v4882_v29 = vmul.f32 -1.442695, %v2470_v45  ;;  %v4883_v51 = vmul.f32 -1.442695, %v2472_v49  ;;  %v8615_v49 = vld [vmem:[#allocation106_spill] sm:$0xff]  ;;  %8616 = vst [vmem:[#allocation85_spill] sm:$0xff] %v7674_v47 }
 0x791   :  { %5729 = vpow2.f32 %v4881_v42  ;;  %v7659_v42 = vld [vmem:[%s8527_s11 + $0x68] ss:$16 sps:$4 sm:$0xff]  }
 0x792   :  { %v5728_v27 = vpop.eup %5727  ;;  %5731 = vpow2.f32 %v4882_v29  ;;  %8610 = vst [vmem:[#allocation83_spill] sm:$0xff] %v7659_v42  ;;  %v8611_v29 = vld [vmem:[#allocation104_spill] sm:$0xff] }
 0x793   :  { %v7574_v46 = vmul.f32 %v5728_v27, %v5726_v52  ;;  %5733 = vpow2.f32 %v4883_v51  ;;  %v8613_v52 = vld [vmem:[#allocation105_spill] sm:$0xff]  ;;  %v8619_v51 = vld [vmem:[#allocation108_spill] sm:$0xff] }
 0x794   :  { %5735 = vtanh.f32 %v2471_v44  ;;  %v7669_v27 = vld [vmem:[%s8527_s11 + $0x88] ss:$16 sps:$4 sm:$0xff]   ;;  %v7684_v44 = vld [vmem:[%s8527_s11 + $0xcc] ss:$16 sps:$4 sm:$0xff]  }
 0x795   :  { %v2500_v25 = vpack.c.bf16 %v7574_v46, %v7574_v46  ;;  %8614 = vst [vmem:[#allocation84_spill] sm:$0xff] %v7669_v27  ;;  %8620 = vst [vmem:[#allocation87_spill] sm:$0xff] %v7684_v44 }
 0x797   :  { %v2502_v39 = vshrl.u32 %v2500_v25, 16  ;;  %v8617_v25 = vld [vmem:[#allocation107_spill] sm:$0xff] }
 0x799   :  { %2538 = vmatmul.mubr.bf16.vlgmr.msra.gmra.mrb[28].mxu0 %v2502_v39  ;;  %2579 = vmatmul.mubr.bf16.vlgmr.msra.gmra.mrb[32].mxu1 %v2502_v39  ;;  %v7679_v39 = vld [vmem:[%s8527_s11 + $0xa8] ss:$16 sps:$4 sm:$0xff]  }
 0x79a   :  { %2635 = vmatpush1.bf16.msra.mxu0 %v7367_v55  ;;  %2676 = vmatpush1.bf16.msra.mxu1 %v7236_v56  ;;  %8618 = vst [vmem:[#allocation86_spill] sm:$0xff] %v7679_v39 }
 0x79b   :  { %v5730_v37 = vpop.eup %5729  ;;  %2636 = vmatprep.subr.bf16.mxu0 %v7370_v58  ;;  %2677 = vmatprep.subr.bf16.mxu1 %v7239_v57 }
 0x79c   :  { %v5732_v24 = vpop.eup %5731  ;;  %v2476_v40 = vadd.f32 1.0, %v5730_v37  ;;  %2666 = vmatprep.mubr.bf16.mxu0 %v8561_v53  ;;  %2707 = vmatprep.mubr.bf16.mxu1 %v8561_v53  ;;  %v8621_v37 = vld [vmem:[#allocation109_spill] sm:$0xff] }
 0x79d   :  { %v2482_v30 = vadd.f32 1.0, %v5732_v24  ;;  %v5734_v56 = vpop.eup %5733  ;;  %v7689_v24 = vld [vmem:[%s8527_s11 + $0xc8] ss:$16 sps:$4 sm:$0xff]  }
 0x79e   :  { %5737 = vrcp.f32 %v2476_v40  ;;  %2637 = vmatpush1.bf16.msra.mxu0 %v7376_v59  ;;  %2678 = vmatpush1.bf16.msra.mxu1 %v7243_v60  ;;  %v5736_v57 = vpop.eup %5735  ;;  %8622 = vst [vmem:[#allocation88_spill] sm:$0xff] %v7689_v24  ;;  %v8623_v40 = vld [vmem:[#allocation110_spill] sm:$0xff] }
 0x79f   :  { %5739 = vrcp.f32 %v2482_v30  ;;  %2638 = vmatprep.subr.bf16.mxu0 %v7380_v62  ;;  %2679 = vmatprep.subr.bf16.mxu1 %v7247_v61  ;;  %v2493_v61 = vrot.slane %v7507_v54, 1  ;;  %v8605_v54 = vld [vmem:[#allocation101_spill] sm:$0xff] }
 0x7a0   :  { %v7694_v30 = vld [vmem:[%s8527_s11 + $0xec] ss:$16 sps:$4 sm:$0xff]  }
 0x7a1   :  { %8624 = vst [vmem:[#allocation89_spill] sm:$0xff] %v7694_v30 }
 0x7a2   :  { %2639 = vmatpush1.bf16.msra.mxu0 %v7385_v63  ;;  %2680 = vmatpush1.bf16.msra.mxu1 %v7250_v2  ;;  %v2489_v2 = vadd.f32 1.0, %v5734_v56  ;;  %v8625_v56 = vld [vmem:[#allocation111_spill] sm:$0xff] }
 0x7a3   :  { %2640 = vmatprep.subr.bf16.mxu0 %v7388_v4  ;;  %2681 = vmatprep.subr.bf16.mxu1 %v7253_v3 }
 0x7a4   :  { %5741 = vrcp.f32 %v2489_v2 }
 0x7a6   :  { %2641 = vmatpush1.bf16.msra.mxu0 %v7391_v5  ;;  %2682 = vmatpush1.bf16.msra.mxu1 %v7256_v6 }
 0x7a7   :  { %2642 = vmatprep.subr.bf16.mxu0 %v7394_v8  ;;  %2683 = vmatprep.subr.bf16.mxu1 %v7259_v7  ;;  %v7618_v7 = vld [vmem:[%s8527_s11 + $0xc] ss:$16 sps:$4 sm:$0xff]  }
 0x7a8   :  { %v5738_v60 = vpop.eup %5737 }
 0x7a9   :  { %v5740_v23 = vpop.eup %5739  ;;  %v2496_v38 = vmul.f32 %v5738_v60, %v5736_v57  ;;  %v7699_v57 = vld [vmem:[%s8527_s11 + $0xe8] ss:$16 sps:$4 sm:$0xff]  }
 0x7aa   :  { %v2495_v45 = vmul.f32 %v5740_v23, %v2493_v61  ;;  %2643 = vmatpush1.bf16.msra.mxu0 %v7397_v9  ;;  %2684 = vmatpush1.bf16.msra.mxu1 %v7262_v10  ;;  %8626 = vst [vmem:[#allocation90_spill] sm:$0xff] %v7699_v57  ;;  %v8627_v60 = vld [vmem:[#allocation112_spill] sm:$0xff] }
 0x7ab   :  { %2644 = vmatprep.subr.bf16.mxu0 %v7400_v13  ;;  %2685 = vmatprep.subr.bf16.mxu1 %v7265_v12  ;;  %v7703_v61 = vld [vmem:[#allocation28 + $0xc] ss:$16 sps:$4 sm:$0xff]  }
 0x7ac   :  { %v7603_v3 = vadd.f32 %v2496_v38, %v2495_v45  ;;  %8628 = vst [vmem:[#allocation91_spill] sm:$0xff] %v7703_v61 }
 0x7ae   :  { %2645 = vmatpush1.bf16.msra.mxu0 %v7403_v14  ;;  %2686 = vmatpush1.bf16.msra.mxu1 %v7268_v15  ;;  %5743 = vtanh.f32 %v7603_v3  ;;  %v5742_v6 = vpop.eup %5741 }
 0x7af   :  { %2646 = vmatprep.subr.bf16.mxu0 %v7406_v17  ;;  %2687 = vmatprep.subr.bf16.mxu1 %v7271_v16 }
 0x7b2   :  { %2647 = vmatpush1.bf16.msra.mxu0 %v7409_v1  ;;  %2688 = vmatpush1.bf16.msra.mxu1 %v7277_v19  ;;  %v7627_v19 = vld [vmem:[%s8527_s11 + $0x8] ss:$16 sps:$4 sm:$0xff]  }
 0x7b3   :  { %2648 = vmatprep.subr.bf16.mxu0 %v7412_v0  ;;  %2689 = vmatprep.subr.bf16.mxu1 %v7280_v21  ;;  %v7639_v21 = vld [vmem:[%s8527_s11 + $0x28] ss:$16 sps:$4 sm:$0xff]  }
 0x7b4   :  { %8603 = vst [vmem:[#allocation81_spill] sm:$0xff] %v7639_v21 }
 0x7b6   :  { %2649 = vmatpush1.bf16.msra.mxu0 %v7415_v11  ;;  %2690 = vmatpush1.bf16.msra.mxu1 %v7290_v26  ;;  %v7644_v26 = vld [vmem:[%s8527_s11 + $0x4c] ss:$16 sps:$4 sm:$0xff]  }
 0x7b7   :  { %2763 = vmatprep.subr.bf16.mxu0 %v7274_v18  ;;  %2804 = vmatprep.subr.bf16.mxu1 %v7618_v7  ;;  %v7632_v18 = vld [vmem:[%s8527_s11 + $0x2c] ss:$16 sps:$4 sm:$0xff]   ;;  %8604 = vst [vmem:[#allocation98_spill] sm:$0xff] %v7644_v26 }
 0x7b8   :  { %v5744_v10 = vpop.eup %5743  ;;  %8602 = vst [vmem:[#allocation97_spill] sm:$0xff] %v7632_v18 }
 0x7b9   :  { %v7621_v12 = vmul.f32 %v5744_v10, %v5742_v6 }
 0x7bb   :  { %8601 = vst [vmem:[#allocation80_spill] sm:$0xff] %v7621_v12  ;;  %v2630_v15 = vpack.c.bf16 %v7621_v12, %v7621_v12 }
 0x7bd   :  { %v2632_v16 = vrot.slane %v2630_v15, 3 }
 0x7bf   :  { %2667 = vmatmul.mubr.bf16.vlgmr.msra.gmra.mrb[32].mxu0 %v2632_v16  ;;  %2708 = vmatmul.mubr.bf16.vlgmr.msra.gmra.mrb[36].mxu1 %v2632_v16 }
 0x7c0   :  { %2764 = vmatpush1.bf16.msra.mxu0 %v8568_v33  ;;  %2805 = vmatpush1.bf16.msra.mxu1 %v7627_v19  ;;  %v7649_v33 = vld [vmem:[%s8527_s11 + $0x48] ss:$16 sps:$4 sm:$0xff]  }
 0x7c1   :  { %2765 = vmatprep.subr.bf16.mxu0 %v8570_v32  ;;  %2806 = vmatprep.subr.bf16.mxu1 %v7632_v18  ;;  %8606 = vst [vmem:[#allocation82_spill] sm:$0xff] %v7649_v33  ;;  %v8607_v32 = vld [vmem:[#allocation102_spill] sm:$0xff] }
 0x7c2   :  { %2795 = vmatprep.mubr.bf16.mxu0 %v8561_v53  ;;  %2836 = vmatprep.mubr.bf16.mxu1 %v8561_v53 }
 0x7c4   :  { %2766 = vmatpush1.bf16.msra.mxu0 %v8572_v43  ;;  %2807 = vmatpush1.bf16.msra.mxu1 %v7639_v21  ;;  %v7654_v43 = vld [vmem:[%s8527_s11 + $0x6c] ss:$16 sps:$4 sm:$0xff]  }
 0x7c5   :  { %2767 = vmatprep.subr.bf16.mxu0 %v8574_v22  ;;  %2808 = vmatprep.subr.bf16.mxu1 %v7644_v26  ;;  %8608 = vst [vmem:[#allocation99_spill] sm:$0xff] %v7654_v43  ;;  %v8609_v22 = vld [vmem:[#allocation103_spill] sm:$0xff] }
 0x7c8   :  { %2768 = vmatpush1.bf16.msra.mxu0 %v8605_v54  ;;  %2809 = vmatpush1.bf16.msra.mxu1 %v7649_v33 }
 0x7c9   :  { %2769 = vmatprep.subr.bf16.mxu0 %v8607_v32  ;;  %2810 = vmatprep.subr.bf16.mxu1 %v7654_v43 }
 0x7cc   :  { %2770 = vmatpush1.bf16.msra.mxu0 %v8609_v22  ;;  %2811 = vmatpush1.bf16.msra.mxu1 %v7659_v42 }
 0x7cd   :  { %2771 = vmatprep.subr.bf16.mxu0 %v8611_v29  ;;  %2812 = vmatprep.subr.bf16.mxu1 %v7664_v31 }
 0x7d0   :  { %2772 = vmatpush1.bf16.msra.mxu0 %v8613_v52  ;;  %2813 = vmatpush1.bf16.msra.mxu1 %v7669_v27 }
 0x7d1   :  { %2773 = vmatprep.subr.bf16.mxu0 %v8615_v49  ;;  %2814 = vmatprep.subr.bf16.mxu1 %v7674_v47 }
 0x7d4   :  { %2774 = vmatpush1.bf16.msra.mxu0 %v8617_v25  ;;  %2815 = vmatpush1.bf16.msra.mxu1 %v7679_v39 }
 0x7d5   :  { %2775 = vmatprep.subr.bf16.mxu0 %v8619_v51  ;;  %2816 = vmatprep.subr.bf16.mxu1 %v7684_v44 }
 0x7d8   :  { %2776 = vmatpush1.bf16.msra.mxu0 %v8621_v37  ;;  %2817 = vmatpush1.bf16.msra.mxu1 %v7689_v24 }
 0x7d9   :  { %2777 = vmatprep.subr.bf16.mxu0 %v8623_v40  ;;  %2818 = vmatprep.subr.bf16.mxu1 %v7694_v30 }
 0x7dc   :  { %2778 = vmatpush1.bf16.msra.mxu0 %v8625_v56  ;;  %2819 = vmatpush1.bf16.msra.mxu1 %v7699_v57  ;;  %v8629_v56 = vld [vmem:[#allocation114_spill] sm:$0xff] }
 0x7dd   :  { %2894 = vmatprep.subr.bf16.mxu0 %v8627_v60  ;;  %2935 = vmatprep.subr.bf16.mxu1 %v7703_v61 }
 0x86c   :  { %v2539_v23 = vpop.f32.mrb[28].mxu0  ;;  %v2580_v38 = vpop.f32.mrb[32].mxu1 }
 0x86d   :  { %v2591_v2 = vrot.slane %v2539_v23, 6  ;;  %v2541_v45 = vpop.f32.mrb[29].mxu0  ;;  %v2582_v6 = vpop.f32.mrb[33].mxu1  ;;  %v2593_v37 = vrot.slane %v2580_v38, 6 }
 0x86e   :  { %v2592_v10 = vrot.slane %v2541_v45, 6  ;;  %v2543_v15 = vpop.f32.mrb[30].mxu0  ;;  %v2584_v16 = vpop.f32.mrb[34].mxu1  ;;  %v2594_v25 = vrot.slane %v2582_v6, 6  ;;  %v2623_v6 = vrot.slane %v7569_v36, 7 }
 0x86f   :  { %v2599_v54 = vadd.f32 %v2591_v2, %v8600_v48  ;;  %v2544_v32 = vpop.f32.mrb[31].mxu0  ;;  %v2585_v22 = vpop.f32.mrb[35].mxu1  ;;  %v2601_v60 = vadd.f32 %v2593_v37, %v8629_v56 }
 0x870   :  { %v2600_v29 = vadd.f32 %v2592_v10, %v7455_v41  ;;  %v2602_v51 = vadd.f32 %v2594_v25, %v7460_v20 }
 0x871   :  { %v4884_v52 = vmul.f32 -1.442695, %v2599_v54 }
 0x872   :  { %v4885_v49 = vmul.f32 -1.442695, %v2600_v29  ;;  %v4886_v40 = vmul.f32 -1.442695, %v2602_v51 }
 0x873   :  { %5745 = vpow2.f32 %v4884_v52 }
 0x874   :  { %5747 = vpow2.f32 %v4885_v49 }
 0x875   :  { %5749 = vpow2.f32 %v4886_v40 }
 0x876   :  { %5751 = vtanh.f32 %v2601_v60 }
 0x87d   :  { %v5746_v23 = vpop.eup %5745 }
 0x87e   :  { %v5748_v45 = vpop.eup %5747  ;;  %v2606_v15 = vadd.f32 1.0, %v5746_v23 }
 0x87f   :  { %v2612_v2 = vadd.f32 1.0, %v5748_v45  ;;  %v5750_v10 = vpop.eup %5749 }
 0x880   :  { %5753 = vrcp.f32 %v2606_v15  ;;  %v5752_v16 = vpop.eup %5751  ;;  %v2619_v29 = vadd.f32 1.0, %v5750_v10 }
 0x881   :  { %5755 = vrcp.f32 %v2612_v2 }
 0x882   :  { %5757 = vrcp.f32 %v2619_v29 }
 0x88a   :  { %v5754_v54 = vpop.eup %5753 }
 0x88b   :  { %v5756_v32 = vpop.eup %5755  ;;  %v2626_v22 = vmul.f32 %v5754_v54, %v5752_v16 }
 0x88c   :  { %v2625_v38 = vmul.f32 %v5756_v32, %v2623_v6  ;;  %v5758_v32 = vpop.eup %5757 }
 0x88e   :  { %v7711_v52 = vadd.f32 %v2626_v22, %v2625_v38  ;;  %v8630_v38 = vld [vmem:[#allocation115_spill] sm:$0xff] }
 0x890   :  { %5759 = vtanh.f32 %v7711_v52 }
 0x892   :  { %v2668_v49 = vpop.f32.mrb[32].mxu0  ;;  %v2709_v25 = vpop.f32.mrb[36].mxu1 }
 0x893   :  { %v2720_v51 = vrot.slane %v2668_v49, 3  ;;  %v2670_v37 = vpop.f32.mrb[33].mxu0  ;;  %v2711_v40 = vpop.f32.mrb[37].mxu1  ;;  %v4047_v49 = vsel %vm4046_vm5, %v8630_v38, %v7574_v46 }
 0x894   :  { %v2721_v60 = vrot.slane %v2670_v37, 3  ;;  %v2672_v23 = vpop.f32.mrb[34].mxu0  ;;  %v2713_v45 = vpop.f32.mrb[38].mxu1  ;;  %v2723_v6 = vrot.slane %v2711_v40, 3  ;;  %v2722_v37 = vrot.slane %v2709_v25, 3 }
 0x895   :  { %v2728_v15 = vadd.f32 %v2720_v51, %v7468_v50  ;;  %v2673_v36 = vpop.f32.mrb[35].mxu0  ;;  %v2714_v2 = vpop.f32.mrb[39].mxu1  ;;  %v7729_v25 = vld [vmem:[#allocation28 + $0x2c] ss:$16 sps:$4 sm:$0xff]  }
 0x896   :  { %v2729_v10 = vadd.f32 %v2721_v60, %v7470_v35  ;;  %v2731_v51 = vadd.f32 %v2723_v6, %v7477_v34  ;;  %v7725_v36 = vld [vmem:[#allocation28 + $0x8] ss:$16 sps:$4 sm:$0xff]  }
 0x897   :  { %v4887_v16 = vmul.f32 -1.442695, %v2728_v15  ;;  %v2730_v15 = vadd.f32 %v2722_v37, %v7482_v28 }
 0x898   :  { %v4888_v54 = vmul.f32 -1.442695, %v2729_v10  ;;  %v4889_v40 = vmul.f32 -1.442695, %v2731_v51 }
 0x899   :  { %5761 = vpow2.f32 %v4887_v16  ;;  %v7735_v16 = vld [vmem:[#allocation28 + $0x28] ss:$16 sps:$4 sm:$0xff]  }
 0x89a   :  { %v5760_v22 = vpop.eup %5759  ;;  %5763 = vpow2.f32 %v4888_v54  ;;  %v7743_v54 = vld [vmem:[#allocation28 + $0x48] ss:$16 sps:$4 sm:$0xff]  }
 0x89b   :  { %v2629_v29 = vmul.f32 %v5760_v22, %v5758_v32  ;;  %5765 = vpow2.f32 %v4889_v40 }
 0x89c   :  { %5767 = vtanh.f32 %v2730_v15 }
 0x89d   :  { %v2759_v23 = vpack.c.bf16 %v2629_v29, %v2629_v29  ;;  %v7721_v60 = vsel %vm4048_vm6, %v4047_v49, %v2629_v29 }
 0x89f   :  { %v2761_v45 = vrot.slane %v2759_v23, 1 }
 0x8a1   :  { %2796 = vmatmul.mubr.bf16.vlgmr.msra.gmra.mrb[36].mxu0 %v2761_v45  ;;  %2837 = vmatmul.mubr.bf16.vlgmr.msra.gmra.mrb[40].mxu1 %v2761_v45 }
 0x8a2   :  { %2895 = vmatpush1.bf16.msra.mxu0 %v7367_v55  ;;  %2936 = vmatpush1.bf16.msra.mxu1 %v7725_v36 }
 0x8a3   :  { %v5762_v46 = vpop.eup %5761  ;;  %2896 = vmatprep.subr.bf16.mxu0 %v7370_v58  ;;  %2937 = vmatprep.subr.bf16.mxu1 %v7729_v25  ;;  %v7739_v58 = vld [vmem:[#allocation28 + $0x4c] ss:$16 sps:$4 sm:$0xff]  }
 0x8a4   :  { %v5764_v2 = vpop.eup %5763  ;;  %v2735_v10 = vadd.f32 1.0, %v5762_v46  ;;  %2926 = vmatprep.mubr.bf16.mxu0 %v8561_v53  ;;  %2967 = vmatprep.mubr.bf16.mxu1 %v8561_v53  ;;  %v7800_v46 = vld [vmem:[%s8527_s11] ss:$16 sps:$4 sm:$0xff]  }
 0x8a5   :  { %v2741_v55 = vadd.f32 1.0, %v5764_v2  ;;  %v5766_v6 = vpop.eup %5765  ;;  %v7805_v2 = vld [vmem:[%s8527_s11 + $0x24] ss:$16 sps:$4 sm:$0xff]  }
 0x8a6   :  { %5769 = vrcp.f32 %v2735_v10  ;;  %2897 = vmatpush1.bf16.msra.mxu0 %v7376_v59  ;;  %2938 = vmatpush1.bf16.msra.mxu1 %v7735_v16  ;;  %v7747_v59 = vld [vmem:[#allocation28 + $0x6c] ss:$16 sps:$4 sm:$0xff]   ;;  %v5768_v32 = vpop.eup %5767  ;;  %v2748_v49 = vadd.f32 1.0, %v5766_v6 }
 0x8a7   :  { %5771 = vrcp.f32 %v2741_v55  ;;  %2898 = vmatprep.subr.bf16.mxu0 %v7380_v62  ;;  %2939 = vmatprep.subr.bf16.mxu1 %v7739_v58  ;;  %v7751_v62 = vld [vmem:[#allocation28 + $0x68] ss:$16 sps:$4 sm:$0xff]   ;;  %v7817_v55 = vld [vmem:[%s8527_s11 + $0x44] ss:$16 sps:$4 sm:$0xff]  }
 0x8a8   :  { %5773 = vrcp.f32 %v2748_v49  ;;  %v7812_v10 = vld [vmem:[%s8527_s11 + $0x20] ss:$16 sps:$4 sm:$0xff]   ;;  %8633 = vst [vmem:[#allocation94_spill] sm:$0xff] %v7817_v55 }
 0x8a9   :  { %8632 = vst [vmem:[#allocation93_spill] sm:$0xff] %v7812_v10  ;;  %v7822_v6 = vld [vmem:[%s8527_s11 + $0x40] ss:$16 sps:$4 sm:$0xff]  }
 0x8aa   :  { %2899 = vmatpush1.bf16.msra.mxu0 %v7385_v63  ;;  %2940 = vmatpush1.bf16.msra.mxu1 %v7743_v54  ;;  %v7755_v63 = vld [vmem:[#allocation28 + $0x8c] ss:$16 sps:$4 sm:$0xff]   ;;  %8634 = vst [vmem:[#allocation95_spill] sm:$0xff] %v7822_v6 }
 0x8ab   :  { %2900 = vmatprep.subr.bf16.mxu0 %v7388_v4  ;;  %2941 = vmatprep.subr.bf16.mxu1 %v7747_v59  ;;  %v2752_v4 = vrot.slane %v7603_v3, 1  ;;  %v7770_v3 = vld [vmem:[#allocation28 + $0xa8] ss:$16 sps:$4 sm:$0xff]  }
 0x8ac   :  { %v7852_v49 = vld [vmem:[%s8527_s11 + $0xa0] ss:$16 sps:$4 sm:$0xff]  }
 0x8ad   :  { %8640 = vst [vmem:[#allocation104_spill] sm:$0xff] %v7852_v49 }
 0x8ae   :  { %2901 = vmatpush1.bf16.msra.mxu0 %v7391_v5  ;;  %2942 = vmatpush1.bf16.msra.mxu1 %v7751_v62  ;;  %v7760_v5 = vld [vmem:[#allocation28 + $0x88] ss:$16 sps:$4 sm:$0xff]  }
 0x8af   :  { %2902 = vmatprep.subr.bf16.mxu0 %v7394_v8  ;;  %2943 = vmatprep.subr.bf16.mxu1 %v7755_v63  ;;  %v7764_v8 = vld [vmem:[#allocation28 + $0xac] ss:$16 sps:$4 sm:$0xff]  }
 0x8b0   :  { %v5770_v22 = vpop.eup %5769 }
 0x8b1   :  { %v5772_v29 = vpop.eup %5771  ;;  %v2755_v38 = vmul.f32 %v5770_v22, %v5768_v32  ;;  %v7827_v32 = vld [vmem:[%s8527_s11 + $0x64] ss:$16 sps:$4 sm:$0xff]   ;;  %v7832_v22 = vld [vmem:[%s8527_s11 + $0x60] ss:$16 sps:$4 sm:$0xff]  }
 0x8b2   :  { %v2754_v51 = vmul.f32 %v5772_v29, %v2752_v4  ;;  %2903 = vmatpush1.bf16.msra.mxu0 %v7397_v9  ;;  %2944 = vmatpush1.bf16.msra.mxu1 %v7760_v5  ;;  %v7775_v9 = vld [vmem:[#allocation28 + $0xcc] ss:$16 sps:$4 sm:$0xff]   ;;  %v5774_v23 = vpop.eup %5773  ;;  %8635 = vst [vmem:[#allocation96_spill] sm:$0xff] %v7827_v32  ;;  %8636 = vst [vmem:[#allocation113_spill] sm:$0xff] %v7832_v22 }
 0x8b3   :  { %2904 = vmatprep.subr.bf16.mxu0 %v7400_v13  ;;  %2945 = vmatprep.subr.bf16.mxu1 %v7764_v8  ;;  %v7779_v13 = vld [vmem:[#allocation28 + $0xc8] ss:$16 sps:$4 sm:$0xff]   ;;  %v7837_v4 = vld [vmem:[%s8527_s11 + $0x84] ss:$16 sps:$4 sm:$0xff]  }
 0x8b4   :  { %v7767_v37 = vadd.f32 %v2755_v38, %v2754_v51  ;;  %8637 = vst [vmem:[#allocation101_spill] sm:$0xff] %v7837_v4  ;;  %v7842_v29 = vld [vmem:[%s8527_s11 + $0x80] ss:$16 sps:$4 sm:$0xff]   ;;  %v7847_v38 = vld [vmem:[%s8527_s11 + $0xa4] ss:$16 sps:$4 sm:$0xff]  }
 0x8b5   :  { %8638 = vst [vmem:[#allocation102_spill] sm:$0xff] %v7842_v29  ;;  %8639 = vst [vmem:[#allocation103_spill] sm:$0xff] %v7847_v38  ;;  %v7857_v51 = vld [vmem:[%s8527_s11 + $0xc4] ss:$16 sps:$4 sm:$0xff]  }
 0x8b6   :  { %2905 = vmatpush1.bf16.msra.mxu0 %v7403_v14  ;;  %2946 = vmatpush1.bf16.msra.mxu1 %v7770_v3  ;;  %5775 = vtanh.f32 %v7767_v37  ;;  %v7783_v14 = vld [vmem:[#allocation28 + $0xec] ss:$16 sps:$4 sm:$0xff]   ;;  %8641 = vst [vmem:[#allocation105_spill] sm:$0xff] %v7857_v51 }
 0x8b7   :  { %2906 = vmatprep.subr.bf16.mxu0 %v7406_v17  ;;  %2947 = vmatprep.subr.bf16.mxu1 %v7775_v9  ;;  %v7787_v17 = vld [vmem:[#allocation28 + $0xe8] ss:$16 sps:$4 sm:$0xff]  }
 0x8ba   :  { %2907 = vmatpush1.bf16.msra.mxu0 %v7409_v1  ;;  %2948 = vmatpush1.bf16.msra.mxu1 %v7779_v13  ;;  %v7791_v1 = vld [vmem:[%s8527_s11 + $0x4] ss:$16 sps:$4 sm:$0xff]  }
 0x8bb   :  { %2908 = vmatprep.subr.bf16.mxu0 %v7412_v0  ;;  %2949 = vmatprep.subr.bf16.mxu1 %v7783_v14 }
 0x8be   :  { %2909 = vmatpush1.bf16.msra.mxu0 %v7415_v11  ;;  %2950 = vmatpush1.bf16.msra.mxu1 %v7787_v17 }
 0x8bf   :  { %3025 = vmatprep.subr.bf16.mxu0 %v7791_v1  ;;  %3066 = vmatprep.subr.bf16.mxu1 %v7618_v7 }
 0x8c0   :  { %v5776_v0 = vpop.eup %5775 }
 0x8c1   :  { %v7795_v45 = vmul.f32 %v5776_v0, %v5774_v23  ;;  %v7862_v23 = vld [vmem:[%s8527_s11 + $0xc0] ss:$16 sps:$4 sm:$0xff]   ;;  %v7867_v0 = vld [vmem:[%s8527_s11 + $0xe4] ss:$16 sps:$4 sm:$0xff]  }
 0x8c2   :  { %8642 = vst [vmem:[#allocation106_spill] sm:$0xff] %v7862_v23  ;;  %8643 = vst [vmem:[#allocation107_spill] sm:$0xff] %v7867_v0 }
 0x8c3   :  { %8631 = vst [vmem:[#allocation92_spill] sm:$0xff] %v7795_v45  ;;  %v2888_v40 = vpack.c.bf16 %v7795_v45, %v7795_v45 }
 0x8c5   :  { %v2890_v11 = vshrl.u32 %v2888_v40, 16  ;;  %v7872_v40 = vld [vmem:[%s8527_s11 + $0xe0] ss:$16 sps:$4 sm:$0xff]  }
 0x8c6   :  { %8644 = vst [vmem:[#allocation108_spill] sm:$0xff] %v7872_v40 }
 0x8c7   :  { %v2892_v15 = vrot.slane %v2890_v11, 2  ;;  %v7876_v11 = vld [vmem:[#allocation28 + $0x4] ss:$16 sps:$4 sm:$0xff]  }
 0x8c8   :  { %8645 = vst [vmem:[#allocation109_spill] sm:$0xff] %v7876_v11 }
 0x8c9   :  { %2927 = vmatmul.mubr.bf16.vlgmr.msra.gmra.mrb[40].mxu0 %v2892_v15  ;;  %2968 = vmatmul.mubr.bf16.vlgmr.msra.gmra.mrb[44].mxu1 %v2892_v15 }
 0x8ca   :  { %3026 = vmatpush1.bf16.msra.mxu0 %v7800_v46  ;;  %3067 = vmatpush1.bf16.msra.mxu1 %v7627_v19 }
 0x8cb   :  { %3027 = vmatprep.subr.bf16.mxu0 %v7805_v2  ;;  %3068 = vmatprep.subr.bf16.mxu1 %v7632_v18 }
 0x8cc   :  { %3057 = vmatprep.mubr.bf16.mxu0 %v8561_v53  ;;  %3098 = vmatprep.mubr.bf16.mxu1 %v8561_v53 }
 0x8ce   :  { %3028 = vmatpush1.bf16.msra.mxu0 %v7812_v10  ;;  %3069 = vmatpush1.bf16.msra.mxu1 %v7639_v21 }
 0x8cf   :  { %3029 = vmatprep.subr.bf16.mxu0 %v7817_v55  ;;  %3070 = vmatprep.subr.bf16.mxu1 %v7644_v26 }
 0x8d2   :  { %3030 = vmatpush1.bf16.msra.mxu0 %v7822_v6  ;;  %3071 = vmatpush1.bf16.msra.mxu1 %v7649_v33 }
 0x8d3   :  { %3031 = vmatprep.subr.bf16.mxu0 %v7827_v32  ;;  %3072 = vmatprep.subr.bf16.mxu1 %v7654_v43 }
 0x8d6   :  { %3032 = vmatpush1.bf16.msra.mxu0 %v7832_v22  ;;  %3073 = vmatpush1.bf16.msra.mxu1 %v7659_v42 }
 0x8d7   :  { %3033 = vmatprep.subr.bf16.mxu0 %v7837_v4  ;;  %3074 = vmatprep.subr.bf16.mxu1 %v7664_v31 }
 0x8da   :  { %3034 = vmatpush1.bf16.msra.mxu0 %v7842_v29  ;;  %3075 = vmatpush1.bf16.msra.mxu1 %v7669_v27 }
 0x8db   :  { %3035 = vmatprep.subr.bf16.mxu0 %v7847_v38  ;;  %3076 = vmatprep.subr.bf16.mxu1 %v7674_v47 }
 0x8de   :  { %3036 = vmatpush1.bf16.msra.mxu0 %v7852_v49  ;;  %3077 = vmatpush1.bf16.msra.mxu1 %v7679_v39 }
 0x8df   :  { %3037 = vmatprep.subr.bf16.mxu0 %v7857_v51  ;;  %3078 = vmatprep.subr.bf16.mxu1 %v7684_v44 }
 0x8e2   :  { %3038 = vmatpush1.bf16.msra.mxu0 %v7862_v23  ;;  %3079 = vmatpush1.bf16.msra.mxu1 %v7689_v24 }
 0x8e3   :  { %3039 = vmatprep.subr.bf16.mxu0 %v7867_v0  ;;  %3080 = vmatprep.subr.bf16.mxu1 %v7694_v30 }
 0x8e6   :  { %3040 = vmatpush1.bf16.msra.mxu0 %v7872_v40  ;;  %3081 = vmatpush1.bf16.msra.mxu1 %v7699_v57 }
 0x8e7   :  { %3154 = vmatprep.subr.bf16.mxu0 %v7876_v11  ;;  %3195 = vmatprep.subr.bf16.mxu1 %v7703_v61 }
 0x974   :  { %v2797_v15 = vpop.f32.mrb[36].mxu0  ;;  %v2838_v12 = vpop.f32.mrb[40].mxu1 }
 0x975   :  { %v2849_v45 = vrot.slane %v2797_v15, 5  ;;  %v2799_v24 = vpop.f32.mrb[37].mxu0  ;;  %v2840_v23 = vpop.f32.mrb[41].mxu1  ;;  %v2851_v11 = vrot.slane %v2838_v12, 5 }
 0x976   :  { %v2850_v0 = vrot.slane %v2799_v24, 5  ;;  %v2801_v44 = vpop.f32.mrb[38].mxu0  ;;  %v2842_v30 = vpop.f32.mrb[42].mxu1  ;;  %v2852_v38 = vrot.slane %v2840_v23, 5 }
 0x977   :  { %v2857_v51 = vadd.f32 %v2849_v45, %v8600_v48  ;;  %v2802_v39 = vpop.f32.mrb[39].mxu0  ;;  %v2843_v40 = vpop.f32.mrb[43].mxu1  ;;  %v2859_v27 = vadd.f32 %v2851_v11, %v8629_v56 }
 0x978   :  { %v2858_v57 = vadd.f32 %v2850_v0, %v7455_v41  ;;  %v2860_v61 = vadd.f32 %v2852_v38, %v7460_v20 }
 0x979   :  { %v4890_v49 = vmul.f32 -1.442695, %v2857_v51 }
 0x97a   :  { %v4891_v47 = vmul.f32 -1.442695, %v2858_v57  ;;  %v4892_v15 = vmul.f32 -1.442695, %v2860_v61 }
 0x97b   :  { %5777 = vpow2.f32 %v4890_v49  ;;  %v2881_v49 = vrot.slane %v7711_v52, 7 }
 0x97c   :  { %5779 = vpow2.f32 %v4891_v47 }
 0x97d   :  { %5781 = vpow2.f32 %v4892_v15 }
 0x97e   :  { %5783 = vtanh.f32 %v2859_v27 }
 0x985   :  { %v5778_v24 = vpop.eup %5777 }
 0x986   :  { %v5780_v44 = vpop.eup %5779  ;;  %v2864_v30 = vadd.f32 1.0, %v5778_v24 }
 0x987   :  { %v2870_v39 = vadd.f32 1.0, %v5780_v44  ;;  %v5782_v45 = vpop.eup %5781 }
 0x988   :  { %5785 = vrcp.f32 %v2864_v30  ;;  %v5784_v51 = vpop.eup %5783  ;;  %v2877_v38 = vadd.f32 1.0, %v5782_v45 }
 0x989   :  { %5787 = vrcp.f32 %v2870_v39 }
 0x98a   :  { %5789 = vrcp.f32 %v2877_v38 }
 0x992   :  { %v5786_v57 = vpop.eup %5785 }
 0x993   :  { %v5788_v47 = vpop.eup %5787  ;;  %v2884_v23 = vmul.f32 %v5786_v57, %v5784_v51 }
 0x994   :  { %v2883_v12 = vmul.f32 %v5788_v47, %v2881_v49  ;;  %v5790_v51 = vpop.eup %5789 }
 0x996   :  { %v7885_v61 = vadd.f32 %v2884_v23, %v2883_v12 }
 0x998   :  { %5791 = vtanh.f32 %v7885_v61 }
 0x99c   :  { %v2928_v0 = vpop.f32.mrb[40].mxu0  ;;  %v2969_v40 = vpop.f32.mrb[44].mxu1 }
 0x99d   :  { %v2980_v27 = vrot.slane %v2928_v0, 4  ;;  %v2930_v11 = vpop.f32.mrb[41].mxu0  ;;  %v2971_v15 = vpop.f32.mrb[45].mxu1 }
 0x99e   :  { %v2981_v24 = vrot.slane %v2930_v11, 4  ;;  %v2932_v44 = vpop.f32.mrb[42].mxu0  ;;  %v2973_v30 = vpop.f32.mrb[46].mxu1  ;;  %v2983_v23 = vrot.slane %v2971_v15, 4  ;;  %v2982_v11 = vrot.slane %v2969_v40, 4 }
 0x99f   :  { %v2988_v39 = vadd.f32 %v2980_v27, %v7468_v50  ;;  %v2933_v52 = vpop.f32.mrb[43].mxu0  ;;  %v2974_v56 = vpop.f32.mrb[47].mxu1  ;;  %v7896_v15 = vld [vmem:[#allocation28] ss:$16 sps:$4 sm:$0xff]  }
 0x9a0   :  { %v2989_v45 = vadd.f32 %v2981_v24, %v7470_v35  ;;  %v2991_v27 = vadd.f32 %v2983_v23, %v7477_v34  ;;  %v2990_v30 = vadd.f32 %v2982_v11, %v7482_v28  ;;  %v7900_v52 = vld [vmem:[#allocation28 + $0x24] ss:$16 sps:$4 sm:$0xff]  }
 0x9a1   :  { %v4893_v57 = vmul.f32 -1.442695, %v2988_v39 }
 0x9a2   :  { %v5792_v49 = vpop.eup %5791  ;;  %v4894_v47 = vmul.f32 -1.442695, %v2989_v45  ;;  %v4895_v24 = vmul.f32 -1.442695, %v2991_v27  ;;  %v7926_v27 = vld [vmem:[#allocation28 + $0x84] ss:$16 sps:$4 sm:$0xff]  }
 0x9a3   :  { %5793 = vpow2.f32 %v4893_v57  ;;  %v2887_v38 = vmul.f32 %v5792_v49, %v5790_v51  ;;  %v7906_v51 = vld [vmem:[#allocation28 + $0x20] ss:$16 sps:$4 sm:$0xff]   ;;  %v7910_v57 = vld [vmem:[#allocation28 + $0x44] ss:$16 sps:$4 sm:$0xff]  }
 0x9a4   :  { %5795 = vpow2.f32 %v4894_v47  ;;  %v7914_v49 = vld [vmem:[#allocation28 + $0x40] ss:$16 sps:$4 sm:$0xff]   ;;  %v7918_v47 = vld [vmem:[#allocation28 + $0x64] ss:$16 sps:$4 sm:$0xff]  }
 0x9a5   :  { %v3019_v12 = vpack.c.bf16 %v2887_v38, %v2887_v38  ;;  %v7892_v0 = vsel %vm4050_vm7, %v7721_v60, %v2887_v38  ;;  %5797 = vpow2.f32 %v4895_v24  ;;  %v7922_v38 = vld [vmem:[#allocation28 + $0x60] ss:$16 sps:$4 sm:$0xff]  }
 0x9a6   :  { %5799 = vtanh.f32 %v2990_v30 }
 0x9a7   :  { %v3021_v56 = vshrl.u32 %v3019_v12, 16 }
 0x9a9   :  { %v3023_v44 = vrot.slane %v3021_v56, 1  ;;  %v3012_v56 = vrot.slane %v7767_v37, 1  ;;  %v7941_v37 = vld [vmem:[#allocation28 + $0xa0] ss:$16 sps:$4 sm:$0xff]  }
 0x9ab   :  { %3058 = vmatmul.mubr.bf16.vlgmr.msra.gmra.mrb[44].mxu0 %v3023_v44  ;;  %3099 = vmatmul.mubr.bf16.vlgmr.msra.gmra.mrb[48].mxu1 %v3023_v44 }
 0x9ac   :  { %3155 = vmatpush1.bf16.msra.mxu0 %v7896_v15  ;;  %3196 = vmatpush1.bf16.msra.mxu1 %v7725_v36 }
 0x9ad   :  { %v5794_v39 = vpop.eup %5793  ;;  %3156 = vmatprep.subr.bf16.mxu0 %v7900_v52  ;;  %3197 = vmatprep.subr.bf16.mxu1 %v7729_v25 }
 0x9ae   :  { %v5796_v60 = vpop.eup %5795  ;;  %v2995_v40 = vadd.f32 1.0, %v5794_v39  ;;  %3186 = vmatprep.mubr.bf16.mxu0 %v8561_v53  ;;  %3227 = vmatprep.mubr.bf16.mxu1 %v8561_v53 }
 0x9af   :  { %v3001_v45 = vadd.f32 1.0, %v5796_v60  ;;  %v5798_v23 = vpop.eup %5797  ;;  %v7931_v60 = vld [vmem:[#allocation28 + $0x80] ss:$16 sps:$4 sm:$0xff]  }
 0x9b0   :  { %5801 = vrcp.f32 %v2995_v40  ;;  %3157 = vmatpush1.bf16.msra.mxu0 %v7906_v51  ;;  %3198 = vmatpush1.bf16.msra.mxu1 %v7735_v16  ;;  %v5800_v12 = vpop.eup %5799  ;;  %v3008_v30 = vadd.f32 1.0, %v5798_v23  ;;  %v7935_v40 = vld [vmem:[#allocation28 + $0xa4] ss:$16 sps:$4 sm:$0xff]  }
 0x9b1   :  { %5803 = vrcp.f32 %v3001_v45  ;;  %3158 = vmatprep.subr.bf16.mxu0 %v7910_v57  ;;  %3199 = vmatprep.subr.bf16.mxu1 %v7739_v58  ;;  %v7946_v23 = vld [vmem:[#allocation28 + $0xc4] ss:$16 sps:$4 sm:$0xff]  }
 0x9b2   :  { %5805 = vrcp.f32 %v3008_v30 }
 0x9b4   :  { %3159 = vmatpush1.bf16.msra.mxu0 %v7914_v49  ;;  %3200 = vmatpush1.bf16.msra.mxu1 %v7743_v54 }
 0x9b5   :  { %3160 = vmatprep.subr.bf16.mxu0 %v7918_v47  ;;  %3201 = vmatprep.subr.bf16.mxu1 %v7747_v59 }
 0x9b8   :  { %3161 = vmatpush1.bf16.msra.mxu0 %v7922_v38  ;;  %3202 = vmatpush1.bf16.msra.mxu1 %v7751_v62 }
 0x9b9   :  { %3162 = vmatprep.subr.bf16.mxu0 %v7926_v27  ;;  %3203 = vmatprep.subr.bf16.mxu1 %v7755_v63 }
 0x9ba   :  { %v5802_v11 = vpop.eup %5801 }
 0x9bb   :  { %v5804_v44 = vpop.eup %5803  ;;  %v3015_v24 = vmul.f32 %v5802_v11, %v5800_v12  ;;  %v7950_v12 = vld [vmem:[#allocation28 + $0xc0] ss:$16 sps:$4 sm:$0xff]   ;;  %v7954_v11 = vld [vmem:[#allocation28 + $0xe4] ss:$16 sps:$4 sm:$0xff]  }
 0x9bc   :  { %v3014_v39 = vmul.f32 %v5804_v44, %v3012_v56  ;;  %3163 = vmatpush1.bf16.msra.mxu0 %v7931_v60  ;;  %3204 = vmatpush1.bf16.msra.mxu1 %v7760_v5  ;;  %8646 = vst [vmem:[#allocation110_spill] sm:$0xff] %v7954_v11  ;;  %v7958_v56 = vld [vmem:[#allocation28 + $0xe0] ss:$16 sps:$4 sm:$0xff]   ;;  %v5806_v44 = vpop.eup %5805 }
 0x9bd   :  { %3164 = vmatprep.subr.bf16.mxu0 %v7935_v40  ;;  %3205 = vmatprep.subr.bf16.mxu1 %v7764_v8 }
 0x9be   :  { %v7939_v45 = vadd.f32 %v3015_v24, %v3014_v39 }
 0x9c0   :  { %3165 = vmatpush1.bf16.msra.mxu0 %v7941_v37  ;;  %3206 = vmatpush1.bf16.msra.mxu1 %v7770_v3  ;;  %5807 = vtanh.f32 %v7939_v45 }
 0x9c1   :  { %3166 = vmatprep.subr.bf16.mxu0 %v7946_v23  ;;  %3207 = vmatprep.subr.bf16.mxu1 %v7775_v9 }
 0x9c4   :  { %3167 = vmatpush1.bf16.msra.mxu0 %v7950_v12  ;;  %3208 = vmatpush1.bf16.msra.mxu1 %v7779_v13 }
 0x9c5   :  { %3168 = vmatprep.subr.bf16.mxu0 %v7954_v11  ;;  %3209 = vmatprep.subr.bf16.mxu1 %v7783_v14 }
 0x9c8   :  { %3169 = vmatpush1.bf16.msra.mxu0 %v7958_v56  ;;  %3210 = vmatpush1.bf16.msra.mxu1 %v7787_v17 }
 0x9c9   :  { %3283 = vmatprep.subr.bf16.mxu0 %v7791_v1  ;;  %3324 = vmatprep.subr.bf16.mxu1 %v7618_v7 }
 0x9ca   :  { %v5808_v24 = vpop.eup %5807 }
 0x9cb   :  { %v7964_v30 = vmul.f32 %v5808_v24, %v5806_v44  ;;  %v8649_v44 = vld [vmem:[#allocation103_spill] sm:$0xff]  ;;  %v8650_v24 = vld [vmem:[#allocation85_spill] sm:$0xff] }
 0x9cd   :  { %8647 = vst [vmem:[#allocation111_spill] sm:$0xff] %v7964_v30  ;;  %v3150_v39 = vpack.c.bf16 %v7964_v30, %v7964_v30  ;;  %v8652_v30 = vld [vmem:[#allocation86_spill] sm:$0xff] }
 0x9cf   :  { %v3152_v11 = vrot.slane %v3150_v39, 2  ;;  %v8651_v39 = vld [vmem:[#allocation104_spill] sm:$0xff] }
 0x9d1   :  { %3187 = vmatmul.mubr.bf16.vlgmr.msra.gmra.mrb[48].mxu0 %v3152_v11  ;;  %3228 = vmatmul.mubr.bf16.vlgmr.msra.gmra.mrb[52].mxu1 %v3152_v11  ;;  %v8648_v11 = vld [vmem:[#allocation84_spill] sm:$0xff] }
 0x9d2   :  { %3284 = vmatpush1.bf16.msra.mxu0 %v7800_v46  ;;  %3325 = vmatpush1.bf16.msra.mxu1 %v7627_v19 }
 0x9d3   :  { %3285 = vmatprep.subr.bf16.mxu0 %v7805_v2  ;;  %3326 = vmatprep.subr.bf16.mxu1 %v7632_v18 }
 0x9d4   :  { %3315 = vmatprep.mubr.bf16.mxu0 %v8561_v53  ;;  %3356 = vmatprep.mubr.bf16.mxu1 %v8561_v53 }
 0x9d6   :  { %3286 = vmatpush1.bf16.msra.mxu0 %v7812_v10  ;;  %3327 = vmatpush1.bf16.msra.mxu1 %v7639_v21  ;;  %v8663_v10 = vld [vmem:[#allocation114_spill] sm:$0xff] }
 0x9d7   :  { %3287 = vmatprep.subr.bf16.mxu0 %v7817_v55  ;;  %3328 = vmatprep.subr.bf16.mxu1 %v7644_v26 }
 0x9da   :  { %3288 = vmatpush1.bf16.msra.mxu0 %v7822_v6  ;;  %3329 = vmatpush1.bf16.msra.mxu1 %v7649_v33 }
 0x9db   :  { %3289 = vmatprep.subr.bf16.mxu0 %v7827_v32  ;;  %3330 = vmatprep.subr.bf16.mxu1 %v7654_v43  ;;  %v8653_v43 = vld [vmem:[#allocation105_spill] sm:$0xff] }
 0x9de   :  { %3290 = vmatpush1.bf16.msra.mxu0 %v7832_v22  ;;  %3331 = vmatpush1.bf16.msra.mxu1 %v7659_v42  ;;  %v8654_v22 = vld [vmem:[#allocation87_spill] sm:$0xff]  ;;  %v8655_v42 = vld [vmem:[#allocation106_spill] sm:$0xff] }
 0x9df   :  { %3291 = vmatprep.subr.bf16.mxu0 %v7837_v4  ;;  %3332 = vmatprep.subr.bf16.mxu1 %v7664_v31  ;;  %v8656_v4 = vld [vmem:[#allocation88_spill] sm:$0xff]  ;;  %v8657_v31 = vld [vmem:[#allocation107_spill] sm:$0xff] }
 0x9e2   :  { %3292 = vmatpush1.bf16.msra.mxu0 %v7842_v29  ;;  %3333 = vmatpush1.bf16.msra.mxu1 %v8648_v11  ;;  %v8658_v29 = vld [vmem:[#allocation89_spill] sm:$0xff]  ;;  %v8659_v11 = vld [vmem:[#allocation108_spill] sm:$0xff] }
 0x9e3   :  { %3293 = vmatprep.subr.bf16.mxu0 %v8649_v44  ;;  %3334 = vmatprep.subr.bf16.mxu1 %v8650_v24  ;;  %v8660_v44 = vld [vmem:[#allocation90_spill] sm:$0xff]  ;;  %v8661_v24 = vld [vmem:[#allocation109_spill] sm:$0xff] }
 0x9e6   :  { %3294 = vmatpush1.bf16.msra.mxu0 %v8651_v39  ;;  %3335 = vmatpush1.bf16.msra.mxu1 %v8652_v30  ;;  %v8662_v39 = vld [vmem:[#allocation91_spill] sm:$0xff] }
 0x9e7   :  { %3295 = vmatprep.subr.bf16.mxu0 %v8653_v43  ;;  %3336 = vmatprep.subr.bf16.mxu1 %v8654_v22 }
 0x9ea   :  { %3296 = vmatpush1.bf16.msra.mxu0 %v8655_v42  ;;  %3337 = vmatpush1.bf16.msra.mxu1 %v8656_v4 }
 0x9eb   :  { %3297 = vmatprep.subr.bf16.mxu0 %v8657_v31  ;;  %3338 = vmatprep.subr.bf16.mxu1 %v8658_v29 }
 0x9ee   :  { %3298 = vmatpush1.bf16.msra.mxu0 %v8659_v11  ;;  %3339 = vmatpush1.bf16.msra.mxu1 %v8660_v44 }
 0x9ef   :  { %3414 = vmatprep.subr.bf16.mxu0 %v8661_v24  ;;  %3455 = vmatprep.subr.bf16.mxu1 %v8662_v39 }
 0xa7e   :  { %v3059_v30 = vpop.f32.mrb[44].mxu0  ;;  %v3100_v43 = vpop.f32.mrb[48].mxu1 }
 0xa7f   :  { %v3111_v32 = vrot.slane %v3059_v30, 4  ;;  %v3061_v22 = vpop.f32.mrb[45].mxu0  ;;  %v3102_v33 = vpop.f32.mrb[49].mxu1  ;;  %v3113_v24 = vrot.slane %v3100_v43, 4 }
 0xa80   :  { %v3112_v42 = vrot.slane %v3061_v22, 4  ;;  %v3063_v6 = vpop.f32.mrb[46].mxu0  ;;  %v3104_v4 = vpop.f32.mrb[50].mxu1  ;;  %v3114_v21 = vrot.slane %v3102_v33, 4  ;;  %v3143_v33 = vrot.slane %v7885_v61, 7 }
 0xa81   :  { %v3119_v31 = vadd.f32 %v3111_v32, %v8600_v48  ;;  %v3064_v26 = vpop.f32.mrb[47].mxu0  ;;  %v3105_v29 = vpop.f32.mrb[51].mxu1  ;;  %v3121_v18 = vadd.f32 %v3113_v24, %v8663_v10 }
 0xa82   :  { %v3120_v11 = vadd.f32 %v3112_v42, %v7455_v41  ;;  %v3122_v39 = vadd.f32 %v3114_v21, %v7460_v20 }
 0xa83   :  { %v4896_v55 = vmul.f32 -1.442695, %v3119_v31 }
 0xa84   :  { %v4897_v44 = vmul.f32 -1.442695, %v3120_v11  ;;  %v4898_v30 = vmul.f32 -1.442695, %v3122_v39 }
 0xa85   :  { %5809 = vpow2.f32 %v4896_v55 }
 0xa86   :  { %5811 = vpow2.f32 %v4897_v44 }
 0xa87   :  { %5813 = vpow2.f32 %v4898_v30 }
 0xa88   :  { %5815 = vtanh.f32 %v3121_v18 }
 0xa8f   :  { %v5810_v22 = vpop.eup %5809 }
 0xa90   :  { %v5812_v6 = vpop.eup %5811  ;;  %v3126_v4 = vadd.f32 1.0, %v5810_v22 }
 0xa91   :  { %v3132_v26 = vadd.f32 1.0, %v5812_v6  ;;  %v5814_v42 = vpop.eup %5813 }
 0xa92   :  { %5817 = vrcp.f32 %v3126_v4  ;;  %v5816_v31 = vpop.eup %5815  ;;  %v3139_v21 = vadd.f32 1.0, %v5814_v42 }
 0xa93   :  { %5819 = vrcp.f32 %v3132_v26 }
 0xa94   :  { %5821 = vrcp.f32 %v3139_v21 }
 0xa9c   :  { %v5818_v32 = vpop.eup %5817 }
 0xa9d   :  { %v5820_v55 = vpop.eup %5819  ;;  %v3146_v29 = vmul.f32 %v5818_v32, %v5816_v31 }
 0xa9e   :  { %v3145_v43 = vmul.f32 %v5820_v55, %v3143_v33  ;;  %v5822_v55 = vpop.eup %5821 }
 0xaa0   :  { %v8007_v11 = vadd.f32 %v3146_v29, %v3145_v43 }
 0xaa2   :  { %5823 = vtanh.f32 %v8007_v11 }
 0xaa4   :  { %v3188_v44 = vpop.f32.mrb[48].mxu0  ;;  %v3229_v24 = vpop.f32.mrb[52].mxu1 }
 0xaa5   :  { %v3240_v18 = vrot.slane %v3188_v44, 5  ;;  %v3190_v39 = vpop.f32.mrb[49].mxu0  ;;  %v3231_v30 = vpop.f32.mrb[53].mxu1  ;;  %v3242_v44 = vrot.slane %v3229_v24, 5 }
 0xaa6   :  { %v3241_v22 = vrot.slane %v3190_v39, 5  ;;  %v3192_v6 = vpop.f32.mrb[50].mxu0  ;;  %v3233_v4 = vpop.f32.mrb[54].mxu1  ;;  %v3243_v33 = vrot.slane %v3231_v30, 5 }
 0xaa7   :  { %v3248_v26 = vadd.f32 %v3240_v18, %v7468_v50  ;;  %v3193_v61 = vpop.f32.mrb[51].mxu0  ;;  %v3234_v10 = vpop.f32.mrb[55].mxu1 }
 0xaa8   :  { %v3249_v42 = vadd.f32 %v3241_v22, %v7470_v35  ;;  %v3251_v43 = vadd.f32 %v3243_v33, %v7477_v34  ;;  %v3250_v22 = vadd.f32 %v3242_v44, %v7482_v28 }
 0xaa9   :  { %v4899_v31 = vmul.f32 -1.442695, %v3248_v26 }
 0xaaa   :  { %v4900_v32 = vmul.f32 -1.442695, %v3249_v42  ;;  %v4901_v6 = vmul.f32 -1.442695, %v3251_v43 }
 0xaab   :  { %5825 = vpow2.f32 %v4899_v31  ;;  %v3272_v31 = vrot.slane %v7939_v45, 1  ;;  %v8664_v45 = vld [vmem:[#allocation110_spill] sm:$0xff] }
 0xaac   :  { %v5824_v29 = vpop.eup %5823  ;;  %5827 = vpow2.f32 %v4900_v32 }
 0xaad   :  { %v3149_v21 = vmul.f32 %v5824_v29, %v5822_v55  ;;  %5829 = vpow2.f32 %v4901_v6 }
 0xaae   :  { %5831 = vtanh.f32 %v3250_v22 }
 0xaaf   :  { %v3279_v39 = vpack.c.bf16 %v3149_v21, %v3149_v21  ;;  %v8015_v18 = vsel %vm4052_vm8, %v7892_v0, %v3149_v21 }
 0xab1   :  { %v3281_v10 = vrot.slane %v3279_v39, 2 }
 0xab3   :  { %3316 = vmatmul.mubr.bf16.vlgmr.msra.gmra.mrb[52].mxu0 %v3281_v10  ;;  %3357 = vmatmul.mubr.bf16.vlgmr.msra.gmra.mrb[56].mxu1 %v3281_v10 }
 0xab4   :  { %3415 = vmatpush1.bf16.msra.mxu0 %v7896_v15  ;;  %3456 = vmatpush1.bf16.msra.mxu1 %v7725_v36 }
 0xab5   :  { %v5826_v30 = vpop.eup %5825  ;;  %3416 = vmatprep.subr.bf16.mxu0 %v7900_v52  ;;  %3457 = vmatprep.subr.bf16.mxu1 %v7729_v25 }
 0xab6   :  { %v5828_v24 = vpop.eup %5827  ;;  %v3255_v4 = vadd.f32 1.0, %v5826_v30  ;;  %3446 = vmatprep.mubr.bf16.mxu0 %v8561_v53  ;;  %3487 = vmatprep.mubr.bf16.mxu1 %v8561_v53  ;;  %v8666_v30 = vld [vmem:[#allocation97_spill] sm:$0xff] }
 0xab7   :  { %v3261_v0 = vadd.f32 1.0, %v5828_v24  ;;  %v5830_v26 = vpop.eup %5829  ;;  %v8668_v24 = vld [vmem:[#allocation81_spill] sm:$0xff] }
 0xab8   :  { %5833 = vrcp.f32 %v3255_v4  ;;  %3417 = vmatpush1.bf16.msra.mxu0 %v7906_v51  ;;  %3458 = vmatpush1.bf16.msra.mxu1 %v7735_v16  ;;  %v5832_v61 = vpop.eup %5831  ;;  %v3268_v55 = vadd.f32 1.0, %v5830_v26  ;;  %v8669_v4 = vld [vmem:[#allocation94_spill] sm:$0xff]  ;;  %v8671_v26 = vld [vmem:[#allocation95_spill] sm:$0xff] }
 0xab9   :  { %5835 = vrcp.f32 %v3261_v0  ;;  %3418 = vmatprep.subr.bf16.mxu0 %v7910_v57  ;;  %3459 = vmatprep.subr.bf16.mxu1 %v7739_v58  ;;  %v8670_v0 = vld [vmem:[#allocation98_spill] sm:$0xff] }
 0xaba   :  { %5837 = vrcp.f32 %v3268_v55  ;;  %v8678_v55 = vld [vmem:[#allocation100_spill] sm:$0xff] }
 0xabc   :  { %3419 = vmatpush1.bf16.msra.mxu0 %v7914_v49  ;;  %3460 = vmatpush1.bf16.msra.mxu1 %v7743_v54 }
 0xabd   :  { %3420 = vmatprep.subr.bf16.mxu0 %v7918_v47  ;;  %3461 = vmatprep.subr.bf16.mxu1 %v7747_v59 }
 0xac0   :  { %3421 = vmatpush1.bf16.msra.mxu0 %v7922_v38  ;;  %3462 = vmatpush1.bf16.msra.mxu1 %v7751_v62 }
 0xac1   :  { %3422 = vmatprep.subr.bf16.mxu0 %v7926_v27  ;;  %3463 = vmatprep.subr.bf16.mxu1 %v7755_v63 }
 0xac2   :  { %v5834_v42 = vpop.eup %5833 }
 0xac3   :  { %v5836_v32 = vpop.eup %5835  ;;  %v3275_v33 = vmul.f32 %v5834_v42, %v5832_v61  ;;  %v8672_v61 = vld [vmem:[#allocation82_spill] sm:$0xff]  ;;  %v8674_v42 = vld [vmem:[#allocation99_spill] sm:$0xff] }
 0xac4   :  { %v3274_v29 = vmul.f32 %v5836_v32, %v3272_v31  ;;  %3423 = vmatpush1.bf16.msra.mxu0 %v7931_v60  ;;  %3464 = vmatpush1.bf16.msra.mxu1 %v7760_v5  ;;  %v5838_v43 = vpop.eup %5837  ;;  %v8675_v31 = vld [vmem:[#allocation113_spill] sm:$0xff]  ;;  %v8676_v32 = vld [vmem:[#allocation83_spill] sm:$0xff] }
 0xac5   :  { %3424 = vmatprep.subr.bf16.mxu0 %v7935_v40  ;;  %3465 = vmatprep.subr.bf16.mxu1 %v7764_v8 }
 0xac6   :  { %v8041_v21 = vadd.f32 %v3275_v33, %v3274_v29  ;;  %v8677_v33 = vld [vmem:[#allocation101_spill] sm:$0xff]  ;;  %v8679_v29 = vld [vmem:[#allocation102_spill] sm:$0xff] }
 0xac8   :  { %3425 = vmatpush1.bf16.msra.mxu0 %v7941_v37  ;;  %3466 = vmatpush1.bf16.msra.mxu1 %v7770_v3  ;;  %5839 = vtanh.f32 %v8041_v21 }
 0xac9   :  { %3426 = vmatprep.subr.bf16.mxu0 %v7946_v23  ;;  %3467 = vmatprep.subr.bf16.mxu1 %v7775_v9 }
 0xacc   :  { %3427 = vmatpush1.bf16.msra.mxu0 %v7950_v12  ;;  %3468 = vmatpush1.bf16.msra.mxu1 %v7779_v13 }
 0xacd   :  { %3428 = vmatprep.subr.bf16.mxu0 %v8664_v45  ;;  %3469 = vmatprep.subr.bf16.mxu1 %v7783_v14 }
 0xad0   :  { %3429 = vmatpush1.bf16.msra.mxu0 %v7958_v56  ;;  %3470 = vmatpush1.bf16.msra.mxu1 %v7787_v17 }
 0xad1   :  { %3545 = vmatprep.subr.bf16.mxu0 %v7791_v1  ;;  %3586 = vmatprep.subr.bf16.mxu1 %v7618_v7  ;;  %v8667_v7 = vld [vmem:[#allocation93_spill] sm:$0xff] }
 0xad2   :  { %v5840_v44 = vpop.eup %5839 }
 0xad3   :  { %v8056_v39 = vmul.f32 %v5840_v44, %v5838_v43  ;;  %v8680_v43 = vld [vmem:[#allocation84_spill] sm:$0xff]  ;;  %v8681_v44 = vld [vmem:[#allocation103_spill] sm:$0xff] }
 0xad5   :  { %8665 = vst [vmem:[#allocation112_spill] sm:$0xff] %v8056_v39  ;;  %v3408_v10 = vpack.c.bf16 %v8056_v39, %v8056_v39  ;;  %v8694_v39 = vld [vmem:[#allocation91_spill] sm:$0xff] }
 0xad7   :  { %v3410_v6 = vshrl.u32 %v3408_v10, 16  ;;  %v8682_v10 = vld [vmem:[#allocation85_spill] sm:$0xff] }
 0xad9   :  { %v3412_v22 = vrot.slane %v3410_v6, 1  ;;  %v8683_v6 = vld [vmem:[#allocation104_spill] sm:$0xff] }
 0xadb   :  { %3447 = vmatmul.mubr.bf16.vlgmr.msra.gmra.mrb[56].mxu0 %v3412_v22  ;;  %3488 = vmatmul.mubr.bf16.vlgmr.msra.gmra.mrb[60].mxu1 %v3412_v22  ;;  %v8684_v22 = vld [vmem:[#allocation86_spill] sm:$0xff] }
 0xadc   :  { %3546 = vmatpush1.bf16.msra.mxu0 %v7800_v46  ;;  %3587 = vmatpush1.bf16.msra.mxu1 %v7627_v19  ;;  %v8673_v19 = vld [vmem:[#allocation96_spill] sm:$0xff] }
 0xadd   :  { %3547 = vmatprep.subr.bf16.mxu0 %v7805_v2  ;;  %3588 = vmatprep.subr.bf16.mxu1 %v8666_v30  ;;  %v8685_v30 = vld [vmem:[#allocation105_spill] sm:$0xff] }
 0xade   :  { %3577 = vmatprep.mubr.bf16.mxu0 %v8561_v53  ;;  %3618 = vmatprep.mubr.bf16.mxu1 %v8561_v53 }
 0xae0   :  { %3548 = vmatpush1.bf16.msra.mxu0 %v8667_v7  ;;  %3589 = vmatpush1.bf16.msra.mxu1 %v8668_v24  ;;  %v8686_v24 = vld [vmem:[#allocation87_spill] sm:$0xff] }
 0xae1   :  { %3549 = vmatprep.subr.bf16.mxu0 %v8669_v4  ;;  %3590 = vmatprep.subr.bf16.mxu1 %v8670_v0  ;;  %v8687_v0 = vld [vmem:[#allocation106_spill] sm:$0xff] }
 0xae4   :  { %3550 = vmatpush1.bf16.msra.mxu0 %v8671_v26  ;;  %3591 = vmatpush1.bf16.msra.mxu1 %v8672_v61  ;;  %v8688_v61 = vld [vmem:[#allocation88_spill] sm:$0xff]  ;;  %v8695_v26 = vld [vmem:[#allocation114_spill] sm:$0xff] }
 0xae5   :  { %3551 = vmatprep.subr.bf16.mxu0 %v8673_v19  ;;  %3592 = vmatprep.subr.bf16.mxu1 %v8674_v42  ;;  %v8689_v42 = vld [vmem:[#allocation107_spill] sm:$0xff] }
 0xae8   :  { %3552 = vmatpush1.bf16.msra.mxu0 %v8675_v31  ;;  %3593 = vmatpush1.bf16.msra.mxu1 %v8676_v32  ;;  %v8690_v32 = vld [vmem:[#allocation89_spill] sm:$0xff] }
 0xae9   :  { %3553 = vmatprep.subr.bf16.mxu0 %v8677_v33  ;;  %3594 = vmatprep.subr.bf16.mxu1 %v8678_v55  ;;  %v8691_v55 = vld [vmem:[#allocation108_spill] sm:$0xff] }
 0xaec   :  { %3554 = vmatpush1.bf16.msra.mxu0 %v8679_v29  ;;  %3595 = vmatpush1.bf16.msra.mxu1 %v8680_v43  ;;  %v8692_v43 = vld [vmem:[#allocation90_spill] sm:$0xff] }
 0xaed   :  { %3555 = vmatprep.subr.bf16.mxu0 %v8681_v44  ;;  %3596 = vmatprep.subr.bf16.mxu1 %v8682_v10  ;;  %v8693_v10 = vld [vmem:[#allocation109_spill] sm:$0xff] }
 0xaf0   :  { %3556 = vmatpush1.bf16.msra.mxu0 %v8683_v6  ;;  %3597 = vmatpush1.bf16.msra.mxu1 %v8684_v22 }
 0xaf1   :  { %3557 = vmatprep.subr.bf16.mxu0 %v8685_v30  ;;  %3598 = vmatprep.subr.bf16.mxu1 %v8686_v24 }
 0xaf4   :  { %3558 = vmatpush1.bf16.msra.mxu0 %v8687_v0  ;;  %3599 = vmatpush1.bf16.msra.mxu1 %v8688_v61 }
 0xaf5   :  { %3559 = vmatprep.subr.bf16.mxu0 %v8689_v42  ;;  %3600 = vmatprep.subr.bf16.mxu1 %v8690_v32 }
 0xaf8   :  { %3560 = vmatpush1.bf16.msra.mxu0 %v8691_v55  ;;  %3601 = vmatpush1.bf16.msra.mxu1 %v8692_v43 }
 0xaf9   :  { %3674 = vmatprep.subr.bf16.mxu0 %v8693_v10  ;;  %3715 = vmatprep.subr.bf16.mxu1 %v8694_v39 }
 0xb86   :  { %v3317_v22 = vpop.f32.mrb[52].mxu0  ;;  %v3358_v30 = vpop.f32.mrb[56].mxu1 }
 0xb87   :  { %v3369_v6 = vrot.slane %v3317_v22, 3  ;;  %v3319_v24 = vpop.f32.mrb[53].mxu0  ;;  %v3360_v44 = vpop.f32.mrb[57].mxu1  ;;  %v3371_v10 = vrot.slane %v3358_v30, 3 }
 0xb88   :  { %v3370_v0 = vrot.slane %v3319_v24, 3  ;;  %v3321_v29 = vpop.f32.mrb[54].mxu0  ;;  %v3362_v61 = vpop.f32.mrb[58].mxu1  ;;  %v3372_v19 = vrot.slane %v3360_v44, 3 }
 0xb89   :  { %v3377_v42 = vadd.f32 %v3369_v6, %v8600_v48  ;;  %v3322_v33 = vpop.f32.mrb[55].mxu0  ;;  %v3363_v32 = vpop.f32.mrb[59].mxu1  ;;  %v3379_v4 = vadd.f32 %v3371_v10, %v8695_v26 }
 0xb8a   :  { %v3378_v55 = vadd.f32 %v3370_v0, %v7455_v41  ;;  %v3380_v39 = vadd.f32 %v3372_v19, %v7460_v20 }
 0xb8b   :  { %v4902_v31 = vmul.f32 -1.442695, %v3377_v42 }
 0xb8c   :  { %v4903_v43 = vmul.f32 -1.442695, %v3378_v55  ;;  %v4904_v22 = vmul.f32 -1.442695, %v3380_v39 }
 0xb8d   :  { %5841 = vpow2.f32 %v4902_v31  ;;  %v3401_v31 = vrot.slane %v8007_v11, 7 }
 0xb8e   :  { %5843 = vpow2.f32 %v4903_v43 }
 0xb8f   :  { %5845 = vpow2.f32 %v4904_v22 }
 0xb90   :  { %5847 = vtanh.f32 %v3379_v4 }
 0xb97   :  { %v5842_v24 = vpop.eup %5841 }
 0xb98   :  { %v5844_v29 = vpop.eup %5843  ;;  %v3384_v61 = vadd.f32 1.0, %v5842_v24 }
 0xb99   :  { %v3390_v33 = vadd.f32 1.0, %v5844_v29  ;;  %v5846_v6 = vpop.eup %5845 }
 0xb9a   :  { %5849 = vrcp.f32 %v3384_v61  ;;  %v5848_v0 = vpop.eup %5847  ;;  %v3397_v19 = vadd.f32 1.0, %v5846_v6 }
 0xb9b   :  { %5851 = vrcp.f32 %v3390_v33 }
 0xb9c   :  { %5853 = vrcp.f32 %v3397_v19 }
 0xba4   :  { %v5850_v42 = vpop.eup %5849 }
 0xba5   :  { %v5852_v44 = vpop.eup %5851  ;;  %v3404_v55 = vmul.f32 %v5850_v42, %v5848_v0 }
 0xba6   :  { %v3403_v30 = vmul.f32 %v5852_v44, %v3401_v31  ;;  %v5854_v0 = vpop.eup %5853 }
 0xba8   :  { %v8099_v32 = vadd.f32 %v3404_v55, %v3403_v30 }
 0xbaa   :  { %5855 = vtanh.f32 %v8099_v32 }
 0xbae   :  { %v3448_v10 = vpop.f32.mrb[56].mxu0  ;;  %v3489_v43 = vpop.f32.mrb[60].mxu1 }
 0xbaf   :  { %v3500_v4 = vrot.slane %v3448_v10, 6  ;;  %v3450_v39 = vpop.f32.mrb[57].mxu0  ;;  %v3491_v22 = vpop.f32.mrb[61].mxu1 }
 0xbb0   :  { %v3501_v24 = vrot.slane %v3450_v39, 6  ;;  %v3452_v29 = vpop.f32.mrb[58].mxu0  ;;  %v3493_v61 = vpop.f32.mrb[62].mxu1  ;;  %v3503_v55 = vrot.slane %v3491_v22, 6  ;;  %v3502_v39 = vrot.slane %v3489_v43, 6 }
 0xbb1   :  { %v3508_v33 = vadd.f32 %v3500_v4, %v7468_v50  ;;  %v3453_v11 = vpop.f32.mrb[59].mxu0  ;;  %v3494_v26 = vpop.f32.mrb[63].mxu1 }
 0xbb2   :  { %v3509_v6 = vadd.f32 %v3501_v24, %v7470_v35  ;;  %v3511_v4 = vadd.f32 %v3503_v55, %v7477_v34  ;;  %v3510_v61 = vadd.f32 %v3502_v39, %v7482_v28  ;;  %v8700_v55 = vld [vmem:[#allocation101_spill] sm:$0xff]  ;;  %v8702_v39 = vld [vmem:[#allocation103_spill] sm:$0xff] }
 0xbb3   :  { %v4905_v42 = vmul.f32 -1.442695, %v3508_v33 }
 0xbb4   :  { %v5856_v31 = vpop.eup %5855  ;;  %v4906_v44 = vmul.f32 -1.442695, %v3509_v6  ;;  %v4907_v24 = vmul.f32 -1.442695, %v3511_v4  ;;  %v6024_v4 = vld [vmem:[%s8527_s11 + $0x88] ss:$16 sps:$4 sm:$0xff]  }
 0xbb5   :  { %5857 = vpow2.f32 %v4905_v42  ;;  %v3407_v19 = vmul.f32 %v5856_v31, %v5854_v0  ;;  %v8698_v42 = vld [vmem:[#allocation96_spill] sm:$0xff]  ;;  %v6021_v31 = vld [vmem:[%s8527_s11 + $0x6c] ss:$16 sps:$4 sm:$0xff]  }
 0xbb6   :  { %5859 = vpow2.f32 %v4906_v44  ;;  %v8699_v44 = vld [vmem:[#allocation113_spill] sm:$0xff] }
 0xbb7   :  { %v3539_v30 = vpack.c.bf16 %v3407_v19, %v3407_v19  ;;  %v8106_v10 = vsel %vm4054_vm9, %v8015_v18, %v3407_v19  ;;  %5861 = vpow2.f32 %v4907_v24  ;;  %v6023_v19 = vld [vmem:[%s8527_s11 + $0x8c] ss:$16 sps:$4 sm:$0xff]   ;;  %v6026_v24 = vld [vmem:[%s8527_s11 + $0xa8] ss:$16 sps:$4 sm:$0xff]  }
 0xbb8   :  { %5863 = vtanh.f32 %v3510_v61  ;;  %v8704_v61 = vld [vmem:[#allocation105_spill] sm:$0xff] }
 0xbb9   :  { %v3541_v26 = vshrl.u32 %v3539_v30, 16  ;;  %v8701_v30 = vld [vmem:[#allocation102_spill] sm:$0xff] }
 0xbbb   :  { %v3543_v29 = vrot.slane %v3541_v26, 2  ;;  %v6025_v26 = vld [vmem:[%s8527_s11 + $0xac] ss:$16 sps:$4 sm:$0xff]  }
 0xbbd   :  { %3578 = vmatmul.mubr.bf16.vlgmr.msra.gmra.mrb[60].mxu0 %v3543_v29  ;;  %3619 = vmatmul.mubr.bf16.vlgmr.msra.gmra.mrb[64].mxu1 %v3543_v29  ;;  %v8703_v29 = vld [vmem:[#allocation104_spill] sm:$0xff] }
 0xbbe   :  { %3675 = vmatpush1.bf16.msra.mxu0 %v7896_v15  ;;  %3716 = vmatpush1.bf16.msra.mxu1 %v7725_v36 }
 0xbbf   :  { %v5858_v22 = vpop.eup %5857  ;;  %3676 = vmatprep.subr.bf16.mxu0 %v7900_v52  ;;  %3717 = vmatprep.subr.bf16.mxu1 %v7729_v25 }
 0xbc0   :  { %v5860_v18 = vpop.eup %5859  ;;  %v3515_v33 = vadd.f32 1.0, %v5858_v22  ;;  %3706 = vmatprep.mubr.bf16.mxu0 %v8561_v53  ;;  %3747 = vmatprep.mubr.bf16.mxu1 %v8561_v53  ;;  %v6027_v22 = vld [vmem:[%s8527_s11 + $0xcc] ss:$16 sps:$4 sm:$0xff]  }
 0xbc1   :  { %v3521_v43 = vadd.f32 1.0, %v5860_v18  ;;  %v5862_v36 = vpop.eup %5861  ;;  %v8705_v18 = vld [vmem:[#allocation106_spill] sm:$0xff] }
 0xbc2   :  { %5865 = vrcp.f32 %v3515_v33  ;;  %3677 = vmatpush1.bf16.msra.mxu0 %v7906_v51  ;;  %3718 = vmatpush1.bf16.msra.mxu1 %v7735_v16  ;;  %v5864_v25 = vpop.eup %5863  ;;  %v6028_v33 = vld [vmem:[%s8527_s11 + $0xc8] ss:$16 sps:$4 sm:$0xff]  }
 0xbc3   :  { %5867 = vrcp.f32 %v3521_v43  ;;  %3678 = vmatprep.subr.bf16.mxu0 %v7910_v57  ;;  %3719 = vmatprep.subr.bf16.mxu1 %v7739_v58  ;;  %v3532_v58 = vrot.slane %v8041_v21, 1  ;;  %v8697_v21 = vld [vmem:[#allocation95_spill] sm:$0xff] }
 0xbc4   :  { %v8706_v43 = vld [vmem:[#allocation107_spill] sm:$0xff] }
 0xbc6   :  { %3679 = vmatpush1.bf16.msra.mxu0 %v7914_v49  ;;  %3720 = vmatpush1.bf16.msra.mxu1 %v7743_v54  ;;  %v3528_v54 = vadd.f32 1.0, %v5862_v36  ;;  %v6029_v36 = vld [vmem:[%s8527_s11 + $0xec] ss:$16 sps:$4 sm:$0xff]  }
 0xbc7   :  { %3680 = vmatprep.subr.bf16.mxu0 %v7918_v47  ;;  %3721 = vmatprep.subr.bf16.mxu1 %v7747_v59 }
 0xbc8   :  { %5869 = vrcp.f32 %v3528_v54 }
 0xbca   :  { %3681 = vmatpush1.bf16.msra.mxu0 %v7922_v38  ;;  %3722 = vmatpush1.bf16.msra.mxu1 %v7751_v62 }
 0xbcb   :  { %3682 = vmatprep.subr.bf16.mxu0 %v7926_v27  ;;  %3723 = vmatprep.subr.bf16.mxu1 %v7755_v63  ;;  %v6015_v63 = vld [vmem:[%s8527_s11 + $0xc] ss:$16 sps:$4 sm:$0xff]  }
 0xbcc   :  { %v5866_v16 = vpop.eup %5865 }
 0xbcd   :  { %v5868_v11 = vpop.eup %5867  ;;  %v3535_v6 = vmul.f32 %v5866_v16, %v5864_v25  ;;  %v8707_v25 = vld [vmem:[#allocation108_spill] sm:$0xff] }
 0xbce   :  { %v3534_v0 = vmul.f32 %v5868_v11, %v3532_v58  ;;  %3683 = vmatpush1.bf16.msra.mxu0 %v7931_v60  ;;  %3724 = vmatpush1.bf16.msra.mxu1 %v7760_v5  ;;  %v6030_v16 = vld [vmem:[%s8527_s11 + $0xe8] ss:$16 sps:$4 sm:$0xff]   ;;  %v6031_v11 = vld [vmem:[#allocation28 + $0xc] ss:$16 sps:$4 sm:$0xff]  }
 0xbcf   :  { %3684 = vmatprep.subr.bf16.mxu0 %v7935_v40  ;;  %3725 = vmatprep.subr.bf16.mxu1 %v7764_v8  ;;  %v8708_v58 = vld [vmem:[#allocation109_spill] sm:$0xff] }
 0xbd0   :  { %v8133_v59 = vadd.f32 %v3535_v6, %v3534_v0 }
 0xbd2   :  { %3685 = vmatpush1.bf16.msra.mxu0 %v7941_v37  ;;  %3726 = vmatpush1.bf16.msra.mxu1 %v7770_v3  ;;  %5871 = vtanh.f32 %v8133_v59  ;;  %v5870_v62 = vpop.eup %5869 }
 0xbd3   :  { %3686 = vmatprep.subr.bf16.mxu0 %v7946_v23  ;;  %3727 = vmatprep.subr.bf16.mxu1 %v7775_v9 }
 0xbd6   :  { %3687 = vmatpush1.bf16.msra.mxu0 %v7950_v12  ;;  %3728 = vmatpush1.bf16.msra.mxu1 %v7779_v13  ;;  %v6016_v13 = vld [vmem:[%s8527_s11 + $0x8] ss:$16 sps:$4 sm:$0xff]  }
 0xbd7   :  { %3688 = vmatprep.subr.bf16.mxu0 %v8664_v45  ;;  %3729 = vmatprep.subr.bf16.mxu1 %v7783_v14  ;;  %v6017_v14 = vld [vmem:[%s8527_s11 + $0x2c] ss:$16 sps:$4 sm:$0xff]  }
 0xbda   :  { %3689 = vmatpush1.bf16.msra.mxu0 %v7958_v56  ;;  %3730 = vmatpush1.bf16.msra.mxu1 %v7787_v17  ;;  %v6018_v17 = vld [vmem:[%s8527_s11 + $0x28] ss:$16 sps:$4 sm:$0xff]  }
 0xbdb   :  { %3803 = vmatprep.subr.bf16.mxu0 %v7791_v1  ;;  %3844 = vmatprep.subr.bf16.mxu1 %v6015_v63  ;;  %v8696_v1 = vld [vmem:[#allocation94_spill] sm:$0xff] }
 0xbdc   :  { %v5872_v5 = vpop.eup %5871 }
 0xbdd   :  { %v8148_v8 = vmul.f32 %v5872_v5, %v5870_v62 }
 0xbdf   :  { %v3670_v3 = vpack.c.bf16 %v8148_v8, %v8148_v8 }
 0xbe1   :  { %v3672_v9 = vrot.slane %v3670_v3, 1 }
 0xbe3   :  { %3707 = vmatmul.mubr.bf16.vlgmr.msra.gmra.mrb[64].mxu0 %v3672_v9  ;;  %3748 = vmatmul.mubr.bf16.vlgmr.msra.gmra.mrb[68].mxu1 %v3672_v9 }
 0xbe4   :  { %3804 = vmatpush1.bf16.msra.mxu0 %v7800_v46  ;;  %3845 = vmatpush1.bf16.msra.mxu1 %v6016_v13  ;;  %v6019_v46 = vld [vmem:[%s8527_s11 + $0x4c] ss:$16 sps:$4 sm:$0xff]  }
 0xbe5   :  { %3805 = vmatprep.subr.bf16.mxu0 %v7805_v2  ;;  %3846 = vmatprep.subr.bf16.mxu1 %v6017_v14  ;;  %v6020_v2 = vld [vmem:[%s8527_s11 + $0x48] ss:$16 sps:$4 sm:$0xff]  }
 0xbe6   :  { %3835 = vmatprep.mubr.bf16.mxu0 %v8561_v53  ;;  %3876 = vmatprep.mubr.bf16.mxu1 %v8561_v53 }
 0xbe8   :  { %3806 = vmatpush1.bf16.msra.mxu0 %v8667_v7  ;;  %3847 = vmatpush1.bf16.msra.mxu1 %v6018_v17  ;;  %v6022_v7 = vld [vmem:[%s8527_s11 + $0x68] ss:$16 sps:$4 sm:$0xff]  }
 0xbe9   :  { %3807 = vmatprep.subr.bf16.mxu0 %v8696_v1  ;;  %3848 = vmatprep.subr.bf16.mxu1 %v6019_v46 }
 0xbec   :  { %3808 = vmatpush1.bf16.msra.mxu0 %v8697_v21  ;;  %3849 = vmatpush1.bf16.msra.mxu1 %v6020_v2 }
 0xbed   :  { %3809 = vmatprep.subr.bf16.mxu0 %v8698_v42  ;;  %3850 = vmatprep.subr.bf16.mxu1 %v6021_v31 }
 0xbf0   :  { %3810 = vmatpush1.bf16.msra.mxu0 %v8699_v44  ;;  %3851 = vmatpush1.bf16.msra.mxu1 %v6022_v7  ;;  %v8709_v7 = vld [vmem:[#allocation114_spill] sm:$0xff] }
 0xbf1   :  { %3811 = vmatprep.subr.bf16.mxu0 %v8700_v55  ;;  %3852 = vmatprep.subr.bf16.mxu1 %v6023_v19 }
 0xbf4   :  { %3812 = vmatpush1.bf16.msra.mxu0 %v8701_v30  ;;  %3853 = vmatpush1.bf16.msra.mxu1 %v6024_v4 }
 0xbf5   :  { %3813 = vmatprep.subr.bf16.mxu0 %v8702_v39  ;;  %3854 = vmatprep.subr.bf16.mxu1 %v6025_v26 }
 0xbf8   :  { %3814 = vmatpush1.bf16.msra.mxu0 %v8703_v29  ;;  %3855 = vmatpush1.bf16.msra.mxu1 %v6026_v24 }
 0xbf9   :  { %3815 = vmatprep.subr.bf16.mxu0 %v8704_v61  ;;  %3856 = vmatprep.subr.bf16.mxu1 %v6027_v22  ;;  %v3663_v61 = vrot.slane %v8099_v32, 7 }
 0xbfc   :  { %3816 = vmatpush1.bf16.msra.mxu0 %v8705_v18  ;;  %3857 = vmatpush1.bf16.msra.mxu1 %v6028_v33 }
 0xbfd   :  { %3817 = vmatprep.subr.bf16.mxu0 %v8706_v43  ;;  %3858 = vmatprep.subr.bf16.mxu1 %v6029_v36 }
 0xc00   :  { %3818 = vmatpush1.bf16.msra.mxu0 %v8707_v25  ;;  %3859 = vmatpush1.bf16.msra.mxu1 %v6030_v16 }
 0xc01   :  { %3933 = vmatprep.subr.bf16.mxu0 %v8708_v58  ;;  %3974 = vmatprep.subr.bf16.mxu1 %v6031_v11 }
 0xc90   :  { %v3579_v6 = vpop.f32.mrb[60].mxu0  ;;  %v3620_v54 = vpop.f32.mrb[64].mxu1 }
 0xc91   :  { %v3631_v0 = vrot.slane %v3579_v6, 2  ;;  %v3581_v62 = vpop.f32.mrb[61].mxu0  ;;  %v3622_v63 = vpop.f32.mrb[65].mxu1  ;;  %v3633_v31 = vrot.slane %v3620_v54, 2 }
 0xc92   :  { %v3632_v5 = vrot.slane %v3581_v62, 2  ;;  %v3583_v3 = vpop.f32.mrb[62].mxu0  ;;  %v3624_v9 = vpop.f32.mrb[66].mxu1  ;;  %v3634_v2 = vrot.slane %v3622_v63, 2 }
 0xc93   :  { %v3639_v13 = vadd.f32 %v3631_v0, %v8600_v48  ;;  %v3584_v14 = vpop.f32.mrb[63].mxu0  ;;  %v3625_v17 = vpop.f32.mrb[67].mxu1  ;;  %v3641_v55 = vadd.f32 %v3633_v31, %v8709_v7 }
 0xc94   :  { %v3640_v1 = vadd.f32 %v3632_v5, %v7455_v41  ;;  %v3642_v42 = vadd.f32 %v3634_v2, %v7460_v20 }
 0xc95   :  { %v4908_v46 = vmul.f32 -1.442695, %v3639_v13 }
 0xc96   :  { %v4909_v21 = vmul.f32 -1.442695, %v3640_v1  ;;  %v4910_v44 = vmul.f32 -1.442695, %v3642_v42 }
 0xc97   :  { %5873 = vpow2.f32 %v4908_v46 }
 0xc98   :  { %5875 = vpow2.f32 %v4909_v21 }
 0xc99   :  { %5877 = vpow2.f32 %v4910_v44 }
 0xc9a   :  { %5879 = vtanh.f32 %v3641_v55 }
 0xca1   :  { %v5874_v19 = vpop.eup %5873 }
 0xca2   :  { %v5876_v30 = vpop.eup %5875  ;;  %v3646_v4 = vadd.f32 1.0, %v5874_v19 }
 0xca3   :  { %v3652_v39 = vadd.f32 1.0, %v5876_v30  ;;  %v5878_v26 = vpop.eup %5877  ;;  %v6032_v30 = vld [vmem:[#allocation28 + $0x8] ss:$16 sps:$4 sm:$0xff]  }
 0xca4   :  { %5881 = vrcp.f32 %v3646_v4  ;;  %v5880_v29 = vpop.eup %5879  ;;  %v3659_v33 = vadd.f32 1.0, %v5878_v26 }
 0xca5   :  { %5883 = vrcp.f32 %v3652_v39  ;;  %v6033_v39 = vld [vmem:[#allocation28 + $0x2c] ss:$16 sps:$4 sm:$0xff]  }
 0xca6   :  { %5885 = vrcp.f32 %v3659_v33  ;;  %v3792_v33 = vrot.slane %v8133_v59, 1  ;;  %v6043_v59 = vld [vmem:[#allocation28 + $0xcc] ss:$16 sps:$4 sm:$0xff]  }
 0xcae   :  { %v5882_v24 = vpop.eup %5881 }
 0xcaf   :  { %v5884_v22 = vpop.eup %5883  ;;  %v3666_v18 = vmul.f32 %v5882_v24, %v5880_v29  ;;  %v6036_v24 = vld [vmem:[#allocation28 + $0x48] ss:$16 sps:$4 sm:$0xff]  }
 0xcb0   :  { %v3665_v43 = vmul.f32 %v5884_v22, %v3663_v61  ;;  %v5886_v17 = vpop.eup %5885  ;;  %v6037_v61 = vld [vmem:[#allocation28 + $0x6c] ss:$16 sps:$4 sm:$0xff]   ;;  %v6038_v22 = vld [vmem:[#allocation28 + $0x68] ss:$16 sps:$4 sm:$0xff]  }
 0xcb2   :  { %v8190_v36 = vadd.f32 %v3666_v18, %v3665_v43  ;;  %v6039_v18 = vld [vmem:[#allocation28 + $0x8c] ss:$16 sps:$4 sm:$0xff]  }
 0xcb4   :  { %5887 = vtanh.f32 %v8190_v36 }
 0xcb6   :  { %v3708_v25 = vpop.f32.mrb[64].mxu0  ;;  %v3749_v16 = vpop.f32.mrb[68].mxu1 }
 0xcb7   :  { %v3760_v58 = vrot.slane %v3708_v25, 7  ;;  %v3710_v11 = vpop.f32.mrb[65].mxu0  ;;  %v3751_v6 = vpop.f32.mrb[69].mxu1  ;;  %v3762_v2 = vrot.slane %v3749_v16, 7 }
 0xcb8   :  { %v3761_v54 = vrot.slane %v3710_v11, 7  ;;  %v3712_v0 = vpop.f32.mrb[66].mxu0  ;;  %v3753_v62 = vpop.f32.mrb[70].mxu1  ;;  %v3763_v14 = vrot.slane %v3751_v6, 7  ;;  %v8711_v6 = vmov 0.0|0.0  }
 0xcb9   :  { %v3768_v63 = vadd.f32 %v3760_v58, %v7468_v50  ;;  %v3713_v32 = vpop.f32.mrb[67].mxu0  ;;  %v3754_v5 = vpop.f32.mrb[71].mxu1  ;;  %v3770_v19 = vadd.f32 %v3762_v2, %v7482_v28  ;;  %v4142_v0 = vld [vmem:[%s8710_s0] sm:$0xff]  ;;  %v4143_v62 = vld [vmem:[%s8710_s0 + $0x8] sm:$0xff] }
 0xcba   :  { %v3769_v3 = vadd.f32 %v3761_v54, %v7470_v35  ;;  %v3771_v21 = vadd.f32 %v3763_v14, %v7477_v34  ;;  %v4144_v32 = vld [vmem:[%s8710_s0 + $0x10] sm:$0xff]  ;;  %v4145_v5 = vld [vmem:[%s8710_s0 + $0x18] sm:$0xff]  ;;  %v4151_v2 = vld [vmem:[%s8710_s0 + $0x48] sm:$0xff] }
 0xcbb   :  { %v4911_v9 = vmul.f32 -1.442695, %v3768_v63  ;;  %v5349_v63 = vpack.c.bf16 %v4143_v62, %v4142_v0 }
 0xcbc   :  { %v4912_v13 = vmul.f32 -1.442695, %v3769_v3  ;;  %v4913_v55 = vmul.f32 -1.442695, %v3771_v21  ;;  %v5352_v3 = vpack.c.bf16 %v4145_v5, %v4144_v32  ;;  %v4150_v21 = vld [vmem:[%s8710_s0 + $0x40] sm:$0xff] }
 0xcbd   :  { %5889 = vpow2.f32 %v4911_v9  ;;  %v4146_v9 = vld [vmem:[%s8710_s0 + $0x20] sm:$0xff] }
 0xcbe   :  { %v5888_v1 = vpop.eup %5887  ;;  %5891 = vpow2.f32 %v4912_v13  ;;  %v4147_v13 = vld [vmem:[%s8710_s0 + $0x28] sm:$0xff] }
 0xcbf   :  { %v3669_v46 = vmul.f32 %v5888_v1, %v5886_v17  ;;  %5893 = vpow2.f32 %v4913_v55  ;;  %v5355_v14 = vpack.c.bf16 %v4147_v13, %v4146_v9  ;;  %v4148_v17 = vld [vmem:[%s8710_s0 + $0x30] sm:$0xff]  ;;  %v4149_v1 = vld [vmem:[%s8710_s0 + $0x38] sm:$0xff] }
 0xcc0   :  { %5895 = vtanh.f32 %v3770_v19  ;;  %v4153_v55 = vld [vmem:[%s8710_s0 + $0x58] sm:$0xff] }
 0xcc1   :  { %v3799_v42 = vpack.c.bf16 %v3669_v46, %v3669_v46  ;;  %v8198_v31 = vsel %vm606_vm2, %v8106_v10, %v3669_v46  ;;  %v5358_v46 = vpack.c.bf16 %v4149_v1, %v4148_v17 }
 0xcc3   :  { %v3801_v44 = vrot.slane %v3799_v42, 3  ;;  %v5361_v42 = vpack.c.bf16 %v4151_v2, %v4150_v21 }
 0xcc5   :  { %3836 = vmatmul.mubr.bf16.vlgmr.msra.gmra.mrb[68].mxu0 %v3801_v44  ;;  %3877 = vmatmul.mubr.bf16.vlgmr.msra.gmra.mrb[72].mxu1 %v3801_v44  ;;  %v4152_v44 = vld [vmem:[%s8710_s0 + $0x50] sm:$0xff] }
 0xcc6   :  { %3934 = vmatpush1.bf16.msra.mxu0 %v7896_v15  ;;  %3975 = vmatpush1.bf16.msra.mxu1 %v6032_v30  ;;  %v6034_v15 = vld [vmem:[#allocation28 + $0x28] ss:$16 sps:$4 sm:$0xff]   ;;  %v5364_v19 = vpack.c.bf16 %v4153_v55, %v4152_v44 }
 0xcc7   :  { %v5890_v4 = vpop.eup %5889  ;;  %3935 = vmatprep.subr.bf16.mxu0 %v7900_v52  ;;  %3976 = vmatprep.subr.bf16.mxu1 %v6033_v39  ;;  %v6035_v52 = vld [vmem:[#allocation28 + $0x4c] ss:$16 sps:$4 sm:$0xff]  }
 0xcc8   :  { %v5892_v26 = vpop.eup %5891  ;;  %v3775_v29 = vadd.f32 1.0, %v5890_v4  ;;  %3965 = vmatprep.mubr.bf16.mxu0 %v8561_v53  ;;  %4006 = vmatprep.mubr.bf16.mxu1 %v8561_v53  ;;  %v4154_v30 = vld [vmem:[%s8710_s0 + $0x60] sm:$0xff]  ;;  %v4155_v4 = vld [vmem:[%s8710_s0 + $0x68] sm:$0xff] }
 0xcc9   :  { %v3781_v10 = vadd.f32 1.0, %v5892_v26  ;;  %v5894_v53 = vpop.eup %5893  ;;  %v5367_v39 = vpack.c.bf16 %v4155_v4, %v4154_v30  ;;  %v4156_v26 = vld [vmem:[%s8710_s0 + $0x70] sm:$0xff] }
 0xcca   :  { %5897 = vrcp.f32 %v3775_v29  ;;  %3936 = vmatpush1.bf16.msra.mxu0 %v7906_v51  ;;  %3977 = vmatpush1.bf16.msra.mxu1 %v6034_v15  ;;  %v5896_v51 = vpop.eup %5895  ;;  %v3788_v25 = vadd.f32 1.0, %v5894_v53  ;;  %v4157_v29 = vld [vmem:[%s8710_s0 + $0x78] sm:$0xff]  ;;  %v4158_v15 = vld [vmem:[#allocation37] sm:$0xff] }
 0xccb   :  { %5899 = vrcp.f32 %v3781_v10  ;;  %3937 = vmatprep.subr.bf16.mxu0 %v7910_v57  ;;  %3978 = vmatprep.subr.bf16.mxu1 %v6035_v52  ;;  %v5370_v10 = vpack.c.bf16 %v4157_v29, %v4156_v26  ;;  %v4159_v52 = vld [vmem:[#allocation37 + $0x8] sm:$0xff]  ;;  %v4161_v53 = vld [vmem:[#allocation37 + $0x18] sm:$0xff] }
 0xccc   :  { %5901 = vrcp.f32 %v3788_v25  ;;  %v4166_v25 = vld [vmem:[#allocation37 + $0x40] sm:$0xff] }
 0xcce   :  { %3938 = vmatpush1.bf16.msra.mxu0 %v7914_v49  ;;  %3979 = vmatpush1.bf16.msra.mxu1 %v6036_v24  ;;  %v4160_v24 = vld [vmem:[#allocation37 + $0x10] sm:$0xff] }
 0xccf   :  { %3939 = vmatprep.subr.bf16.mxu0 %v7918_v47  ;;  %3980 = vmatprep.subr.bf16.mxu1 %v6037_v61  ;;  %v6040_v47 = vld [vmem:[#allocation28 + $0x88] ss:$16 sps:$4 sm:$0xff]   ;;  %v5325_v61 = vpack.c.bf16 %v4159_v52, %v4158_v15 }
 0xcd2   :  { %3940 = vmatpush1.bf16.msra.mxu0 %v7922_v38  ;;  %3981 = vmatpush1.bf16.msra.mxu1 %v6038_v22  ;;  %v6041_v38 = vld [vmem:[#allocation28 + $0xac] ss:$16 sps:$4 sm:$0xff]   ;;  %v5328_v22 = vpack.c.bf16 %v4161_v53, %v4160_v24 }
 0xcd3   :  { %3941 = vmatprep.subr.bf16.mxu0 %v7926_v27  ;;  %3982 = vmatprep.subr.bf16.mxu1 %v6039_v18  ;;  %v6042_v27 = vld [vmem:[#allocation28 + $0xa8] ss:$16 sps:$4 sm:$0xff]  }
 0xcd4   :  { %v5898_v57 = vpop.eup %5897  ;;  %v4163_v18 = vld [vmem:[#allocation37 + $0x28] sm:$0xff] }
 0xcd5   :  { %v5900_v49 = vpop.eup %5899  ;;  %v3795_v43 = vmul.f32 %v5898_v57, %v5896_v51  ;;  %v4162_v51 = vld [vmem:[#allocation37 + $0x20] sm:$0xff] }
 0xcd6   :  { %v3794_v16 = vmul.f32 %v5900_v49, %v3792_v33  ;;  %3942 = vmatpush1.bf16.msra.mxu0 %v7931_v60  ;;  %3983 = vmatpush1.bf16.msra.mxu1 %v6040_v47  ;;  %v6044_v60 = vld [vmem:[#allocation28 + $0xc8] ss:$16 sps:$4 sm:$0xff]   ;;  %v5902_v11 = vpop.eup %5901  ;;  %v5331_v57 = vpack.c.bf16 %v4163_v18, %v4162_v51  ;;  %v4164_v33 = vld [vmem:[#allocation37 + $0x30] sm:$0xff] }
 0xcd7   :  { %3943 = vmatprep.subr.bf16.mxu0 %v7935_v40  ;;  %3984 = vmatprep.subr.bf16.mxu1 %v6041_v38  ;;  %v6045_v40 = vld [vmem:[#allocation28 + $0xec] ss:$16 sps:$4 sm:$0xff]   ;;  %v4165_v49 = vld [vmem:[#allocation37 + $0x38] sm:$0xff] }
 0xcd8   :  { %v8214_v58 = vadd.f32 %v3795_v43, %v3794_v16  ;;  %v5334_v43 = vpack.c.bf16 %v4165_v49, %v4164_v33  ;;  %v4167_v16 = vld [vmem:[#allocation37 + $0x48] sm:$0xff]  ;;  %v4168_v38 = vld [vmem:[#allocation37 + $0x50] sm:$0xff] }
 0xcd9   :  { %v5337_v47 = vpack.c.bf16 %v4167_v16, %v4166_v25 }
 0xcda   :  { %3944 = vmatpush1.bf16.msra.mxu0 %v7941_v37  ;;  %3985 = vmatpush1.bf16.msra.mxu1 %v6042_v27  ;;  %5903 = vtanh.f32 %v8214_v58  ;;  %v6046_v37 = vld [vmem:[#allocation28 + $0xe8] ss:$16 sps:$4 sm:$0xff]  }
 0xcdb   :  { %3945 = vmatprep.subr.bf16.mxu0 %v7946_v23  ;;  %3986 = vmatprep.subr.bf16.mxu1 %v6043_v59  ;;  %v4169_v27 = vld [vmem:[#allocation37 + $0x58] sm:$0xff] }
 0xcdc   :  { %v5340_v59 = vpack.c.bf16 %v4169_v27, %v4168_v38 }
 0xcde   :  { %3946 = vmatpush1.bf16.msra.mxu0 %v7950_v12  ;;  %3987 = vmatpush1.bf16.msra.mxu1 %v6044_v60  ;;  %v4170_v60 = vld [vmem:[#allocation37 + $0x60] sm:$0xff] }
 0xcdf   :  { %3947 = vmatprep.subr.bf16.mxu0 %v8664_v45  ;;  %3988 = vmatprep.subr.bf16.mxu1 %v6045_v40  ;;  %v4171_v40 = vld [vmem:[#allocation37 + $0x68] sm:$0xff] }
 0xce2   :  { %3948 = vmatpush1.bf16.msra.mxu0 %v7958_v56  ;;  %3989 = vmatpush1.bf16.msra.mxu1 %v6046_v37  ;;  %v8712_v56 = vmov 0.0   ;;  %v5343_v37 = vpack.c.bf16 %v4171_v40, %v4170_v60 }
 0xce3   :  { %5348 = vmatprep.subr.bf16.mxu1 %v8711_v6  ;;  %5324 = vmatprep.subr.bf16.mxu0 %v8711_v6 }
 0xce4   :  { %v5904_v23 = vpop.eup %5903 }
 0xce5   :  { %v8224_v12 = vmul.f32 %v5904_v23, %v5902_v11  ;;  %v4172_v11 = vld [vmem:[#allocation37 + $0x70] sm:$0xff]  ;;  %v4173_v23 = vld [vmem:[#allocation37 + $0x78] sm:$0xff] }
 0xce7   :  { %v3928_v45 = vpack.c.bf16 %v8224_v12, %v8224_v12 }
 0xce9   :  { %v3930_v54 = vshrl.u32 %v3928_v45, 16  ;;  %v5346_v45 = vpack.c.bf16 %v4173_v23, %v4172_v11 }
 0xceb   :  { %3966 = vmatmul.mubr.bf16.vlgmr.msra.gmra.mrb[72].mxu0 %v3930_v54  ;;  %4007 = vmatmul.mubr.bf16.vlgmr.msra.gmra.mrb[76].mxu1 %v3930_v54 }
 0xcec   :  { %5210 = vmatprep.mubr.msk.f32.mxu1 %vm6695_vm0, %v8712_v56  ;;  %5175 = vmatprep.mubr.msk.f32.mxu0 %vm6695_vm0, %v8712_v56 }
 0xced   :  { %5350 = vmatpush3.bf16.msra.mxu1 %v5349_v63  ;;  %5326 = vmatpush3.bf16.msra.mxu0 %v5325_v61 }
 0xcee   :  { %5351 = vmatprep.subr.bf16.mxu1 %v8711_v6  ;;  %5327 = vmatprep.subr.bf16.mxu0 %v8711_v6 }
 0xcf1   :  { %5353 = vmatpush3.bf16.msra.mxu1 %v5352_v3  ;;  %5329 = vmatpush3.bf16.msra.mxu0 %v5328_v22 }
 0xcf2   :  { %5354 = vmatprep.subr.bf16.mxu1 %v8711_v6  ;;  %5330 = vmatprep.subr.bf16.mxu0 %v8711_v6 }
 0xcf5   :  { %5356 = vmatpush3.bf16.msra.mxu1 %v5355_v14  ;;  %5332 = vmatpush3.bf16.msra.mxu0 %v5331_v57 }
 0xcf6   :  { %5357 = vmatprep.subr.bf16.mxu1 %v8711_v6  ;;  %5333 = vmatprep.subr.bf16.mxu0 %v8711_v6 }
 0xcf9   :  { %5359 = vmatpush3.bf16.msra.mxu1 %v5358_v46  ;;  %5335 = vmatpush3.bf16.msra.mxu0 %v5334_v43 }
 0xcfa   :  { %5360 = vmatprep.subr.bf16.mxu1 %v8711_v6  ;;  %5336 = vmatprep.subr.bf16.mxu0 %v8711_v6 }
 0xcfd   :  { %5362 = vmatpush3.bf16.msra.mxu1 %v5361_v42  ;;  %5338 = vmatpush3.bf16.msra.mxu0 %v5337_v47 }
 0xcfe   :  { %5363 = vmatprep.subr.bf16.mxu1 %v8711_v6  ;;  %5339 = vmatprep.subr.bf16.mxu0 %v8711_v6 }
 0xd01   :  { %5365 = vmatpush3.bf16.msra.mxu1 %v5364_v19  ;;  %5341 = vmatpush3.bf16.msra.mxu0 %v5340_v59 }
 0xd02   :  { %5366 = vmatprep.subr.bf16.mxu1 %v8711_v6  ;;  %5342 = vmatprep.subr.bf16.mxu0 %v8711_v6 }
 0xd05   :  { %5368 = vmatpush3.bf16.msra.mxu1 %v5367_v39  ;;  %5344 = vmatpush3.bf16.msra.mxu0 %v5343_v37 }
 0xd06   :  { %5369 = vmatprep.subr.bf16.mxu1 %v8711_v6  ;;  %5345 = vmatprep.subr.bf16.mxu0 %v8711_v6 }
 0xd09   :  { %5371 = vmatpush3.bf16.msra.mxu1 %v5370_v10  ;;  %5347 = vmatpush3.bf16.msra.mxu0 %v5346_v45  ;;  %v3921_v10 = vrot.slane %v8190_v36, 7 }
 0xd0a   :  { %5396 = vmatprep.subr.bf16.mxu1 %v8711_v6  ;;  %5372 = vmatprep.subr.bf16.mxu0 %v8711_v6 }
 0xd98   :  { %v3837_v54 = vpop.f32.mrb[68].mxu0  ;;  %v3878_v0 = vpop.f32.mrb[72].mxu1 }
 0xd99   :  { %v3889_v62 = vrot.slane %v3837_v54, 1  ;;  %v3839_v63 = vpop.f32.mrb[69].mxu0  ;;  %v3880_v32 = vpop.f32.mrb[73].mxu1  ;;  %v3891_v44 = vrot.slane %v3878_v0, 1 }
 0xd9a   :  { %v3890_v5 = vrot.slane %v3839_v63, 1  ;;  %v3841_v3 = vpop.f32.mrb[70].mxu0  ;;  %v3882_v9 = vpop.f32.mrb[74].mxu1  ;;  %v3892_v2 = vrot.slane %v3880_v32, 1 }
 0xd9b   :  { %v3897_v13 = vadd.f32 %v3889_v62, %v8600_v48  ;;  %v3842_v14 = vpop.f32.mrb[71].mxu0  ;;  %v3883_v17 = vpop.f32.mrb[75].mxu1  ;;  %v3899_v19 = vadd.f32 %v3891_v44, %v8709_v7 }
 0xd9c   :  { %v3898_v1 = vadd.f32 %v3890_v5, %v7455_v41  ;;  %v3900_v42 = vadd.f32 %v3892_v2, %v7460_v20 }
 0xd9d   :  { %v4914_v46 = vmul.f32 -1.442695, %v3897_v13 }
 0xd9e   :  { %v4915_v21 = vmul.f32 -1.442695, %v3898_v1  ;;  %v4916_v55 = vmul.f32 -1.442695, %v3900_v42  ;;  %v4039_v42 = vrot.slane %v8214_v58, 1 }
 0xd9f   :  { %5905 = vpow2.f32 %v4914_v46 }
 0xda0   :  { %5907 = vpow2.f32 %v4915_v21 }
 0xda1   :  { %5909 = vpow2.f32 %v4916_v55 }
 0xda2   :  { %5911 = vtanh.f32 %v3899_v19 }
 0xda9   :  { %v5906_v30 = vpop.eup %5905 }
 0xdaa   :  { %v5908_v4 = vpop.eup %5907  ;;  %v3904_v39 = vadd.f32 1.0, %v5906_v30 }
 0xdab   :  { %v3910_v48 = vadd.f32 1.0, %v5908_v4  ;;  %v5910_v41 = vpop.eup %5909 }
 0xdac   :  { %5913 = vrcp.f32 %v3904_v39  ;;  %v5912_v26 = vpop.eup %5911  ;;  %v3917_v20 = vadd.f32 1.0, %v5910_v41 }
 0xdad   :  { %5915 = vrcp.f32 %v3910_v48 }
 0xdae   :  { %5917 = vrcp.f32 %v3917_v20  ;;  %v4920_v20 = vld [vmem:[#allocation31] ss:$0 sm:$0xff] }
 0xdb6   :  { %v5914_v29 = vpop.eup %5913 }
 0xdb7   :  { %v5916_v15 = vpop.eup %5915  ;;  %v3924_v52 = vmul.f32 %v5914_v29, %v5912_v26 }
 0xdb8   :  { %v3923_v24 = vmul.f32 %v5916_v15, %v3921_v10  ;;  %v5918_v47 = vpop.eup %5917 }
 0xdba   :  { %v3925_v61 = vadd.f32 %v3924_v52, %v3923_v24 }
 0xdbc   :  { %5919 = vtanh.f32 %v3925_v61  ;;  %v4921_v61 = vld [vmem:[#allocation32] ss:$0 sm:$0xff] }
 0xdbe   :  { %v3967_v7 = vpop.f32.mrb[72].mxu0  ;;  %v4008_v53 = vpop.f32.mrb[76].mxu1 }
 0xdbf   :  { %v4015_v22 = vadd.f32 %v3967_v7, %v7468_v50  ;;  %v3969_v51 = vpop.f32.mrb[73].mxu0  ;;  %v4010_v18 = vpop.f32.mrb[77].mxu1  ;;  %v4017_v37 = vadd.f32 %v4008_v53, %v7482_v28 }
 0xdc0   :  { %v4016_v57 = vadd.f32 %v3969_v51, %v7470_v35  ;;  %v3971_v33 = vpop.f32.mrb[74].mxu0  ;;  %v4012_v49 = vpop.f32.mrb[78].mxu1  ;;  %v4018_v27 = vadd.f32 %v4010_v18, %v7477_v34 }
 0xdc1   :  { %v4917_v43 = vmul.f32 -1.442695, %v4015_v22  ;;  %v3972_v25 = vpop.f32.mrb[75].mxu0  ;;  %v4013_v36 = vpop.f32.mrb[79].mxu1  ;;  %v8713_v22 = vld [vmem:[#allocation112_spill] sm:$0xff] }
 0xdc2   :  { %v4918_v16 = vmul.f32 -1.442695, %v4016_v57  ;;  %v4919_v60 = vmul.f32 -1.442695, %v4018_v27  ;;  %v8714_v57 = vld [vmem:[#allocation111_spill] sm:$0xff]  ;;  %v8715_v49 = vld [vmem:[#allocation92_spill] sm:$0xff] }
 0xdc3   :  { %5921 = vpow2.f32 %v4917_v43  ;;  %v8716_v25 = vld [vmem:[#allocation80_spill] sm:$0xff] }
 0xdc4   :  { %5923 = vpow2.f32 %v4918_v16 }
 0xdc5   :  { %5925 = vpow2.f32 %v4919_v60 }
 0xdc6   :  { %v5920_v38 = vpop.eup %5919  ;;  %5927 = vtanh.f32 %v4017_v37 }
 0xdc7   :  { %v3927_v59 = vmul.f32 %v5920_v38, %v5918_v47 }
 0xdc9   :  { %v4058_v50 = vsel %vm4057_vm10, %v8198_v31, %v3927_v59 }
 0xdca   :  { %v4068_v40 = vrot.slane %v4058_v50, 4  ;;  %v4075_v35 = vmul.f32 %v4058_v50, %v4058_v50 }
 0xdcc   :  { %v4069_v11 = vadd.f32 %v4068_v40, %v4058_v50  ;;  %v4076_v23 = vrot.slane %v4075_v35, 4 }
 0xdcd   :  { %v5922_v45 = vpop.eup %5921 }
 0xdce   :  { %v5924_v54 = vpop.eup %5923  ;;  %v4022_v0 = vadd.f32 1.0, %v5922_v45  ;;  %v4070_v62 = vrot.slane %v4069_v11, 2  ;;  %v4077_v63 = vadd.f32 %v4076_v23, %v4075_v35 }
 0xdcf   :  { %v4028_v34 = vadd.f32 1.0, %v5924_v54  ;;  %v5926_v17 = vpop.eup %5925 }
 0xdd0   :  { %5929 = vrcp.f32 %v4022_v0  ;;  %v4071_v32 = vadd.f32 %v4070_v62, %v4069_v11  ;;  %v4078_v5 = vrot.slane %v4077_v63, 2  ;;  %v5928_v21 = vpop.eup %5927  ;;  %v4035_v30 = vadd.f32 1.0, %v5926_v17  ;;  %v4361_v17 = vld [vmem:[%s8718_s29] sm:$0xff] }
 0xdd1   :  { %5931 = vrcp.f32 %v4028_v34 }
 0xdd2   :  { %v4072_v31 = vrot.slane %v4071_v32, 1  ;;  %v4079_v3 = vadd.f32 %v4078_v5, %v4077_v63  ;;  %5933 = vrcp.f32 %v4035_v30  ;;  %v4368_v30 = vld [vmem:[%s8718_s29 + $0x38] sm:$0xff] }
 0xdd4   :  { %v4073_v9 = vadd.f32 %v4072_v31, %v4071_v32  ;;  %v4080_v13 = vrot.slane %v4079_v3, 1 }
 0xdd6   :  { %v4074_v14 = vmul.f32 0.125, %v4073_v9  ;;  %v4081_v28 = vadd.f32 %v4080_v13, %v4079_v3  ;;  %v4922_v3 = vld [vmem:[#allocation34] ss:$0 sm:$0xff]  ;;  %v4923_v13 = vld [vmem:[#allocation35] ss:$0 sm:$0xff] }
 0xdd8   :  { %v4082_v1 = vmul.f32 0.125, %v4081_v28  ;;  %v4083_v46 = vmul.f32 %v4074_v14, %v4074_v14  ;;  %v4086_v10 = vsub.f32 %v4058_v50, %v4074_v14 }
 0xdda   :  { %v5930_v2 = vpop.eup %5929  ;;  %v4084_v44 = vsub.f32 %v4082_v1, %v4083_v46  ;;  %v4362_v1 = vld [vmem:[%s8718_s29 + $0x8] sm:$0xff] }
 0xddb   :  { %v5932_v55 = vpop.eup %5931  ;;  %v4042_v19 = vmul.f32 %v5930_v2, %v5928_v21  ;;  %v5373_v46 = vpack.c.bf16 %v4362_v1, %v4361_v17  ;;  %v4363_v21 = vld [vmem:[%s8718_s29 + $0x10] sm:$0xff]  ;;  %v4364_v2 = vld [vmem:[%s8718_s29 + $0x18] sm:$0xff]  ;;  %v4500_v1 = vld [vmem:[%s8722_s6 + $0x20] sm:$0xff] }
 0xddc   :  { %v4041_v4 = vmul.f32 %v5932_v55, %v4039_v42  ;;  %v4085_v39 = vmax.f32 %v4084_v44, 0.0  ;;  %v5934_v26 = vpop.eup %5933  ;;  %v5376_v42 = vpack.c.bf16 %v4364_v2, %v4363_v21  ;;  %v4365_v44 = vld [vmem:[%s8718_s29 + $0x20] sm:$0xff]  ;;  %v4502_v2 = vld [vmem:[%s8722_s6 + $0x30] sm:$0xff] }
 0xdde   :  { %v4043_v48 = vadd.f32 %v4042_v19, %v4041_v4  ;;  %v4087_v41 = vadd.f32 1e-05, %v4085_v39  ;;  %v4367_v19 = vld [vmem:[%s8718_s29 + $0x30] sm:$0xff]  ;;  %v4369_v39 = vld [vmem:[%s8718_s29 + $0x40] sm:$0xff] }
 0xddf   :  { %v5382_v4 = vpack.c.bf16 %v4368_v30, %v4367_v19 }
 0xde0   :  { %5935 = vtanh.f32 %v4043_v48  ;;  %v4370_v48 = vld [vmem:[%s8718_s29 + $0x48] sm:$0xff] }
 0xde1   :  { %5937 = vrsqrt.f32 %v4087_v41  ;;  %v5385_v41 = vpack.c.bf16 %v4370_v48, %v4369_v39 }
 0xdea   :  { %v5936_v29 = vpop.eup %5935 }
 0xdeb   :  { %v5938_v15 = vpop.eup %5937  ;;  %v4045_v52 = vmul.f32 %v5936_v29, %v5934_v26  ;;  %v4371_v26 = vld [vmem:[%s8718_s29 + $0x50] sm:$0xff]  ;;  %v4372_v29 = vld [vmem:[%s8718_s29 + $0x58] sm:$0xff] }
 0xdec   :  { %v4089_v24 = vmul.f32 %v5938_v15, %v4086_v10  ;;  %v5388_v10 = vpack.c.bf16 %v4372_v29, %v4371_v26  ;;  %v4373_v15 = vld [vmem:[%s8718_s29 + $0x60] sm:$0xff] }
 0xded   :  { %v4059_v58 = vsel %vm4046_vm5, %v4045_v52, %v8224_v12  ;;  %v8717_v12 = vld [vmem:[#allocation116_spill] sm:$0xff]  ;;  %v4374_v52 = vld [vmem:[%s8718_s29 + $0x68] sm:$0xff] }
 0xdee   :  { %v4060_v7 = vsel %vm4048_vm6, %v4059_v58, %v8148_v8  ;;  %v4096_v53 = vmul.f32 %v4920_v20, %v4089_v24  ;;  %v5391_v20 = vpack.c.bf16 %v4374_v52, %v4373_v15  ;;  %v4375_v24 = vld [vmem:[%s8718_s29 + $0x70] sm:$0xff]  ;;  %v4376_v58 = vld [vmem:[%s8718_s29 + $0x78] sm:$0xff] }
 0xdef   :  { %v4061_v51 = vsel %vm4050_vm7, %v4060_v7, %v8713_v22 }
 0xdf0   :  { %v4103_v18 = vadd.f32 %v4921_v61, %v4096_v53  ;;  %v4062_v33 = vsel %vm4052_vm8, %v4061_v51, %v8714_v57  ;;  %v5394_v61 = vpack.c.bf16 %v4376_v58, %v4375_v24  ;;  %v4924_v51 = vld [vmem:[%s8719_s16] ss:$0 sm:$0xff] }
 0xdf1   :  { %v4063_v43 = vsel %vm4054_vm9, %v4062_v33, %v8715_v49 }
 0xdf2   :  { %5211 = vmatmul.mubr.f32.vlgmr.msra.gmra.mrb[6].mxu1 %v4103_v18  ;;  %v4064_v36 = vsel %vm606_vm2, %v4063_v43, %v8716_v25 }
 0xdf3   :  { %v4065_v16 = vsel %vm4057_vm10, %v4064_v36, %v8717_v12  ;;  %5264 = vmatprep.mubr.msk.f32.mxu1 %vm6695_vm0, %v8712_v56 }
 0xdf4   :  { %v4106_v8 = vrot.slane %v4065_v16, 4  ;;  %v4113_v47 = vmul.f32 %v4065_v16, %v4065_v16 }
 0xdf6   :  { %v4107_v38 = vadd.f32 %v4106_v8, %v4065_v16  ;;  %v4114_v27 = vrot.slane %v4113_v47, 4 }
 0xdf8   :  { %v4108_v59 = vrot.slane %v4107_v38, 2  ;;  %v4115_v50 = vadd.f32 %v4114_v27, %v4113_v47 }
 0xdfa   :  { %v4109_v60 = vadd.f32 %v4108_v59, %v4107_v38  ;;  %v4116_v40 = vrot.slane %v4115_v50, 2 }
 0xdfc   :  { %v4110_v35 = vrot.slane %v4109_v60, 1  ;;  %v4117_v37 = vadd.f32 %v4116_v40, %v4115_v50 }
 0xdfe   :  { %v4111_v11 = vadd.f32 %v4110_v35, %v4109_v60  ;;  %v4118_v23 = vrot.slane %v4117_v37, 1 }
 0xe00   :  { %v4112_v45 = vmul.f32 0.125, %v4111_v11  ;;  %v4119_v54 = vadd.f32 %v4118_v23, %v4117_v37 }
 0xe02   :  { %v4120_v0 = vmul.f32 0.125, %v4119_v54  ;;  %v4121_v62 = vmul.f32 %v4112_v45, %v4112_v45  ;;  %v4124_v5 = vsub.f32 %v4065_v16, %v4112_v45 }
 0xe04   :  { %v4122_v63 = vsub.f32 %v4120_v0, %v4121_v62  ;;  %v4925_v62 = vld [vmem:[%s8720_s21] ss:$0 sm:$0xff] }
 0xe06   :  { %v4123_v34 = vmax.f32 %v4122_v63, 0.0 }
 0xe08   :  { %v4125_v32 = vadd.f32 1e-05, %v4123_v34  ;;  %v4926_v34 = vld [vmem:[%s8721_s12] ss:$0 sm:$0xff] }
 0xe0a   :  { %5939 = vrsqrt.f32 %v4125_v32 }
 0xe14   :  { %v5940_v31 = vpop.eup %5939 }
 0xe15   :  { %v4127_v9 = vmul.f32 %v5940_v31, %v4124_v5 }
 0xe17   :  { %v4134_v14 = vmul.f32 %v4922_v3, %v4127_v9  ;;  %v4496_v3 = vld [vmem:[%s8722_s6] sm:$0xff]  ;;  %v4497_v9 = vld [vmem:[%s8722_s6 + $0x8] sm:$0xff] }
 0xe19   :  { %v4141_v28 = vadd.f32 %v4923_v13, %v4134_v14  ;;  %v5397_v13 = vpack.c.bf16 %v4497_v9, %v4496_v3  ;;  %v4498_v14 = vld [vmem:[%s8722_s6 + $0x10] sm:$0xff] }
 0xe1b   :  { %5176 = vmatmul.mubr.f32.vlgmr.msra.gmra.mrb[76].mxu0 %v4141_v28  ;;  %5398 = vmatpush3.bf16.msra.mxu1 %v5397_v13  ;;  %v4499_v28 = vld [vmem:[%s8722_s6 + $0x18] sm:$0xff] }
 0xe1c   :  { %5245 = vmatprep.mubr.msk.f32.mxu0 %vm6695_vm0, %v8712_v56  ;;  %5374 = vmatpush3.bf16.msra.mxu0 %v5373_v46  ;;  %v4366_v56 = vld [vmem:[%s8718_s29 + $0x28] sm:$0xff]  ;;  %v5400_v17 = vpack.c.bf16 %v4499_v28, %v4498_v14 }
 0xe1d   :  { %5375 = vmatprep.subr.bf16.mxu0 %v8711_v6  ;;  %v5379_v55 = vpack.c.bf16 %v4366_v56, %v4365_v44  ;;  %5399 = vmatprep.subr.bf16.mxu1 %v8711_v6  ;;  %v4501_v46 = vld [vmem:[%s8722_s6 + $0x28] sm:$0xff]  ;;  %v4927_v56 = vld [vmem:[%s8723_s18] ss:$0 sm:$0xff] }
 0xe1e   :  { %v5403_v21 = vpack.c.bf16 %v4501_v46, %v4500_v1 }
 0xe1f   :  { %5401 = vmatpush3.bf16.msra.mxu1 %v5400_v17 }
 0xe20   :  { %5377 = vmatpush3.bf16.msra.mxu0 %v5376_v42  ;;  %5402 = vmatprep.subr.bf16.mxu1 %v8711_v6  ;;  %v4503_v42 = vld [vmem:[%s8722_s6 + $0x38] sm:$0xff] }
 0xe21   :  { %5378 = vmatprep.subr.bf16.mxu0 %v8711_v6  ;;  %v5406_v44 = vpack.c.bf16 %v4503_v42, %v4502_v2  ;;  %v4933_v42 = vld [vmem:[%s6903_s9] ss:$0 sm:$0xff]  ;;  %s6553_s9 = scalar_lea.vmem %s4645_s7, 128 }
 0xe22   :  { %p6554_p2 = scmp.ne.s32.totalorder %s4645_s7, %s6553_s9  ;;  %p6559_p4 = scmp.lt.s32.totalorder %s6553_s9, %s6553_s9 }
 0xe23   :  { %5404 = vmatpush3.bf16.msra.mxu1 %v5403_v21  ;;  %v4932_v21 = vld [vmem:[%s8727_s1] ss:$0 sm:$0xff] }
 0xe24   :  { %5380 = vmatpush3.bf16.msra.mxu0 %v5379_v55  ;;  %5405 = vmatprep.subr.bf16.mxu1 %v8711_v6  ;;  %p6560_p5 = por %p6559_p4, %p6558_p3 }
 0xe25   :  { %5381 = vmatprep.subr.bf16.mxu0 %v8711_v6 }
 0xe26   :  { %p6561_p6 = pnand %p6560_p5, %p6554_p2 }
 0xe27   :  { %5407 = vmatpush3.bf16.msra.mxu1 %v5406_v44 }
 0xe28   :  { %5383 = vmatpush3.bf16.msra.mxu0 %v5382_v4 }
 0xe29   :  { %5384 = vmatprep.subr.bf16.mxu0 %v8711_v6 }
 0xe2c   :  { %5386 = vmatpush3.bf16.msra.mxu0 %v5385_v41 }
 0xe2d   :  { %5387 = vmatprep.subr.bf16.mxu0 %v8711_v6 }
 0xe30   :  { %5389 = vmatpush3.bf16.msra.mxu0 %v5388_v10 }
 0xe31   :  { %5390 = vmatprep.subr.bf16.mxu0 %v8711_v6 }
 0xe34   :  { %5392 = vmatpush3.bf16.msra.mxu0 %v5391_v20 }
 0xe35   :  { %5393 = vmatprep.subr.bf16.mxu0 %v8711_v6 }
 0xe38   :  { %5395 = vmatpush3.bf16.msra.mxu0 %v5394_v61 }
 0xec5   :  { %v4310_v7 = vpop.f32.mrb[6].mxu1 }
 0xec6   :  { %v5212_v53 = vpop.f32.mrb[7].mxu1 }
 0xeee   :  { %v4240_v22 = vpop.f32.mrb[76].mxu0 }
 0xeef   :  { %v4311_v18 = vadd.f32 %v4310_v7, %v4240_v22  ;;  %v5177_v57 = vpop.f32.mrb[77].mxu0 }
 0xef1   :  { %v4321_v33 = vadd.f32 %v4924_v51, %v4311_v18 }
 0xef3   :  { %v4324_v49 = vrot.slane %v4321_v33, 4  ;;  %v4331_v43 = vmul.f32 %v4321_v33, %v4321_v33 }
 0xef5   :  { %v4325_v25 = vadd.f32 %v4324_v49, %v4321_v33  ;;  %v4332_v36 = vrot.slane %v4331_v43, 4 }
 0xef7   :  { %v4326_v12 = vrot.slane %v4325_v25, 2  ;;  %v4333_v16 = vadd.f32 %v4332_v36, %v4331_v43 }
 0xef9   :  { %v4327_v8 = vadd.f32 %v4326_v12, %v4325_v25  ;;  %v4334_v47 = vrot.slane %v4333_v16, 2  ;;  %v4928_v25 = vld [vmem:[%s8724_s26] ss:$0 sm:$0xff] }
 0xefa   :  { %v4929_v12 = vld [vmem:[%s8725_s30] ss:$0 sm:$0xff] }
 0xefb   :  { %v4328_v38 = vrot.slane %v4327_v8, 1  ;;  %v4335_v27 = vadd.f32 %v4334_v47, %v4333_v16 }
 0xefd   :  { %v4329_v59 = vadd.f32 %v4328_v38, %v4327_v8  ;;  %v4336_v50 = vrot.slane %v4335_v27, 1  ;;  %v4930_v38 = vld [vmem:[%s8726_s28] ss:$0 sm:$0xff] }
 0xeff   :  { %v4330_v60 = vmul.f32 0.125, %v4329_v59  ;;  %v4337_v40 = vadd.f32 %v4336_v50, %v4335_v27 }
 0xf01   :  { %v4338_v35 = vmul.f32 0.125, %v4337_v40  ;;  %v4339_v37 = vmul.f32 %v4330_v60, %v4330_v60  ;;  %v4342_v54 = vsub.f32 %v4321_v33, %v4330_v60 }
 0xf03   :  { %v4340_v11 = vsub.f32 %v4338_v35, %v4339_v37 }
 0xf05   :  { %v4341_v23 = vmax.f32 %v4340_v11, 0.0 }
 0xf07   :  { %v4343_v45 = vadd.f32 1e-05, %v4341_v23 }
 0xf09   :  { %5941 = vrsqrt.f32 %v4343_v45 }
 0xf13   :  { %v5942_v0 = vpop.eup %5941 }
 0xf14   :  { %v4345_v63 = vmul.f32 %v5942_v0, %v4342_v54 }
 0xf16   :  { %v4352_v32 = vmul.f32 %v4925_v62, %v4345_v63 }
 0xf18   :  { %v4359_v5 = vadd.f32 %v4926_v34, %v4352_v32 }
 0xf1a   :  { %v4360_v31 = vmax.f32 %v4359_v5, 0.0 }
 0xf1c   :  { %5246 = vmatmul.mubr.f32.vlgmr.msra.gmra.mrb[78].mxu0 %v4360_v31 }
 0xfef   :  { %v4450_v55 = vpop.f32.mrb[78].mxu0 }
 0xff0   :  { %v4451_v19 = vadd.f32 %v4927_v56, %v4450_v55  ;;  %v5247_v30 = vpop.f32.mrb[79].mxu0 }
 0xff2   :  { %v4457_v4 = vsel %vm4456_vm11, %v4451_v19, 0.0  ;;  %v4465_v39 = vmul.f32 %v4451_v19, %v4451_v19 }
 0xff3   :  { %v4458_v48 = vrot.slane %v4457_v4, 4 }
 0xff4   :  { %v4466_v41 = vsel %vm4456_vm11, %v4465_v39, 0.0 }
 0xff5   :  { %v4459_v26 = vadd.f32 %v4458_v48, %v4457_v4  ;;  %v4467_v29 = vrot.slane %v4466_v41, 4 }
 0xff7   :  { %v4460_v10 = vrot.slane %v4459_v26, 2  ;;  %v4468_v15 = vadd.f32 %v4467_v29, %v4466_v41 }
 0xff9   :  { %v4461_v6 = vadd.f32 %v4460_v10, %v4459_v26  ;;  %v4469_v52 = vrot.slane %v4468_v15, 2 }
 0xffb   :  { %v4462_v20 = vrot.slane %v4461_v6, 1  ;;  %v4470_v24 = vadd.f32 %v4469_v52, %v4468_v15 }
 0xffd   :  { %v4463_v58 = vadd.f32 %v4462_v20, %v4461_v6  ;;  %v4471_v61 = vrot.slane %v4470_v24, 1 }
 0xfff   :  { %v4464_v7 = vmul.f32 0.125, %v4463_v58  ;;  %v4472_v53 = vadd.f32 %v4471_v61, %v4470_v24 }
0x1001   :  { %v4473_v22 = vmul.f32 0.125, %v4472_v53  ;;  %v4474_v51 = vmul.f32 %v4464_v7, %v4464_v7  ;;  %v4477_v49 = vsub.f32 %v4451_v19, %v4464_v7 }
0x1003   :  { %v4475_v18 = vsub.f32 %v4473_v22, %v4474_v51 }
0x1005   :  { %v4476_v57 = vmax.f32 %v4475_v18, 0.0 }
0x1007   :  { %v4478_v33 = vadd.f32 1e-05, %v4476_v57 }
0x1009   :  { %5943 = vrsqrt.f32 %v4478_v33 }
0x1013   :  { %v5944_v43 = vpop.eup %5943 }
0x1014   :  { %v4480_v36 = vmul.f32 %v5944_v43, %v4477_v49 }
0x1016   :  { %v4487_v16 = vmul.f32 %v4928_v25, %v4480_v36 }
0x1018   :  { %v4494_v8 = vadd.f32 %v4929_v12, %v4487_v16 }
0x101a   :  { %v4495_v47 = vmax.f32 %v4494_v8, 0.0 }
0x101c   :  { %5265 = vmatmul.mubr.msk.f32.vlgmr.msra.gmra.mrb[80].mxu1 %vm4456_vm11, %v4495_v47 }
0x10ef   :  { %v4580_v27 = vpop.f32.mrb[80].mxu1 }
0x10f0   :  { %v4581_v59 = vadd.f32 %v4930_v38, %v4580_v27  ;;  %v5266_v50 = vpop.f32.mrb[81].mxu1 }
0x10f2   :  { %v4587_v60 = vsel %vm4586_vm12, %v4581_v59, 0.0  ;;  %v4595_v40 = vmul.f32 %v4581_v59, %v4581_v59 }
0x10f3   :  { %v4588_v35 = vrot.slane %v4587_v60, 4 }
0x10f4   :  { %v4596_v37 = vsel %vm4586_vm12, %v4595_v40, 0.0 }
0x10f5   :  { %v4589_v11 = vadd.f32 %v4588_v35, %v4587_v60  ;;  %v4597_v23 = vrot.slane %v4596_v37, 4 }
0x10f7   :  { %v4590_v45 = vrot.slane %v4589_v11, 2  ;;  %v4598_v54 = vadd.f32 %v4597_v23, %v4596_v37 }
0x10f9   :  { %v4591_v0 = vadd.f32 %v4590_v45, %v4589_v11  ;;  %v4599_v62 = vrot.slane %v4598_v54, 2 }
0x10fb   :  { %v4592_v63 = vrot.slane %v4591_v0, 1  ;;  %v4600_v34 = vadd.f32 %v4599_v62, %v4598_v54 }
0x10fd   :  { %v4593_v32 = vadd.f32 %v4592_v63, %v4591_v0  ;;  %v4601_v5 = vrot.slane %v4600_v34, 1 }
0x10ff   :  { %v4594_v31 = vmul.f32 0.125, %v4593_v32  ;;  %v4602_v3 = vadd.f32 %v4601_v5, %v4600_v34 }
0x1101   :  { %v4603_v9 = vmul.f32 0.125, %v4602_v3  ;;  %v4604_v13 = vmul.f32 %v4594_v31, %v4594_v31  ;;  %v4607_v1 = vsub.f32 %v4581_v59, %v4594_v31 }
0x1103   :  { %v4605_v14 = vsub.f32 %v4603_v9, %v4604_v13 }
0x1105   :  { %v4606_v28 = vmax.f32 %v4605_v14, 0.0 }
0x1107   :  { %v4608_v17 = vadd.f32 1e-05, %v4606_v28 }
0x1109   :  { %5945 = vrsqrt.f32 %v4608_v17 }
0x1113   :  { %v5946_v46 = vpop.eup %5945 }
0x1114   :  { %v4610_v2 = vmul.f32 %v5946_v46, %v4607_v1 }
0x1116   :  { %v4617_v44 = vmul.f32 %v4932_v21, %v4610_v2 }
0x1118   :  { %v4624_v56 = vadd.f32 %v4933_v42, %v4617_v44 }
0x111a   :  { %v4625_v55 = vmax.f32 %v4624_v56, 0.0 }
0x111c   :  { %v4626_v19 = vsel %vm4586_vm12, %v4625_v55, -inf }
0x111d   :  { %4627 = vmax.xlane.f32.xlu0 %v4626_v19 }
0x11aa   :  { %v4628_v30 = vpop.xlane.xlu0 %4627 }
0x11ab   :  { %v4629_v4 = vsub.f32 %v4625_v55, %v4628_v30 }
0x11ad   :  { %v4630_v39 = vmul.f32 1.442695, %v4629_v4 }
0x11af   :  { %5947 = vpow2.f32 %v4630_v39 }
0x11b9   :  { %v5948_v48 = vpop.eup %5947 }
0x11ba   :  { %v4632_v41 = vsel %vm4586_vm12, %v5948_v48, 0.0 }
0x11bb   :  { %4633 = vadd.xlane.f32.xlu0 %v4632_v41 }
0x11bc   :  { %6564 = shalt.err (!%p6561_p6)
}
0x11bd   :  { %s6565_s5 = scalar_lea.hbm %s6908_s19, 128 }
0x11be   :  { %p6566_p7 = scmp.ne.s32.totalorder %s6908_s19, %s6565_s5  ;;  %p6569_p8 = scmp.lt.u32.totalorder %s6565_s5, %s6908_s19 }
0x11c0   :  { %p6571_p9 = pnand %p6569_p8, %p6566_p7 }
0x11c2   :  { %6574 = shalt.err (!%p6571_p9)
}
0x11c3   :  { %4647 = dma.vmem_to_hbm [thread:$0]  %s4645_s7, 128, %s6908_s19, [#allocation4]  }
0x11c4   :  { %s6575_s13 = scalar_lea.vmem %s4655_s20, 128  ;;  %p6580_p11 = scmp.lt.s32.totalorder %s4655_s20, %s4655_s20 }
0x11c5   :  { %p6576_p10 = scmp.ne.s32.totalorder %s4655_s20, %s6575_s13  ;;  %p6581_p12 = scmp.lt.s32.totalorder %s6575_s13, %s6575_s13 }
0x11c7   :  { %p6582_p13 = por %p6581_p12, %p6580_p11 }
0x11c9   :  { %p6583_p0 = pnand %p6582_p13, %p6576_p10 }
0x11cb   :  { %6586 = shalt.err (!%p6583_p0)
}
0x11cc   :  { %s6587_s27 = scalar_lea.hbm %s6913_s4, 128 }
0x11cd   :  { %p6588_p1 = scmp.ne.s32.totalorder %s6913_s4, %s6587_s27  ;;  %p6591_p2 = scmp.lt.u32.totalorder %s6587_s27, %s6913_s4 }
0x11cf   :  { %p6593_p3 = pnand %p6591_p2, %p6588_p1 }
0x11d1   :  { %6596 = shalt.err (!%p6593_p3)
}
0x11d2   :  { %4657 = dma.vmem_to_hbm [thread:$0]  %s4655_s20, 128, %s6913_s4, [#allocation40]  }
0x1248   :  { %v4634_v26 = vpop.xlane.xlu0 %4633 }
0x1249   :  { %5949 = vrcp.f32 %v4634_v26 }
0x1253   :  { %v5950_v29 = vpop.eup %5949 }
0x1254   :  { %v4636_v10 = vmul.f32 %v5950_v29, %v5948_v48 }
0x1256   :  { %4637 = vst.msk [vmem:[%s6918_s8] sm:$0xff] %vm4586_vm12, %v4636_v10 }
0x1257   :  { %6621 = dma.done.wait [#allocation4], 128  }
0x1258   :  { %6622 = vsyncadd [#allocation4], 4294967168 }
0x1259   :  { %6623 = dma.done.wait [#allocation40], 128  }
0x125a   :  { %6624 = vsyncadd [#allocation40], 4294967168 }
0x125b   :  { %4668 = vsyncpa [#allocation3], 1 }
0x125c   :  { %4669 = vsyncpa [#allocation6], 1 }
0x125d   :  { %4670 = vsyncpa [#allocation9], 1 }
0x125e   :  { %4671 = vsyncpa [#allocation12], 1 }
0x125f   :  { %4672 = vsyncpa [#allocation15], 1 }
0x1260   :  { %4673 = vsyncpa [#allocation18], 1 }
0x1261   :  { %4674 = vsyncpa [#allocation21], 1 }
0x1262   :  { %4675 = vsyncpa [#allocation24], 1 }
0x1263   :  { %4676 = vsyncpa [#allocation27], 1 }
0x1264   :  { %4677 = vsyncpa [#allocation30], 1 }
0x1265   :  { %4678 = vsyncpa [#allocation33], 1 }
0x1266   :  { %4679 = vsyncpa [#allocation36], 1 }
0x1267   :  { %4680 = vsyncpa [#allocation4], 1 }
0x1268   :  { %4681 = vsyncpa [#allocation40], 1 }

</bundles_post_ra>
